<compile_context>
chip_gen: v7x
topology: tpu7x:2x2x1
jax: 0.10.0
libtpu: 0.0.40
codegen_flags: <defaults>
</compile_context>

<pallas_src>
import math

import jax
import jax.numpy as jnp
from jax.experimental import pallas as pl
from jax.experimental.pallas import tpu as pltpu

F32 = jnp.float32
BF16 = jnp.bfloat16
BN_EPS = 1e-5
PRELU_ALPHA = 0.25              # nn.PReLU() default init (single shared parameter)
_VMEM_LIMIT = 40 * 1024 * 1024  # explicit scoped-VMEM limit (< v7x 64 MiB physical)


def _round_up(x, m):
    return ((x + m - 1) // m) * m


def _pick_tile(n, candidates):
    for c in candidates:
        if n % c == 0:
            return c
    return n


def _select_tiles(Mp, Np, Kp):
    """Tile selection: big TM, full-K single pass when it fits, >=2 parallel blocks."""
    TK = Kp if Kp <= 2048 else _pick_tile(Kp, (2048, 1024, 512, 256, 128))
    TM = _pick_tile(Mp, (512, 256, 128, 64, 32, 16, 8))
    TN = _pick_tile(Np, (512, 256, 128))
    # v7x megacore: keep at least two blocks across the parallel axes when possible
    if (Mp // TM) * (Np // TN) < 2:
        if TM >= 16:
            TM //= 2
        elif TN >= 256:
            TN //= 2
    return TM, TN, TK


# ----------------------------- fused matmul kernels -------------------------

def _make_mm_kernel_single(alpha, has_residual):
    """Single K pass: out = act(A @ W + bias [+ residual]); no accumulator scratch."""

    def kernel(*refs):
        if has_residual:
            a_ref, w_ref, b_ref, r_ref, o_ref = refs
        else:
            a_ref, w_ref, b_ref, o_ref = refs
            r_ref = None
        z = jnp.dot(a_ref[...], w_ref[...], preferred_element_type=jnp.float32)
        z = z + b_ref[...]
        if has_residual:
            z = z + r_ref[...].astype(jnp.float32)
        if alpha is not None:
            z = jnp.where(z >= 0.0, z, alpha * z)           # PReLU, scalar alpha
        o_ref[...] = z.astype(o_ref.dtype)

    return kernel


def _make_mm_kernel_multi(alpha, has_residual):
    """K-tiled path: f32 VMEM accumulator, init at k==0, epilogue at k==last."""

    def kernel(*refs):
        if has_residual:
            a_ref, w_ref, b_ref, r_ref, o_ref, acc_ref = refs
        else:
            a_ref, w_ref, b_ref, o_ref, acc_ref = refs
            r_ref = None

        @pl.when(pl.program_id(2) == 0)
        def _():
            acc_ref[...] = jnp.zeros_like(acc_ref)

        acc_ref[...] += jnp.dot(a_ref[...], w_ref[...],
                                preferred_element_type=jnp.float32)

        @pl.when(pl.program_id(2) == pl.num_programs(2) - 1)
        def _():
            z = acc_ref[...] + b_ref[...]
            if has_residual:
                z = z + r_ref[...].astype(jnp.float32)
            if alpha is not None:
                z = jnp.where(z >= 0.0, z, alpha * z)
            o_ref[...] = z.astype(o_ref.dtype)

    return kernel


def matmul_bn_act(a, layer, residual=None, out_dtype=BF16):
    """Fused (a @ W) + bias (+residual) -> PReLU.  BN scale is pre-folded into W."""
    w, bias, alpha = layer["w_mat"], layer["bias"], layer["alpha"]
    M, K = a.shape
    Kp, Np = w.shape

    a = a.astype(BF16)
    if K != Kp:                                   # only the 7x7x3 stem needs K padding
        a = jnp.pad(a, ((0, 0), (0, Kp - K)))
    Mp = _round_up(M, 8)
    if Mp != M:
        a = jnp.pad(a, ((0, Mp - M), (0, 0)))

    TM, TN, TK = _select_tiles(Mp, Np, Kp)
    has_res = residual is not None
    args = [a, w, bias]
    if has_res:
        r = residual.astype(BF16)
        if Mp != M:
            r = jnp.pad(r, ((0, Mp - M), (0, 0)))
        args.append(r)

    if TK == Kp:
        # Single-pass K: no accumulator revisit, no init/epilogue branches.
        in_specs = [
            pl.BlockSpec((TM, Kp), lambda i, j: (i, 0)),
            pl.BlockSpec((Kp, TN), lambda i, j: (0, j)),
            pl.BlockSpec((1, TN), lambda i, j: (0, j)),
        ]
        if has_res:
            in_specs.append(pl.BlockSpec((TM, TN), lambda i, j: (i, j)))
        out = pl.pallas_call(
            _make_mm_kernel_single(alpha, has_res),
            out_shape=jax.ShapeDtypeStruct((Mp, Np), out_dtype),
            grid=(Mp // TM, Np // TN),
            in_specs=in_specs,
            out_specs=pl.BlockSpec((TM, TN), lambda i, j: (i, j)),
            compiler_params=pltpu.CompilerParams(
                dimension_semantics=("parallel", "parallel"),
                vmem_limit_bytes=_VMEM_LIMIT),
        )(*args)
    else:
        in_specs = [
            pl.BlockSpec((TM, TK), lambda i, j, k: (i, k)),
            pl.BlockSpec((TK, TN), lambda i, j, k: (k, j)),
            pl.BlockSpec((1, TN), lambda i, j, k: (0, j)),
        ]
        if has_res:
            in_specs.append(pl.BlockSpec((TM, TN), lambda i, j, k: (i, j)))
        out = pl.pallas_call(
            _make_mm_kernel_multi(alpha, has_res),
            out_shape=jax.ShapeDtypeStruct((Mp, Np), out_dtype),
            grid=(Mp // TM, Np // TN, Kp // TK),
            in_specs=in_specs,
            out_specs=pl.BlockSpec((TM, TN), lambda i, j, k: (i, j)),
            scratch_shapes=[pltpu.VMEM((TM, TN), jnp.float32)],
            compiler_params=pltpu.CompilerParams(
                dimension_semantics=("parallel", "parallel", "arbitrary"),
                vmem_limit_bytes=_VMEM_LIMIT),
        )(*args)

    if Mp != M:
        out = out[:M]
    return out


# ----------------------------- 3x3 stride-1 conv (in-kernel window gather) ---

def _make_conv3_kernel(Wp, M, alpha):
    offs = [dy * Wp + dx for dy in range(3) for dx in range(3)]

    def kernel(x_ref, w_ref, b_ref, o_ref):
        acc = jnp.dot(x_ref[0, offs[0]:offs[0] + M, :], w_ref[0],
                      preferred_element_type=jnp.float32)
        for t in range(1, 9):
            acc += jnp.dot(x_ref[0, offs[t]:offs[t] + M, :], w_ref[t],
                           preferred_element_type=jnp.float32)
        z = acc + b_ref[...]
        if alpha is not None:
            z = jnp.where(z >= 0.0, z, alpha * z)
        o_ref[0] = z.astype(o_ref.dtype)

    return kernel


def conv3x3_s1(x, layer):
    """3x3 / stride-1 / pad-1 conv + folded BN (+PReLU) with no HBM im2col.

    The padded image is flattened per image to (rows, C).  Because the "wide"
    output keeps the padded row pitch Wp, tap (dy,dx) is a contiguous row slice
    at static offset dy*Wp+dx of the VMEM-resident block; the Wp-W junk columns
    are discarded in the wrapper.
    """
    N, H, W, C = x.shape
    Wp = W + 2
    Lp = (H + 3) * Wp            # 1 top pad row + 2 bottom rows (wrap safety)
    M = H * Wp                   # wide-output rows per image
    cout_p = layer["cout_p"]

    xp = jnp.pad(x.astype(BF16), ((0, 0), (1, 2), (1, 1), (0, 0)))
    xf = xp.reshape(N, Lp, C)

    TN = _pick_tile(cout_p, (256, 128))
    if N * (cout_p // TN) < 2 and TN > 128:      # keep both v7x cores busy
        TN = 128

    out = pl.pallas_call(
        _make_conv3_kernel(Wp, M, layer["alpha"]),
        out_shape=jax.ShapeDtypeStruct((N, M, cout_p), BF16),
        grid=(N, cout_p // TN),
        in_specs=[
            pl.BlockSpec((1, Lp, C), lambda n, j: (n, 0, 0)),
            pl.BlockSpec((9, C, TN), lambda n, j: (0, 0, j)),
            pl.BlockSpec((1, TN), lambda n, j: (0, j)),
        ],
        out_specs=pl.BlockSpec((1, M, TN), lambda n, j: (n, 0, j)),
        compiler_params=pltpu.CompilerParams(
            dimension_semantics=("parallel", "parallel"),
            vmem_limit_bytes=_VMEM_LIMIT),
    )(xf, layer["w_taps"], layer["bias"])

    return out.reshape(N, H, Wp, cout_p)[:, :, :W, :]


# ----------------------------- conv wrapper ---------------------------------

def conv_forward(x_nhwc, layer, residual=None):
    """Conv2d + folded BN (+fused residual/PReLU). NHWC in, lane-padded NHWC out."""
    N, H, W, C = x_nhwc.shape
    k, s, p = layer["k"], layer["stride"], layer["pad"]
    Ho = (H + 2 * p - k) // s + 1
    Wo = (W + 2 * p - k) // s + 1

    if "w_taps" in layer:                         # 3x3 stride-1: in-kernel gather
        return conv3x3_s1(x_nhwc, layer)

    if k == 1 and p == 0:
        xs = x_nhwc if s == 1 else x_nhwc[:, ::s, ::s, :]
        a = xs.reshape(N * Ho * Wo, C)
    else:
        # TODO(synk): the stride-2 3x3s and the 7x7 stem still materialize im2col
        # (~2.25x / tiny-channel amplification); extend the in-kernel gather to
        # strided windows to remove it entirely.
        xp = jnp.pad(x_nhwc, ((0, 0), (p, p), (p, p), (0, 0)))
        wins = [xp[:, dy:dy + s * (Ho - 1) + 1:s, dx:dx + s * (Wo - 1) + 1:s, :]
                for dy in range(k) for dx in range(k)]
        a = jnp.stack(wins, axis=3).reshape(N * Ho * Wo, k * k * C)

    r = None
    if residual is not None:
        r = residual.reshape(N * Ho * Wo, layer["cout_p"])
    out = matmul_bn_act(a, layer, residual=r)
    return out.reshape(N, Ho, Wo, layer["cout_p"])


# ----------------------------- max pooling ----------------------------------

def _make_maxpool_kernel(Ho, Wo):
    def kernel(xe_ref, xo_ref, o_ref):
        # padded columns 2wo, 2wo+1, 2wo+2 via the even/odd phase inputs
        c0 = xe_ref[0, :, 0:Wo, :]
        c1 = xo_ref[0, :, 0:Wo, :]
        c2 = xe_ref[0, :, 1:Wo + 1, :]
        wmax = jnp.maximum(jnp.maximum(c0, c1), c2)          # (Hp, Wo, C)
        C = wmax.shape[-1]
        # padded rows 2ho, 2ho+1, 2ho+2 via pairing the (outer) row axis
        a = wmax[0:2 * Ho].reshape(Ho, 2, Wo, C)
        b = wmax[2:2 * Ho + 2].reshape(Ho, 2, Wo, C)
        out = jnp.maximum(jnp.maximum(a[:, 0], a[:, 1]), b[:, 0])
        o_ref[0] = out.astype(o_ref.dtype)

    return kernel


def maxpool_3x3_s2_p1(x):
    """MaxPool2d(3, stride=2, padding=1) on NHWC; one padded read, no 9x views."""
    N, H, W, C = x.shape
    assert H % 2 == 0 and W % 2 == 0
    Ho = (H - 1) // 2 + 1
    Wo = (W - 1) // 2 + 1
    neg = float(jnp.finfo(x.dtype).min)
    xp = jnp.pad(x, ((0, 0), (1, 1), (1, 1), (0, 0)), constant_values=neg)
    Hp = H + 2
    # split padded width into even/odd column phases once (~1x traffic, plain XLA)
    xe = xp[:, :, 0::2, :]
    xo = xp[:, :, 1::2, :]
    out = pl.pallas_call(
        _make_maxpool_kernel(Ho, Wo),
        out_shape=jax.ShapeDtypeStruct((N, Ho, Wo, C), x.dtype),
        grid=(N,),
        in_specs=[
            pl.BlockSpec((1, Hp, xe.shape[2], C), lambda n: (n, 0, 0, 0)),
            pl.BlockSpec((1, Hp, xo.shape[2], C), lambda n: (n, 0, 0, 0)),
        ],
        out_specs=pl.BlockSpec((1, Ho, Wo, C), lambda n: (n, 0, 0, 0)),
        compiler_params=pltpu.CompilerParams(
            dimension_semantics=("parallel",),
            vmem_limit_bytes=_VMEM_LIMIT),
    )(xe, xo)
    return out


# ----------------------------- parameter init / prep ------------------------

def _kaiming_conv(key, cout, cin, k):
    fan_in = cin * k * k
    return jax.random.normal(key, (cout, cin, k, k), F32) * math.sqrt(2.0 / fan_in)


def prepare_conv_bn(w, conv_bias, alpha, stride, padding, cin_pad):
    """Fold eval-mode BN scale into the weight and bias; pad/cast to bf16 once."""
    cout, cin, kh, kw = w.shape
    cout_p = _round_up(cout, 128)
    # BatchNorm running stats at init (eval mode): mean=0, var=1, gamma=1, beta=0.
    # NOTE: loading trained weights requires folding the real stats/affine params.
    gamma = jnp.ones((cout,), F32)
    beta = jnp.zeros((cout,), F32)
    mean = jnp.zeros((cout,), F32)
    var = jnp.ones((cout,), F32)
    scale = gamma / jnp.sqrt(var + BN_EPS)
    bias = beta - mean * scale
    if conv_bias is not None:
        bias = bias + conv_bias * scale
    w = w * scale[:, None, None, None]                 # fold BN scale into weights
    wt = jnp.transpose(w, (2, 3, 1, 0))                # (kh, kw, cin, cout)
    wt = jnp.pad(wt, ((0, 0), (0, 0), (0, cin_pad - cin), (0, cout_p - cout)))
    layer = {
        "bias": jnp.zeros((1, cout_p), F32).at[0, :cout].set(bias),
        "alpha": alpha, "k": kh, "stride": stride, "pad": padding,
        "cin_p": cin_pad, "cout_p": cout_p,
    }
    if kh == 3 and stride == 1 and padding == 1:
        layer["w_taps"] = wt.reshape(kh * kw, cin_pad, cout_p).astype(BF16)
    else:
        K = kh * kw * cin_pad
        Kp = _round_up(K, 128)
        w_mat = wt.reshape(K, cout_p)
        if Kp != K:
            w_mat = jnp.pad(w_mat, ((0, Kp - K), (0, 0)))
        layer["w_mat"] = w_mat.astype(BF16)
    return layer


def prepare_linear(w, b):
    out_f, in_f = w.shape
    in_p = _round_up(in_f, 128)
    out_p = _round_up(out_f, 128)
    w_mat = jnp.pad(w.T, ((0, in_p - in_f), (0, out_p - out_f))).astype(BF16)
    return {
        "w_mat": w_mat,
        "bias": jnp.zeros((1, out_p), F32).at[0, :out_f].set(b),
        "alpha": None, "k": 1, "stride": 1, "pad": 0,
        "cin_p": in_p, "cout_p": out_p,
    }


def init_bottleneck_block(key, cin, cout, hidden, stride):
    ks = jax.random.split(key, 4)
    cin_p = _round_up(cin, 128)
    hid_p = _round_up(hidden, 128)
    p = {
        # feature_mixing: 1x1 conv + BN + PReLU
        "fm": prepare_conv_bn(_kaiming_conv(ks[0], hidden, cin, 1), None,
                              alpha=PRELU_ALPHA, stride=1, padding=0, cin_pad=cin_p),
        # spatial_mixing: 3x3 conv (stride) + BN + PReLU
        "sm": prepare_conv_bn(_kaiming_conv(ks[1], hidden, hidden, 3), None,
                              alpha=PRELU_ALPHA, stride=stride, padding=1,
                              cin_pad=hid_p),
        # bottleneck_channels: 1x1 conv + BN; block-final PReLU fused into this
        # conv's epilogue AFTER the residual add.
        "bc": prepare_conv_bn(_kaiming_conv(ks[2], cout, hidden, 1), None,
                              alpha=PRELU_ALPHA, stride=1, padding=0, cin_pad=hid_p),
        "sc": None,
    }
    if not (stride == 1 and cin == cout):
        p["sc"] = prepare_conv_bn(_kaiming_conv(ks[3], cout, cin, 1), None,
                                  alpha=None, stride=stride, padding=0, cin_pad=cin_p)
    return p


def init_resnet(key, stage_cfgs, num_classes):
    total_blocks = sum(s[2] for s in stage_cfgs)
    keys = iter(jax.random.split(key, 4 + total_blocks))
    params = {}
    stem_w = _kaiming_conv(next(keys), 64, 3, 7)
    stem_b = jax.random.normal(next(keys), (64,), F32) * 0.01
    # stem: Conv2d(3, 64, k=7, s=2, p=3, bias=True) + BatchNorm (no activation)
    params["stem"] = prepare_conv_bn(stem_w, stem_b, alpha=None,
                                     stride=2, padding=3, cin_pad=3)
    blocks = []
    cin = 64
    for hidden, cout, nblocks, stride in stage_cfgs:
        for bi in range(nblocks):
            s = stride if bi == 0 else 1
            blocks.append(init_bottleneck_block(next(keys), cin, cout, hidden, s))
            cin = cout
    params["blocks"] = blocks
    params["feat_dim"] = cin
    cls_w = jax.random.normal(next(keys), (num_classes, cin), F32) * math.sqrt(2.0 / cin)
    cls_b = jax.random.normal(next(keys), (num_classes,), F32) * 0.01
    params["cls"] = prepare_linear(cls_w, cls_b)
    params["num_classes"] = num_classes
    return params


# ----------------------------- forward ---------------------------------------

def bottleneck_block_forward(p, x):
    fm = conv_forward(x, p["fm"])                 # 1x1 + BN + PReLU
    sm = conv_forward(fm, p["sm"])                # 3x3 (+stride) + BN + PReLU
    if p["sc"] is None:
        res = x                                   # identity shortcut
    else:
        res = conv_forward(x, p["sc"])            # 1x1(stride) + BN
    # TODO(synk): torchvision StochasticDepth is identity in eval mode; train-mode
    # random batch dropping is not implemented.
    return conv_forward(sm, p["bc"], residual=res)    # 1x1 + BN + add + PReLU


def resnet_forward(params, x_nchw, return_feats=False):
    x = jnp.transpose(x_nchw, (0, 2, 3, 1)).astype(BF16)     # NCHW -> NHWC
    x = conv_forward(x, params["stem"])
    x = maxpool_3x3_s2_p1(x)
    for bp in params["blocks"]:
        x = bottleneck_block_forward(bp, x)
    # global average pool: tiny reduction, plain XLA beats a dedicated kernel launch
    feats = jnp.mean(x.astype(F32), axis=(1, 2))[:, :params["feat_dim"]]
    if return_feats:
        return feats
    logits = matmul_bn_act(feats, params["cls"], out_dtype=F32)   # f32 classifier
    return logits[:, :params["num_classes"]]


# ----------------------------- main ------------------------------------------

if __name__ == "__main__":
    root = jax.random.PRNGKey(0)
    k_params, k_x = jax.random.split(root)

    # Small config consistent with the module: fixed 3-channel stem (k7 s2 p3) + BN,
    # MaxPool(3,2,1), two stages of BottleneckBlocks ([hidden, out, n, stride]),
    # global average pool, Linear classifier.
    stage_cfgs = [[32, 128, 2, 1], [64, 256, 2, 2]]
    num_classes = 32
    params = init_resnet(k_params, stage_cfgs, num_classes)

    x = jax.random.normal(k_x, (2, 3, 32, 32), F32)    # NCHW, like the PyTorch module

    fwd = jax.jit(lambda inp: resnet_forward(params, inp))
    out = jax.block_until_ready(fwd(x))
    assert out.shape == (2, num_classes), out.shape
    assert bool(jnp.all(jnp.isfinite(out)))
    print("KERNEL_OK")
</pallas_src>

<mosaic_0001>
module attributes {stable_mosaic.version = 11 : i64} {
  func.func @kernel(%arg0: i32, %arg1: i32, %arg2: memref<256x256xbf16, #tpu.memory_space<vmem>>, %arg3: memref<256x128xbf16, #tpu.memory_space<vmem>>, %arg4: memref<1x128xf32, #tpu.memory_space<vmem>>, %arg5: memref<256x128xbf16, #tpu.memory_space<vmem>>) attributes {dimension_semantics = [#tpu.dimension_semantics<parallel>, #tpu.dimension_semantics<parallel>], iteration_bounds = array<i64: 2, 1>, scalar_prefetch = 0 : i64, scratch_operands = 0 : i64, tpu.core_type = #tpu.core_type<tc>, window_params = [{transform_indices = @transform_0, window_bounds = array<i64: 256, 256>}, {transform_indices = @transform_1, window_bounds = array<i64: 256, 128>}, {transform_indices = @transform_2, window_bounds = array<i64: 1, 128>}, {transform_indices = @transform_3, window_bounds = array<i64: 256, 128>}]} {
    %c0 = arith.constant 0 : index
    %c0_0 = arith.constant 0 : index
    %0 = vector.load %arg2[%c0, %c0_0] : memref<256x256xbf16, #tpu.memory_space<vmem>>, vector<256x256xbf16>
    %c0_1 = arith.constant 0 : index
    %c0_2 = arith.constant 0 : index
    %1 = vector.load %arg3[%c0_1, %c0_2] : memref<256x128xbf16, #tpu.memory_space<vmem>>, vector<256x128xbf16>
    %cst = arith.constant dense<0.000000e+00> : vector<256x128xf32>
    %2 = tpu.matmul %0, %1, %cst {dimension_numbers = #tpu.dot_dimension_numbers<[1], [0], [0], [1], [0, 0, 1, 1], [], []>} : vector<256x256xbf16>, vector<256x128xbf16>, vector<256x128xf32> -> vector<256x128xf32>
    %c0_3 = arith.constant 0 : index
    %c0_4 = arith.constant 0 : index
    %3 = vector.load %arg4[%c0_3, %c0_4] : memref<1x128xf32, #tpu.memory_space<vmem>>, vector<1x128xf32>
    %4 = vector.broadcast %3 : vector<1x128xf32> to vector<256x128xf32>
    %5 = arith.addf %2, %4 : vector<256x128xf32>
    %6 = arith.truncf %5 : vector<256x128xf32> to vector<256x128xbf16>
    %c0_5 = arith.constant 0 : index
    %c0_6 = arith.constant 0 : index
    %7 = vector.load %arg5[%c0_5, %c0_6] : memref<256x128xbf16, #tpu.memory_space<vmem>>, vector<256x128xbf16>
    tpu.vector_store %arg5[%c0_5, %c0_6], %6 {strides = array<i32>} : memref<256x128xbf16, #tpu.memory_space<vmem>>, vector<256x128xbf16>,
    return
  }
  func.func @transform_0(%arg0: i32, %arg1: i32) -> (i32, i32) {
    %c0_i32 = arith.constant 0 : i32
    %c0_i32_0 = arith.constant 0 : i32
    return %arg0, %c0_i32 : i32, i32
  }
  func.func @transform_1(%arg0: i32, %arg1: i32) -> (i32, i32) {
    %c0_i32 = arith.constant 0 : i32
    %c0_i32_0 = arith.constant 0 : i32
    return %c0_i32, %arg1 : i32, i32
  }
  func.func @transform_2(%arg0: i32, %arg1: i32) -> (i32, i32) {
    %c0_i32 = arith.constant 0 : i32
    %c0_i32_0 = arith.constant 0 : i32
    return %c0_i32, %arg1 : i32, i32
  }
  func.func @transform_3(%arg0: i32, %arg1: i32) -> (i32, i32) {
    %c0_i32 = arith.constant 0 : i32
    return %arg0, %arg1 : i32, i32
  }
}

module attributes {stable_mosaic.version = 11 : i64} {
  func.func @kernel(%arg0: i32, %arg1: i32, %arg2: memref<64x128xbf16, #tpu.memory_space<vmem>>, %arg3: memref<128x128xbf16, #tpu.memory_space<vmem>>, %arg4: memref<1x128xf32, #tpu.memory_space<vmem>>, %arg5: memref<64x128xbf16, #tpu.memory_space<vmem>>) attributes {dimension_semantics = [#tpu.dimension_semantics<parallel>, #tpu.dimension_semantics<parallel>], iteration_bounds = array<i64: 2, 1>, scalar_prefetch = 0 : i64, scratch_operands = 0 : i64, tpu.core_type = #tpu.core_type<tc>, window_params = [{transform_indices = @transform_0, window_bounds = array<i64: 64, 128>}, {transform_indices = @transform_1, window_bounds = array<i64: 128, 128>}, {transform_indices = @transform_2, window_bounds = array<i64: 1, 128>}, {transform_indices = @transform_3, window_bounds = array<i64: 64, 128>}]} {
    %c0 = arith.constant 0 : index
    %c0_0 = arith.constant 0 : index
    %0 = vector.load %arg2[%c0, %c0_0] : memref<64x128xbf16, #tpu.memory_space<vmem>>, vector<64x128xbf16>
    %c0_1 = arith.constant 0 : index
    %c0_2 = arith.constant 0 : index
    %1 = vector.load %arg3[%c0_1, %c0_2] : memref<128x128xbf16, #tpu.memory_space<vmem>>, vector<128x128xbf16>
    %cst = arith.constant dense<0.000000e+00> : vector<64x128xf32>
    %2 = tpu.matmul %0, %1, %cst {dimension_numbers = #tpu.dot_dimension_numbers<[1], [0], [0], [1], [0, 0, 1, 1], [], []>} : vector<64x128xbf16>, vector<128x128xbf16>, vector<64x128xf32> -> vector<64x128xf32>
    %c0_3 = arith.constant 0 : index
    %c0_4 = arith.constant 0 : index
    %3 = vector.load %arg4[%c0_3, %c0_4] : memref<1x128xf32, #tpu.memory_space<vmem>>, vector<1x128xf32>
    %4 = vector.broadcast %3 : vector<1x128xf32> to vector<64x128xf32>
    %5 = arith.addf %2, %4 : vector<64x128xf32>
    %cst_5 = arith.constant 0.000000e+00 : f32
    %6 = vector.broadcast %cst_5 : f32 to vector<64x128xf32>
    %7 = arith.cmpf oge, %5, %6 : vector<64x128xf32>
    %cst_6 = arith.constant 2.500000e-01 : f32
    %8 = vector.broadcast %cst_6 : f32 to vector<64x128xf32>
    %9 = arith.mulf %8, %5 : vector<64x128xf32>
    %10 = arith.select %7, %5, %9 : vector<64x128xi1>, vector<64x128xf32>
    %11 = arith.truncf %10 : vector<64x128xf32> to vector<64x128xbf16>
    %c0_7 = arith.constant 0 : index
    %c0_8 = arith.constant 0 : index
    %12 = vector.load %arg5[%c0_7, %c0_8] : memref<64x128xbf16, #tpu.memory_space<vmem>>, vector<64x128xbf16>
    tpu.vector_store %arg5[%c0_7, %c0_8], %11 {strides = array<i32>} : memref<64x128xbf16, #tpu.memory_space<vmem>>, vector<64x128xbf16>,
    return
  }
  func.func @transform_0(%arg0: i32, %arg1: i32) -> (i32, i32) {
    %c0_i32 = arith.constant 0 : i32
    %c0_i32_0 = arith.constant 0 : i32
    return %arg0, %c0_i32 : i32, i32
  }
  func.func @transform_1(%arg0: i32, %arg1: i32) -> (i32, i32) {
    %c0_i32 = arith.constant 0 : i32
    %c0_i32_0 = arith.constant 0 : i32
    return %c0_i32, %arg1 : i32, i32
  }
  func.func @transform_2(%arg0: i32, %arg1: i32) -> (i32, i32) {
    %c0_i32 = arith.constant 0 : i32
    %c0_i32_0 = arith.constant 0 : i32
    return %c0_i32, %arg1 : i32, i32
  }
  func.func @transform_3(%arg0: i32, %arg1: i32) -> (i32, i32) {
    %c0_i32 = arith.constant 0 : i32
    return %arg0, %arg1 : i32, i32
  }
}

module attributes {stable_mosaic.version = 11 : i64} {
  func.func @kernel(%arg0: i32, %arg1: memref<1x18x9x128xbf16, #tpu.memory_space<vmem>>, %arg2: memref<1x18x9x128xbf16, #tpu.memory_space<vmem>>, %arg3: memref<1x8x8x128xbf16, #tpu.memory_space<vmem>>) attributes {dimension_semantics = [#tpu.dimension_semantics<parallel>], iteration_bounds = array<i64: 2>, scalar_prefetch = 0 : i64, scratch_operands = 0 : i64, tpu.core_type = #tpu.core_type<tc>, window_params = [{transform_indices = @transform_0, window_bounds = array<i64: 1, 18, 9, 128>}, {transform_indices = @transform_1, window_bounds = array<i64: 1, 18, 9, 128>}, {transform_indices = @transform_2, window_bounds = array<i64: 1, 8, 8, 128>}]} {
    %c0 = arith.constant 0 : index
    %c0_0 = arith.constant 0 : index
    %c0_1 = arith.constant 0 : index
    %c0_2 = arith.constant 0 : index
    %0 = vector.load %arg1[%c0, %c0_0, %c0_1, %c0_2] : memref<1x18x9x128xbf16, #tpu.memory_space<vmem>>, vector<1x18x8x128xbf16>
    %1 = vector.shape_cast %0 : vector<1x18x8x128xbf16> to vector<18x8x128xbf16>
    %c0_3 = arith.constant 0 : index
    %c0_4 = arith.constant 0 : index
    %c0_5 = arith.constant 0 : index
    %c0_6 = arith.constant 0 : index
    %2 = vector.load %arg2[%c0_3, %c0_4, %c0_5, %c0_6] : memref<1x18x9x128xbf16, #tpu.memory_space<vmem>>, vector<1x18x8x128xbf16>
    %3 = vector.shape_cast %2 : vector<1x18x8x128xbf16> to vector<18x8x128xbf16>
    %c0_7 = arith.constant 0 : index
    %c0_8 = arith.constant 0 : index
    %c1 = arith.constant 1 : index
    %c0_9 = arith.constant 0 : index
    %4 = vector.load %arg1[%c0_7, %c0_8, %c1, %c0_9] : memref<1x18x9x128xbf16, #tpu.memory_space<vmem>>, vector<1x18x8x128xbf16>
    %5 = vector.shape_cast %4 : vector<1x18x8x128xbf16> to vector<18x8x128xbf16>
    %6 = arith.maximumf %1, %3 : vector<18x8x128xbf16>
    %7 = arith.maximumf %6, %5 : vector<18x8x128xbf16>
    %8 = vector.extract_strided_slice %7 {offsets = [0, 0, 0], sizes = [16, 8, 128], strides = [1, 1, 1]} : vector<18x8x128xbf16> to vector<16x8x128xbf16>
    %9 = vector.shape_cast %8 : vector<16x8x128xbf16> to vector<8x2x8x128xbf16>
    %10 = vector.extract_strided_slice %7 {offsets = [2, 0, 0], sizes = [16, 8, 128], strides = [1, 1, 1]} : vector<18x8x128xbf16> to vector<16x8x128xbf16>
    %11 = vector.shape_cast %10 : vector<16x8x128xbf16> to vector<8x2x8x128xbf16>
    %12 = vector.extract_strided_slice %9 {offsets = [0, 0, 0, 0], sizes = [8, 1, 8, 128], strides = [1, 1, 1, 1]} : vector<8x2x8x128xbf16> to vector<8x1x8x128xbf16>
    %13 = vector.shape_cast %12 : vector<8x1x8x128xbf16> to vector<8x8x128xbf16>
    %14 = vector.extract_strided_slice %9 {offsets = [0, 1, 0, 0], sizes = [8, 1, 8, 128], strides = [1, 1, 1, 1]} : vector<8x2x8x128xbf16> to vector<8x1x8x128xbf16>
    %15 = vector.shape_cast %14 : vector<8x1x8x128xbf16> to vector<8x8x128xbf16>
    %16 = arith.maximumf %13, %15 : vector<8x8x128xbf16>
    %17 = vector.extract_strided_slice %11 {offsets = [0, 0, 0, 0], sizes = [8, 1, 8, 128], strides = [1, 1, 1, 1]} : vector<8x2x8x128xbf16> to vector<8x1x8x128xbf16>
    %18 = vector.shape_cast %17 : vector<8x1x8x128xbf16> to vector<8x8x128xbf16>
    %19 = arith.maximumf %16, %18 : vector<8x8x128xbf16>
    %c0_10 = arith.constant 0 : index
    %c0_11 = arith.constant 0 : index
    %c0_12 = arith.constant 0 : index
    %c0_13 = arith.constant 0 : index
    %20 = vector.load %arg3[%c0_10, %c0_11, %c0_12, %c0_13] : memref<1x8x8x128xbf16, #tpu.memory_space<vmem>>, vector<1x8x8x128xbf16>
    %21 = vector.shape_cast %20 : vector<1x8x8x128xbf16> to vector<8x8x128xbf16>
    %22 = vector.shape_cast %19 : vector<8x8x128xbf16> to vector<1x8x8x128xbf16>
    tpu.vector_store %arg3[%c0_10, %c0_11, %c0_12, %c0_13], %22 {strides = array<i32>} : memref<1x8x8x128xbf16, #tpu.memory_space<vmem>>, vector<1x8x8x128xbf16>,
    return
  }
  func.func @transform_0(%arg0: i32) -> (i32, i32, i32, i32) {
    %c0_i32 = arith.constant 0 : i32
    %c0_i32_0 = arith.constant 0 : i32
    %c0_i32_1 = arith.constant 0 : i32
    %c0_i32_2 = arith.constant 0 : i32
    return %arg0, %c0_i32, %c0_i32_0, %c0_i32_1 : i32, i32, i32, i32
  }
  func.func @transform_1(%arg0: i32) -> (i32, i32, i32, i32) {
    %c0_i32 = arith.constant 0 : i32
    %c0_i32_0 = arith.constant 0 : i32
    %c0_i32_1 = arith.constant 0 : i32
    %c0_i32_2 = arith.constant 0 : i32
    return %arg0, %c0_i32, %c0_i32_0, %c0_i32_1 : i32, i32, i32, i32
  }
  func.func @transform_2(%arg0: i32) -> (i32, i32, i32, i32) {
    %c0_i32 = arith.constant 0 : i32
    %c0_i32_0 = arith.constant 0 : i32
    %c0_i32_1 = arith.constant 0 : i32
    %c0_i32_2 = arith.constant 0 : i32
    return %arg0, %c0_i32, %c0_i32_0, %c0_i32_1 : i32, i32, i32, i32
  }
}

module attributes {stable_mosaic.version = 11 : i64} {
  func.func @kernel(%arg0: i32, %arg1: i32, %arg2: memref<1x110x128xbf16, #tpu.memory_space<vmem>>, %arg3: memref<9x128x128xbf16, #tpu.memory_space<vmem>>, %arg4: memref<1x128xf32, #tpu.memory_space<vmem>>, %arg5: memref<1x80x128xbf16, #tpu.memory_space<vmem>>) attributes {dimension_semantics = [#tpu.dimension_semantics<parallel>, #tpu.dimension_semantics<parallel>], iteration_bounds = array<i64: 2, 1>, scalar_prefetch = 0 : i64, scratch_operands = 0 : i64, tpu.core_type = #tpu.core_type<tc>, window_params = [{transform_indices = @transform_0, window_bounds = array<i64: 1, 110, 128>}, {transform_indices = @transform_1, window_bounds = array<i64: 9, 128, 128>}, {transform_indices = @transform_2, window_bounds = array<i64: 1, 128>}, {transform_indices = @transform_3, window_bounds = array<i64: 1, 80, 128>}]} {
    %c0 = arith.constant 0 : index
    %c0_0 = arith.constant 0 : index
    %c0_1 = arith.constant 0 : index
    %0 = vector.load %arg2[%c0, %c0_0, %c0_1] : memref<1x110x128xbf16, #tpu.memory_space<vmem>>, vector<1x80x128xbf16>
    %1 = vector.shape_cast %0 : vector<1x80x128xbf16> to vector<80x128xbf16>
    %c0_2 = arith.constant 0 : index
    %c0_3 = arith.constant 0 : index
    %c0_4 = arith.constant 0 : index
    %2 = vector.load %arg3[%c0_2, %c0_3, %c0_4] : memref<9x128x128xbf16, #tpu.memory_space<vmem>>, vector<1x128x128xbf16>
    %3 = vector.shape_cast %2 : vector<1x128x128xbf16> to vector<128x128xbf16>
    %cst = arith.constant dense<0.000000e+00> : vector<80x128xf32>
    %4 = tpu.matmul %1, %3, %cst {dimension_numbers = #tpu.dot_dimension_numbers<[1], [0], [0], [1], [0, 0, 1, 1], [], []>} : vector<80x128xbf16>, vector<128x128xbf16>, vector<80x128xf32> -> vector<80x128xf32>
    %c0_5 = arith.constant 0 : index
    %c1 = arith.constant 1 : index
    %c0_6 = arith.constant 0 : index
    %5 = vector.load %arg2[%c0_5, %c1, %c0_6] : memref<1x110x128xbf16, #tpu.memory_space<vmem>>, vector<1x80x128xbf16>
    %6 = vector.shape_cast %5 : vector<1x80x128xbf16> to vector<80x128xbf16>
    %c1_7 = arith.constant 1 : index
    %c0_8 = arith.constant 0 : index
    %c0_9 = arith.constant 0 : index
    %7 = vector.load %arg3[%c1_7, %c0_8, %c0_9] : memref<9x128x128xbf16, #tpu.memory_space<vmem>>, vector<1x128x128xbf16>
    %8 = vector.shape_cast %7 : vector<1x128x128xbf16> to vector<128x128xbf16>
    %cst_10 = arith.constant dense<0.000000e+00> : vector<80x128xf32>
    %9 = tpu.matmul %6, %8, %cst_10 {dimension_numbers = #tpu.dot_dimension_numbers<[1], [0], [0], [1], [0, 0, 1, 1], [], []>} : vector<80x128xbf16>, vector<128x128xbf16>, vector<80x128xf32> -> vector<80x128xf32>
    %10 = arith.addf %4, %9 : vector<80x128xf32>
    %c0_11 = arith.constant 0 : index
    %c2 = arith.constant 2 : index
    %c0_12 = arith.constant 0 : index
    %11 = vector.load %arg2[%c0_11, %c2, %c0_12] : memref<1x110x128xbf16, #tpu.memory_space<vmem>>, vector<1x80x128xbf16>
    %12 = vector.shape_cast %11 : vector<1x80x128xbf16> to vector<80x128xbf16>
    %c2_13 = arith.constant 2 : index
    %c0_14 = arith.constant 0 : index
    %c0_15 = arith.constant 0 : index
    %13 = vector.load %arg3[%c2_13, %c0_14, %c0_15] : memref<9x128x128xbf16, #tpu.memory_space<vmem>>, vector<1x128x128xbf16>
    %14 = vector.shape_cast %13 : vector<1x128x128xbf16> to vector<128x128xbf16>
    %cst_16 = arith.constant dense<0.000000e+00> : vector<80x128xf32>
    %15 = tpu.matmul %12, %14, %cst_16 {dimension_numbers = #tpu.dot_dimension_numbers<[1], [0], [0], [1], [0, 0, 1, 1], [], []>} : vector<80x128xbf16>, vector<128x128xbf16>, vector<80x128xf32> -> vector<80x128xf32>
    %16 = arith.addf %10, %15 : vector<80x128xf32>
    %c0_17 = arith.constant 0 : index
    %c10 = arith.constant 10 : index
    %c0_18 = arith.constant 0 : index
    %17 = vector.load %arg2[%c0_17, %c10, %c0_18] : memref<1x110x128xbf16, #tpu.memory_space<vmem>>, vector<1x80x128xbf16>
    %18 = vector.shape_cast %17 : vector<1x80x128xbf16> to vector<80x128xbf16>
    %c3 = arith.constant 3 : index
    %c0_19 = arith.constant 0 : index
    %c0_20 = arith.constant 0 : index
    %19 = vector.load %arg3[%c3, %c0_19, %c0_20] : memref<9x128x128xbf16, #tpu.memory_space<vmem>>, vector<1x128x128xbf16>
    %20 = vector.shape_cast %19 : vector<1x128x128xbf16> to vector<128x128xbf16>
    %cst_21 = arith.constant dense<0.000000e+00> : vector<80x128xf32>
    %21 = tpu.matmul %18, %20, %cst_21 {dimension_numbers = #tpu.dot_dimension_numbers<[1], [0], [0], [1], [0, 0, 1, 1], [], []>} : vector<80x128xbf16>, vector<128x128xbf16>, vector<80x128xf32> -> vector<80x128xf32>
    %22 = arith.addf %16, %21 : vector<80x128xf32>
    %c0_22 = arith.constant 0 : index
    %c11 = arith.constant 11 : index
    %c0_23 = arith.constant 0 : index
    %23 = vector.load %arg2[%c0_22, %c11, %c0_23] : memref<1x110x128xbf16, #tpu.memory_space<vmem>>, vector<1x80x128xbf16>
    %24 = vector.shape_cast %23 : vector<1x80x128xbf16> to vector<80x128xbf16>
    %c4 = arith.constant 4 : index
    %c0_24 = arith.constant 0 : index
    %c0_25 = arith.constant 0 : index
    %25 = vector.load %arg3[%c4, %c0_24, %c0_25] : memref<9x128x128xbf16, #tpu.memory_space<vmem>>, vector<1x128x128xbf16>
    %26 = vector.shape_cast %25 : vector<1x128x128xbf16> to vector<128x128xbf16>
    %cst_26 = arith.constant dense<0.000000e+00> : vector<80x128xf32>
    %27 = tpu.matmul %24, %26, %cst_26 {dimension_numbers = #tpu.dot_dimension_numbers<[1], [0], [0], [1], [0, 0, 1, 1], [], []>} : vector<80x128xbf16>, vector<128x128xbf16>, vector<80x128xf32> -> vector<80x128xf32>
    %28 = arith.addf %22, %27 : vector<80x128xf32>
    %c0_27 = arith.constant 0 : index
    %c12 = arith.constant 12 : index
    %c0_28 = arith.constant 0 : index
    %29 = vector.load %arg2[%c0_27, %c12, %c0_28] : memref<1x110x128xbf16, #tpu.memory_space<vmem>>, vector<1x80x128xbf16>
    %30 = vector.shape_cast %29 : vector<1x80x128xbf16> to vector<80x128xbf16>
    %c5 = arith.constant 5 : index
    %c0_29 = arith.constant 0 : index
    %c0_30 = arith.constant 0 : index
    %31 = vector.load %arg3[%c5, %c0_29, %c0_30] : memref<9x128x128xbf16, #tpu.memory_space<vmem>>, vector<1x128x128xbf16>
    %32 = vector.shape_cast %31 : vector<1x128x128xbf16> to vector<128x128xbf16>
    %cst_31 = arith.constant dense<0.000000e+00> : vector<80x128xf32>
    %33 = tpu.matmul %30, %32, %cst_31 {dimension_numbers = #tpu.dot_dimension_numbers<[1], [0], [0], [1], [0, 0, 1, 1], [], []>} : vector<80x128xbf16>, vector<128x128xbf16>, vector<80x128xf32> -> vector<80x128xf32>
    %34 = arith.addf %28, %33 : vector<80x128xf32>
    %c0_32 = arith.constant 0 : index
    %c20 = arith.constant 20 : index
    %c0_33 = arith.constant 0 : index
    %35 = vector.load %arg2[%c0_32, %c20, %c0_33] : memref<1x110x128xbf16, #tpu.memory_space<vmem>>, vector<1x80x128xbf16>
    %36 = vector.shape_cast %35 : vector<1x80x128xbf16> to vector<80x128xbf16>
    %c6 = arith.constant 6 : index
    %c0_34 = arith.constant 0 : index
    %c0_35 = arith.constant 0 : index
    %37 = vector.load %arg3[%c6, %c0_34, %c0_35] : memref<9x128x128xbf16, #tpu.memory_space<vmem>>, vector<1x128x128xbf16>
    %38 = vector.shape_cast %37 : vector<1x128x128xbf16> to vector<128x128xbf16>
    %cst_36 = arith.constant dense<0.000000e+00> : vector<80x128xf32>
    %39 = tpu.matmul %36, %38, %cst_36 {dimension_numbers = #tpu.dot_dimension_numbers<[1], [0], [0], [1], [0, 0, 1, 1], [], []>} : vector<80x128xbf16>, vector<128x128xbf16>, vector<80x128xf32> -> vector<80x128xf32>
    %40 = arith.addf %34, %39 : vector<80x128xf32>
    %c0_37 = arith.constant 0 : index
    %c21 = arith.constant 21 : index
    %c0_38 = arith.constant 0 : index
    %41 = vector.load %arg2[%c0_37, %c21, %c0_38] : memref<1x110x128xbf16, #tpu.memory_space<vmem>>, vector<1x80x128xbf16>
    %42 = vector.shape_cast %41 : vector<1x80x128xbf16> to vector<80x128xbf16>
    %c7 = arith.constant 7 : index
    %c0_39 = arith.constant 0 : index
    %c0_40 = arith.constant 0 : index
    %43 = vector.load %arg3[%c7, %c0_39, %c0_40] : memref<9x128x128xbf16, #tpu.memory_space<vmem>>, vector<1x128x128xbf16>
    %44 = vector.shape_cast %43 : vector<1x128x128xbf16> to vector<128x128xbf16>
    %cst_41 = arith.constant dense<0.000000e+00> : vector<80x128xf32>
    %45 = tpu.matmul %42, %44, %cst_41 {dimension_numbers = #tpu.dot_dimension_numbers<[1], [0], [0], [1], [0, 0, 1, 1], [], []>} : vector<80x128xbf16>, vector<128x128xbf16>, vector<80x128xf32> -> vector<80x128xf32>
    %46 = arith.addf %40, %45 : vector<80x128xf32>
    %c0_42 = arith.constant 0 : index
    %c22 = arith.constant 22 : index
    %c0_43 = arith.constant 0 : index
    %47 = vector.load %arg2[%c0_42, %c22, %c0_43] : memref<1x110x128xbf16, #tpu.memory_space<vmem>>, vector<1x80x128xbf16>
    %48 = vector.shape_cast %47 : vector<1x80x128xbf16> to vector<80x128xbf16>
    %c8 = arith.constant 8 : index
    %c0_44 = arith.constant 0 : index
    %c0_45 = arith.constant 0 : index
    %49 = vector.load %arg3[%c8, %c0_44, %c0_45] : memref<9x128x128xbf16, #tpu.memory_space<vmem>>, vector<1x128x128xbf16>
    %50 = vector.shape_cast %49 : vector<1x128x128xbf16> to vector<128x128xbf16>
    %cst_46 = arith.constant dense<0.000000e+00> : vector<80x128xf32>
    %51 = tpu.matmul %48, %50, %cst_46 {dimension_numbers = #tpu.dot_dimension_numbers<[1], [0], [0], [1], [0, 0, 1, 1], [], []>} : vector<80x128xbf16>, vector<128x128xbf16>, vector<80x128xf32> -> vector<80x128xf32>
    %52 = arith.addf %46, %51 : vector<80x128xf32>
    %c0_47 = arith.constant 0 : index
    %c0_48 = arith.constant 0 : index
    %53 = vector.load %arg4[%c0_47, %c0_48] : memref<1x128xf32, #tpu.memory_space<vmem>>, vector<1x128xf32>
    %54 = vector.broadcast %53 : vector<1x128xf32> to vector<80x128xf32>
    %55 = arith.addf %52, %54 : vector<80x128xf32>
    %cst_49 = arith.constant 0.000000e+00 : f32
    %56 = vector.broadcast %cst_49 : f32 to vector<80x128xf32>
    %57 = arith.cmpf oge, %55, %56 : vector<80x128xf32>
    %cst_50 = arith.constant 2.500000e-01 : f32
    %58 = vector.broadcast %cst_50 : f32 to vector<80x128xf32>
    %59 = arith.mulf %58, %55 : vector<80x128xf32>
    %60 = arith.select %57, %55, %59 : vector<80x128xi1>, vector<80x128xf32>
    %61 = arith.truncf %60 : vector<80x128xf32> to vector<80x128xbf16>
    %c0_51 = arith.constant 0 : index
    %c0_52 = arith.constant 0 : index
    %c0_53 = arith.constant 0 : index
    %62 = vector.load %arg5[%c0_51, %c0_52, %c0_53] : memref<1x80x128xbf16, #tpu.memory_space<vmem>>, vector<1x80x128xbf16>
    %63 = vector.shape_cast %62 : vector<1x80x128xbf16> to vector<80x128xbf16>
    %64 = vector.shape_cast %61 : vector<80x128xbf16> to vector<1x80x128xbf16>
    tpu.vector_store %arg5[%c0_51, %c0_52, %c0_53], %64 {strides = array<i32>} : memref<1x80x128xbf16, #tpu.memory_space<vmem>>, vector<1x80x128xbf16>,
    return
  }
  func.func @transform_0(%arg0: i32, %arg1: i32) -> (i32, i32, i32) {
    %c0_i32 = arith.constant 0 : i32
    %c0_i32_0 = arith.constant 0 : i32
    %c0_i32_1 = arith.constant 0 : i32
    return %arg0, %c0_i32, %c0_i32_0 : i32, i32, i32
  }
  func.func @transform_1(%arg0: i32, %arg1: i32) -> (i32, i32, i32) {
    %c0_i32 = arith.constant 0 : i32
    %c0_i32_0 = arith.constant 0 : i32
    %c0_i32_1 = arith.constant 0 : i32
    return %c0_i32, %c0_i32_0, %arg1 : i32, i32, i32
  }
  func.func @transform_2(%arg0: i32, %arg1: i32) -> (i32, i32) {
    %c0_i32 = arith.constant 0 : i32
    %c0_i32_0 = arith.constant 0 : i32
    return %c0_i32, %arg1 : i32, i32
  }
  func.func @transform_3(%arg0: i32, %arg1: i32) -> (i32, i32, i32) {
    %c0_i32 = arith.constant 0 : i32
    %c0_i32_0 = arith.constant 0 : i32
    return %arg0, %c0_i32, %arg1 : i32, i32, i32
  }
}

module attributes {stable_mosaic.version = 11 : i64} {
  func.func @kernel(%arg0: i32, %arg1: i32, %arg2: memref<64x128xbf16, #tpu.memory_space<vmem>>, %arg3: memref<128x128xbf16, #tpu.memory_space<vmem>>, %arg4: memref<1x128xf32, #tpu.memory_space<vmem>>, %arg5: memref<64x128xbf16, #tpu.memory_space<vmem>>) attributes {dimension_semantics = [#tpu.dimension_semantics<parallel>, #tpu.dimension_semantics<parallel>], iteration_bounds = array<i64: 2, 1>, scalar_prefetch = 0 : i64, scratch_operands = 0 : i64, tpu.core_type = #tpu.core_type<tc>, window_params = [{transform_indices = @transform_0, window_bounds = array<i64: 64, 128>}, {transform_indices = @transform_1, window_bounds = array<i64: 128, 128>}, {transform_indices = @transform_2, window_bounds = array<i64: 1, 128>}, {transform_indices = @transform_3, window_bounds = array<i64: 64, 128>}]} {
    %c0 = arith.constant 0 : index
    %c0_0 = arith.constant 0 : index
    %0 = vector.load %arg2[%c0, %c0_0] : memref<64x128xbf16, #tpu.memory_space<vmem>>, vector<64x128xbf16>
    %c0_1 = arith.constant 0 : index
    %c0_2 = arith.constant 0 : index
    %1 = vector.load %arg3[%c0_1, %c0_2] : memref<128x128xbf16, #tpu.memory_space<vmem>>, vector<128x128xbf16>
    %cst = arith.constant dense<0.000000e+00> : vector<64x128xf32>
    %2 = tpu.matmul %0, %1, %cst {dimension_numbers = #tpu.dot_dimension_numbers<[1], [0], [0], [1], [0, 0, 1, 1], [], []>} : vector<64x128xbf16>, vector<128x128xbf16>, vector<64x128xf32> -> vector<64x128xf32>
    %c0_3 = arith.constant 0 : index
    %c0_4 = arith.constant 0 : index
    %3 = vector.load %arg4[%c0_3, %c0_4] : memref<1x128xf32, #tpu.memory_space<vmem>>, vector<1x128xf32>
    %4 = vector.broadcast %3 : vector<1x128xf32> to vector<64x128xf32>
    %5 = arith.addf %2, %4 : vector<64x128xf32>
    %6 = arith.truncf %5 : vector<64x128xf32> to vector<64x128xbf16>
    %c0_5 = arith.constant 0 : index
    %c0_6 = arith.constant 0 : index
    %7 = vector.load %arg5[%c0_5, %c0_6] : memref<64x128xbf16, #tpu.memory_space<vmem>>, vector<64x128xbf16>
    tpu.vector_store %arg5[%c0_5, %c0_6], %6 {strides = array<i32>} : memref<64x128xbf16, #tpu.memory_space<vmem>>, vector<64x128xbf16>,
    return
  }
  func.func @transform_0(%arg0: i32, %arg1: i32) -> (i32, i32) {
    %c0_i32 = arith.constant 0 : i32
    %c0_i32_0 = arith.constant 0 : i32
    return %arg0, %c0_i32 : i32, i32
  }
  func.func @transform_1(%arg0: i32, %arg1: i32) -> (i32, i32) {
    %c0_i32 = arith.constant 0 : i32
    %c0_i32_0 = arith.constant 0 : i32
    return %c0_i32, %arg1 : i32, i32
  }
  func.func @transform_2(%arg0: i32, %arg1: i32) -> (i32, i32) {
    %c0_i32 = arith.constant 0 : i32
    %c0_i32_0 = arith.constant 0 : i32
    return %c0_i32, %arg1 : i32, i32
  }
  func.func @transform_3(%arg0: i32, %arg1: i32) -> (i32, i32) {
    %c0_i32 = arith.constant 0 : i32
    return %arg0, %arg1 : i32, i32
  }
}

module attributes {stable_mosaic.version = 11 : i64} {
  func.func @kernel(%arg0: i32, %arg1: i32, %arg2: memref<64x128xbf16, #tpu.memory_space<vmem>>, %arg3: memref<128x128xbf16, #tpu.memory_space<vmem>>, %arg4: memref<1x128xf32, #tpu.memory_space<vmem>>, %arg5: memref<64x128xbf16, #tpu.memory_space<vmem>>, %arg6: memref<64x128xbf16, #tpu.memory_space<vmem>>) attributes {dimension_semantics = [#tpu.dimension_semantics<parallel>, #tpu.dimension_semantics<parallel>], iteration_bounds = array<i64: 2, 1>, scalar_prefetch = 0 : i64, scratch_operands = 0 : i64, tpu.core_type = #tpu.core_type<tc>, window_params = [{transform_indices = @transform_0, window_bounds = array<i64: 64, 128>}, {transform_indices = @transform_1, window_bounds = array<i64: 128, 128>}, {transform_indices = @transform_2, window_bounds = array<i64: 1, 128>}, {transform_indices = @transform_3, window_bounds = array<i64: 64, 128>}, {transform_indices = @transform_4, window_bounds = array<i64: 64, 128>}]} {
    %c0 = arith.constant 0 : index
    %c0_0 = arith.constant 0 : index
    %0 = vector.load %arg2[%c0, %c0_0] : memref<64x128xbf16, #tpu.memory_space<vmem>>, vector<64x128xbf16>
    %c0_1 = arith.constant 0 : index
    %c0_2 = arith.constant 0 : index
    %1 = vector.load %arg3[%c0_1, %c0_2] : memref<128x128xbf16, #tpu.memory_space<vmem>>, vector<128x128xbf16>
    %cst = arith.constant dense<0.000000e+00> : vector<64x128xf32>
    %2 = tpu.matmul %0, %1, %cst {dimension_numbers = #tpu.dot_dimension_numbers<[1], [0], [0], [1], [0, 0, 1, 1], [], []>} : vector<64x128xbf16>, vector<128x128xbf16>, vector<64x128xf32> -> vector<64x128xf32>
    %c0_3 = arith.constant 0 : index
    %c0_4 = arith.constant 0 : index
    %3 = vector.load %arg4[%c0_3, %c0_4] : memref<1x128xf32, #tpu.memory_space<vmem>>, vector<1x128xf32>
    %4 = vector.broadcast %3 : vector<1x128xf32> to vector<64x128xf32>
    %5 = arith.addf %2, %4 : vector<64x128xf32>
    %c0_5 = arith.constant 0 : index
    %c0_6 = arith.constant 0 : index
    %6 = vector.load %arg5[%c0_5, %c0_6] : memref<64x128xbf16, #tpu.memory_space<vmem>>, vector<64x128xbf16>
    %7 = arith.extf %6 : vector<64x128xbf16> to vector<64x128xf32>
    %8 = arith.addf %5, %7 : vector<64x128xf32>
    %cst_7 = arith.constant 0.000000e+00 : f32
    %9 = vector.broadcast %cst_7 : f32 to vector<64x128xf32>
    %10 = arith.cmpf oge, %8, %9 : vector<64x128xf32>
    %cst_8 = arith.constant 2.500000e-01 : f32
    %11 = vector.broadcast %cst_8 : f32 to vector<64x128xf32>
    %12 = arith.mulf %11, %8 : vector<64x128xf32>
    %13 = arith.select %10, %8, %12 : vector<64x128xi1>, vector<64x128xf32>
    %14 = arith.truncf %13 : vector<64x128xf32> to vector<64x128xbf16>
    %c0_9 = arith.constant 0 : index
    %c0_10 = arith.constant 0 : index
    %15 = vector.load %arg6[%c0_9, %c0_10] : memref<64x128xbf16, #tpu.memory_space<vmem>>, vector<64x128xbf16>
    tpu.vector_store %arg6[%c0_9, %c0_10], %14 {strides = array<i32>} : memref<64x128xbf16, #tpu.memory_space<vmem>>, vector<64x128xbf16>,
    return
  }
  func.func @transform_0(%arg0: i32, %arg1: i32) -> (i32, i32) {
    %c0_i32 = arith.constant 0 : i32
    %c0_i32_0 = arith.constant 0 : i32
    return %arg0, %c0_i32 : i32, i32
  }
  func.func @transform_1(%arg0: i32, %arg1: i32) -> (i32, i32) {
    %c0_i32 = arith.constant 0 : i32
    %c0_i32_0 = arith.constant 0 : i32
    return %c0_i32, %arg1 : i32, i32
  }
  func.func @transform_2(%arg0: i32, %arg1: i32) -> (i32, i32) {
    %c0_i32 = arith.constant 0 : i32
    %c0_i32_0 = arith.constant 0 : i32
    return %c0_i32, %arg1 : i32, i32
  }
  func.func @transform_3(%arg0: i32, %arg1: i32) -> (i32, i32) {
    %c0_i32 = arith.constant 0 : i32
    return %arg0, %arg1 : i32, i32
  }
  func.func @transform_4(%arg0: i32, %arg1: i32) -> (i32, i32) {
    %c0_i32 = arith.constant 0 : i32
    return %arg0, %arg1 : i32, i32
  }
}

module attributes {stable_mosaic.version = 11 : i64} {
  func.func @kernel(%arg0: i32, %arg1: i32, %arg2: memref<16x128xbf16, #tpu.memory_space<vmem>>, %arg3: memref<128x256xbf16, #tpu.memory_space<vmem>>, %arg4: memref<1x256xf32, #tpu.memory_space<vmem>>, %arg5: memref<16x256xbf16, #tpu.memory_space<vmem>>, %arg6: memref<16x256xbf16, #tpu.memory_space<vmem>>) attributes {dimension_semantics = [#tpu.dimension_semantics<parallel>, #tpu.dimension_semantics<parallel>], iteration_bounds = array<i64: 2, 1>, scalar_prefetch = 0 : i64, scratch_operands = 0 : i64, tpu.core_type = #tpu.core_type<tc>, window_params = [{transform_indices = @transform_0, window_bounds = array<i64: 16, 128>}, {transform_indices = @transform_1, window_bounds = array<i64: 128, 256>}, {transform_indices = @transform_2, window_bounds = array<i64: 1, 256>}, {transform_indices = @transform_3, window_bounds = array<i64: 16, 256>}, {transform_indices = @transform_4, window_bounds = array<i64: 16, 256>}]} {
    %c0 = arith.constant 0 : index
    %c0_0 = arith.constant 0 : index
    %0 = vector.load %arg2[%c0, %c0_0] : memref<16x128xbf16, #tpu.memory_space<vmem>>, vector<16x128xbf16>
    %c0_1 = arith.constant 0 : index
    %c0_2 = arith.constant 0 : index
    %1 = vector.load %arg3[%c0_1, %c0_2] : memref<128x256xbf16, #tpu.memory_space<vmem>>, vector<128x256xbf16>
    %cst = arith.constant dense<0.000000e+00> : vector<16x256xf32>
    %2 = tpu.matmul %0, %1, %cst {dimension_numbers = #tpu.dot_dimension_numbers<[1], [0], [0], [1], [0, 0, 1, 1], [], []>} : vector<16x128xbf16>, vector<128x256xbf16>, vector<16x256xf32> -> vector<16x256xf32>
    %c0_3 = arith.constant 0 : index
    %c0_4 = arith.constant 0 : index
    %3 = vector.load %arg4[%c0_3, %c0_4] : memref<1x256xf32, #tpu.memory_space<vmem>>, vector<1x256xf32>
    %4 = vector.broadcast %3 : vector<1x256xf32> to vector<16x256xf32>
    %5 = arith.addf %2, %4 : vector<16x256xf32>
    %c0_5 = arith.constant 0 : index
    %c0_6 = arith.constant 0 : index
    %6 = vector.load %arg5[%c0_5, %c0_6] : memref<16x256xbf16, #tpu.memory_space<vmem>>, vector<16x256xbf16>
    %7 = arith.extf %6 : vector<16x256xbf16> to vector<16x256xf32>
    %8 = arith.addf %5, %7 : vector<16x256xf32>
    %cst_7 = arith.constant 0.000000e+00 : f32
    %9 = vector.broadcast %cst_7 : f32 to vector<16x256xf32>
    %10 = arith.cmpf oge, %8, %9 : vector<16x256xf32>
    %cst_8 = arith.constant 2.500000e-01 : f32
    %11 = vector.broadcast %cst_8 : f32 to vector<16x256xf32>
    %12 = arith.mulf %11, %8 : vector<16x256xf32>
    %13 = arith.select %10, %8, %12 : vector<16x256xi1>, vector<16x256xf32>
    %14 = arith.truncf %13 : vector<16x256xf32> to vector<16x256xbf16>
    %c0_9 = arith.constant 0 : index
    %c0_10 = arith.constant 0 : index
    %15 = vector.load %arg6[%c0_9, %c0_10] : memref<16x256xbf16, #tpu.memory_space<vmem>>, vector<16x256xbf16>
    tpu.vector_store %arg6[%c0_9, %c0_10], %14 {strides = array<i32>} : memref<16x256xbf16, #tpu.memory_space<vmem>>, vector<16x256xbf16>,
    return
  }
  func.func @transform_0(%arg0: i32, %arg1: i32) -> (i32, i32) {
    %c0_i32 = arith.constant 0 : i32
    %c0_i32_0 = arith.constant 0 : i32
    return %arg0, %c0_i32 : i32, i32
  }
  func.func @transform_1(%arg0: i32, %arg1: i32) -> (i32, i32) {
    %c0_i32 = arith.constant 0 : i32
    %c0_i32_0 = arith.constant 0 : i32
    return %c0_i32, %arg1 : i32, i32
  }
  func.func @transform_2(%arg0: i32, %arg1: i32) -> (i32, i32) {
    %c0_i32 = arith.constant 0 : i32
    %c0_i32_0 = arith.constant 0 : i32
    return %c0_i32, %arg1 : i32, i32
  }
  func.func @transform_3(%arg0: i32, %arg1: i32) -> (i32, i32) {
    %c0_i32 = arith.constant 0 : i32
    return %arg0, %arg1 : i32, i32
  }
  func.func @transform_4(%arg0: i32, %arg1: i32) -> (i32, i32) {
    %c0_i32 = arith.constant 0 : i32
    return %arg0, %arg1 : i32, i32
  }
}

module attributes {stable_mosaic.version = 11 : i64} {
  func.func @kernel(%arg0: i32, %arg1: i32, %arg2: memref<16x1152xbf16, #tpu.memory_space<vmem>>, %arg3: memref<1152x128xbf16, #tpu.memory_space<vmem>>, %arg4: memref<1x128xf32, #tpu.memory_space<vmem>>, %arg5: memref<16x128xbf16, #tpu.memory_space<vmem>>) attributes {dimension_semantics = [#tpu.dimension_semantics<parallel>, #tpu.dimension_semantics<parallel>], iteration_bounds = array<i64: 2, 1>, scalar_prefetch = 0 : i64, scratch_operands = 0 : i64, tpu.core_type = #tpu.core_type<tc>, window_params = [{transform_indices = @transform_0, window_bounds = array<i64: 16, 1152>}, {transform_indices = @transform_1, window_bounds = array<i64: 1152, 128>}, {transform_indices = @transform_2, window_bounds = array<i64: 1, 128>}, {transform_indices = @transform_3, window_bounds = array<i64: 16, 128>}]} {
    %c0 = arith.constant 0 : index
    %c0_0 = arith.constant 0 : index
    %0 = vector.load %arg2[%c0, %c0_0] : memref<16x1152xbf16, #tpu.memory_space<vmem>>, vector<16x1152xbf16>
    %c0_1 = arith.constant 0 : index
    %c0_2 = arith.constant 0 : index
    %1 = vector.load %arg3[%c0_1, %c0_2] : memref<1152x128xbf16, #tpu.memory_space<vmem>>, vector<1152x128xbf16>
    %cst = arith.constant dense<0.000000e+00> : vector<16x128xf32>
    %2 = tpu.matmul %0, %1, %cst {dimension_numbers = #tpu.dot_dimension_numbers<[1], [0], [0], [1], [0, 0, 1, 1], [], []>} : vector<16x1152xbf16>, vector<1152x128xbf16>, vector<16x128xf32> -> vector<16x128xf32>
    %c0_3 = arith.constant 0 : index
    %c0_4 = arith.constant 0 : index
    %3 = vector.load %arg4[%c0_3, %c0_4] : memref<1x128xf32, #tpu.memory_space<vmem>>, vector<1x128xf32>
    %4 = vector.broadcast %3 : vector<1x128xf32> to vector<16x128xf32>
    %5 = arith.addf %2, %4 : vector<16x128xf32>
    %cst_5 = arith.constant 0.000000e+00 : f32
    %6 = vector.broadcast %cst_5 : f32 to vector<16x128xf32>
    %7 = arith.cmpf oge, %5, %6 : vector<16x128xf32>
    %cst_6 = arith.constant 2.500000e-01 : f32
    %8 = vector.broadcast %cst_6 : f32 to vector<16x128xf32>
    %9 = arith.mulf %8, %5 : vector<16x128xf32>
    %10 = arith.select %7, %5, %9 : vector<16x128xi1>, vector<16x128xf32>
    %11 = arith.truncf %10 : vector<16x128xf32> to vector<16x128xbf16>
    %c0_7 = arith.constant 0 : index
    %c0_8 = arith.constant 0 : index
    %12 = vector.load %arg5[%c0_7, %c0_8] : memref<16x128xbf16, #tpu.memory_space<vmem>>, vector<16x128xbf16>
    tpu.vector_store %arg5[%c0_7, %c0_8], %11 {strides = array<i32>} : memref<16x128xbf16, #tpu.memory_space<vmem>>, vector<16x128xbf16>,
    return
  }
  func.func @transform_0(%arg0: i32, %arg1: i32) -> (i32, i32) {
    %c0_i32 = arith.constant 0 : i32
    %c0_i32_0 = arith.constant 0 : i32
    return %arg0, %c0_i32 : i32, i32
  }
  func.func @transform_1(%arg0: i32, %arg1: i32) -> (i32, i32) {
    %c0_i32 = arith.constant 0 : i32
    %c0_i32_0 = arith.constant 0 : i32
    return %c0_i32, %arg1 : i32, i32
  }
  func.func @transform_2(%arg0: i32, %arg1: i32) -> (i32, i32) {
    %c0_i32 = arith.constant 0 : i32
    %c0_i32_0 = arith.constant 0 : i32
    return %c0_i32, %arg1 : i32, i32
  }
  func.func @transform_3(%arg0: i32, %arg1: i32) -> (i32, i32) {
    %c0_i32 = arith.constant 0 : i32
    return %arg0, %arg1 : i32, i32
  }
}

module attributes {stable_mosaic.version = 11 : i64} {
  func.func @kernel(%arg0: i32, %arg1: i32, %arg2: memref<16x128xbf16, #tpu.memory_space<vmem>>, %arg3: memref<128x256xbf16, #tpu.memory_space<vmem>>, %arg4: memref<1x256xf32, #tpu.memory_space<vmem>>, %arg5: memref<16x256xbf16, #tpu.memory_space<vmem>>) attributes {dimension_semantics = [#tpu.dimension_semantics<parallel>, #tpu.dimension_semantics<parallel>], iteration_bounds = array<i64: 2, 1>, scalar_prefetch = 0 : i64, scratch_operands = 0 : i64, tpu.core_type = #tpu.core_type<tc>, window_params = [{transform_indices = @transform_0, window_bounds = array<i64: 16, 128>}, {transform_indices = @transform_1, window_bounds = array<i64: 128, 256>}, {transform_indices = @transform_2, window_bounds = array<i64: 1, 256>}, {transform_indices = @transform_3, window_bounds = array<i64: 16, 256>}]} {
    %c0 = arith.constant 0 : index
    %c0_0 = arith.constant 0 : index
    %0 = vector.load %arg2[%c0, %c0_0] : memref<16x128xbf16, #tpu.memory_space<vmem>>, vector<16x128xbf16>
    %c0_1 = arith.constant 0 : index
    %c0_2 = arith.constant 0 : index
    %1 = vector.load %arg3[%c0_1, %c0_2] : memref<128x256xbf16, #tpu.memory_space<vmem>>, vector<128x256xbf16>
    %cst = arith.constant dense<0.000000e+00> : vector<16x256xf32>
    %2 = tpu.matmul %0, %1, %cst {dimension_numbers = #tpu.dot_dimension_numbers<[1], [0], [0], [1], [0, 0, 1, 1], [], []>} : vector<16x128xbf16>, vector<128x256xbf16>, vector<16x256xf32> -> vector<16x256xf32>
    %c0_3 = arith.constant 0 : index
    %c0_4 = arith.constant 0 : index
    %3 = vector.load %arg4[%c0_3, %c0_4] : memref<1x256xf32, #tpu.memory_space<vmem>>, vector<1x256xf32>
    %4 = vector.broadcast %3 : vector<1x256xf32> to vector<16x256xf32>
    %5 = arith.addf %2, %4 : vector<16x256xf32>
    %6 = arith.truncf %5 : vector<16x256xf32> to vector<16x256xbf16>
    %c0_5 = arith.constant 0 : index
    %c0_6 = arith.constant 0 : index
    %7 = vector.load %arg5[%c0_5, %c0_6] : memref<16x256xbf16, #tpu.memory_space<vmem>>, vector<16x256xbf16>
    tpu.vector_store %arg5[%c0_5, %c0_6], %6 {strides = array<i32>} : memref<16x256xbf16, #tpu.memory_space<vmem>>, vector<16x256xbf16>,
    return
  }
  func.func @transform_0(%arg0: i32, %arg1: i32) -> (i32, i32) {
    %c0_i32 = arith.constant 0 : i32
    %c0_i32_0 = arith.constant 0 : i32
    return %arg0, %c0_i32 : i32, i32
  }
  func.func @transform_1(%arg0: i32, %arg1: i32) -> (i32, i32) {
    %c0_i32 = arith.constant 0 : i32
    %c0_i32_0 = arith.constant 0 : i32
    return %c0_i32, %arg1 : i32, i32
  }
  func.func @transform_2(%arg0: i32, %arg1: i32) -> (i32, i32) {
    %c0_i32 = arith.constant 0 : i32
    %c0_i32_0 = arith.constant 0 : i32
    return %c0_i32, %arg1 : i32, i32
  }
  func.func @transform_3(%arg0: i32, %arg1: i32) -> (i32, i32) {
    %c0_i32 = arith.constant 0 : i32
    return %arg0, %arg1 : i32, i32
  }
}

module attributes {stable_mosaic.version = 11 : i64} {
  func.func @kernel(%arg0: i32, %arg1: i32, %arg2: memref<16x256xbf16, #tpu.memory_space<vmem>>, %arg3: memref<256x128xbf16, #tpu.memory_space<vmem>>, %arg4: memref<1x128xf32, #tpu.memory_space<vmem>>, %arg5: memref<16x128xbf16, #tpu.memory_space<vmem>>) attributes {dimension_semantics = [#tpu.dimension_semantics<parallel>, #tpu.dimension_semantics<parallel>], iteration_bounds = array<i64: 2, 1>, scalar_prefetch = 0 : i64, scratch_operands = 0 : i64, tpu.core_type = #tpu.core_type<tc>, window_params = [{transform_indices = @transform_0, window_bounds = array<i64: 16, 256>}, {transform_indices = @transform_1, window_bounds = array<i64: 256, 128>}, {transform_indices = @transform_2, window_bounds = array<i64: 1, 128>}, {transform_indices = @transform_3, window_bounds = array<i64: 16, 128>}]} {
    %c0 = arith.constant 0 : index
    %c0_0 = arith.constant 0 : index
    %0 = vector.load %arg2[%c0, %c0_0] : memref<16x256xbf16, #tpu.memory_space<vmem>>, vector<16x256xbf16>
    %c0_1 = arith.constant 0 : index
    %c0_2 = arith.constant 0 : index
    %1 = vector.load %arg3[%c0_1, %c0_2] : memref<256x128xbf16, #tpu.memory_space<vmem>>, vector<256x128xbf16>
    %cst = arith.constant dense<0.000000e+00> : vector<16x128xf32>
    %2 = tpu.matmul %0, %1, %cst {dimension_numbers = #tpu.dot_dimension_numbers<[1], [0], [0], [1], [0, 0, 1, 1], [], []>} : vector<16x256xbf16>, vector<256x128xbf16>, vector<16x128xf32> -> vector<16x128xf32>
    %c0_3 = arith.constant 0 : index
    %c0_4 = arith.constant 0 : index
    %3 = vector.load %arg4[%c0_3, %c0_4] : memref<1x128xf32, #tpu.memory_space<vmem>>, vector<1x128xf32>
    %4 = vector.broadcast %3 : vector<1x128xf32> to vector<16x128xf32>
    %5 = arith.addf %2, %4 : vector<16x128xf32>
    %cst_5 = arith.constant 0.000000e+00 : f32
    %6 = vector.broadcast %cst_5 : f32 to vector<16x128xf32>
    %7 = arith.cmpf oge, %5, %6 : vector<16x128xf32>
    %cst_6 = arith.constant 2.500000e-01 : f32
    %8 = vector.broadcast %cst_6 : f32 to vector<16x128xf32>
    %9 = arith.mulf %8, %5 : vector<16x128xf32>
    %10 = arith.select %7, %5, %9 : vector<16x128xi1>, vector<16x128xf32>
    %11 = arith.truncf %10 : vector<16x128xf32> to vector<16x128xbf16>
    %c0_7 = arith.constant 0 : index
    %c0_8 = arith.constant 0 : index
    %12 = vector.load %arg5[%c0_7, %c0_8] : memref<16x128xbf16, #tpu.memory_space<vmem>>, vector<16x128xbf16>
    tpu.vector_store %arg5[%c0_7, %c0_8], %11 {strides = array<i32>} : memref<16x128xbf16, #tpu.memory_space<vmem>>, vector<16x128xbf16>,
    return
  }
  func.func @transform_0(%arg0: i32, %arg1: i32) -> (i32, i32) {
    %c0_i32 = arith.constant 0 : i32
    %c0_i32_0 = arith.constant 0 : i32
    return %arg0, %c0_i32 : i32, i32
  }
  func.func @transform_1(%arg0: i32, %arg1: i32) -> (i32, i32) {
    %c0_i32 = arith.constant 0 : i32
    %c0_i32_0 = arith.constant 0 : i32
    return %c0_i32, %arg1 : i32, i32
  }
  func.func @transform_2(%arg0: i32, %arg1: i32) -> (i32, i32) {
    %c0_i32 = arith.constant 0 : i32
    %c0_i32_0 = arith.constant 0 : i32
    return %c0_i32, %arg1 : i32, i32
  }
  func.func @transform_3(%arg0: i32, %arg1: i32) -> (i32, i32) {
    %c0_i32 = arith.constant 0 : i32
    return %arg0, %arg1 : i32, i32
  }
}

module attributes {stable_mosaic.version = 11 : i64} {
  func.func @kernel(%arg0: i32, %arg1: i32, %arg2: memref<1x42x128xbf16, #tpu.memory_space<vmem>>, %arg3: memref<9x128x128xbf16, #tpu.memory_space<vmem>>, %arg4: memref<1x128xf32, #tpu.memory_space<vmem>>, %arg5: memref<1x24x128xbf16, #tpu.memory_space<vmem>>) attributes {dimension_semantics = [#tpu.dimension_semantics<parallel>, #tpu.dimension_semantics<parallel>], iteration_bounds = array<i64: 2, 1>, scalar_prefetch = 0 : i64, scratch_operands = 0 : i64, tpu.core_type = #tpu.core_type<tc>, window_params = [{transform_indices = @transform_0, window_bounds = array<i64: 1, 42, 128>}, {transform_indices = @transform_1, window_bounds = array<i64: 9, 128, 128>}, {transform_indices = @transform_2, window_bounds = array<i64: 1, 128>}, {transform_indices = @transform_3, window_bounds = array<i64: 1, 24, 128>}]} {
    %c0 = arith.constant 0 : index
    %c0_0 = arith.constant 0 : index
    %c0_1 = arith.constant 0 : index
    %0 = vector.load %arg2[%c0, %c0_0, %c0_1] : memref<1x42x128xbf16, #tpu.memory_space<vmem>>, vector<1x24x128xbf16>
    %1 = vector.shape_cast %0 : vector<1x24x128xbf16> to vector<24x128xbf16>
    %c0_2 = arith.constant 0 : index
    %c0_3 = arith.constant 0 : index
    %c0_4 = arith.constant 0 : index
    %2 = vector.load %arg3[%c0_2, %c0_3, %c0_4] : memref<9x128x128xbf16, #tpu.memory_space<vmem>>, vector<1x128x128xbf16>
    %3 = vector.shape_cast %2 : vector<1x128x128xbf16> to vector<128x128xbf16>
    %cst = arith.constant dense<0.000000e+00> : vector<24x128xf32>
    %4 = tpu.matmul %1, %3, %cst {dimension_numbers = #tpu.dot_dimension_numbers<[1], [0], [0], [1], [0, 0, 1, 1], [], []>} : vector<24x128xbf16>, vector<128x128xbf16>, vector<24x128xf32> -> vector<24x128xf32>
    %c0_5 = arith.constant 0 : index
    %c1 = arith.constant 1 : index
    %c0_6 = arith.constant 0 : index
    %5 = vector.load %arg2[%c0_5, %c1, %c0_6] : memref<1x42x128xbf16, #tpu.memory_space<vmem>>, vector<1x24x128xbf16>
    %6 = vector.shape_cast %5 : vector<1x24x128xbf16> to vector<24x128xbf16>
    %c1_7 = arith.constant 1 : index
    %c0_8 = arith.constant 0 : index
    %c0_9 = arith.constant 0 : index
    %7 = vector.load %arg3[%c1_7, %c0_8, %c0_9] : memref<9x128x128xbf16, #tpu.memory_space<vmem>>, vector<1x128x128xbf16>
    %8 = vector.shape_cast %7 : vector<1x128x128xbf16> to vector<128x128xbf16>
    %cst_10 = arith.constant dense<0.000000e+00> : vector<24x128xf32>
    %9 = tpu.matmul %6, %8, %cst_10 {dimension_numbers = #tpu.dot_dimension_numbers<[1], [0], [0], [1], [0, 0, 1, 1], [], []>} : vector<24x128xbf16>, vector<128x128xbf16>, vector<24x128xf32> -> vector<24x128xf32>
    %10 = arith.addf %4, %9 : vector<24x128xf32>
    %c0_11 = arith.constant 0 : index
    %c2 = arith.constant 2 : index
    %c0_12 = arith.constant 0 : index
    %11 = vector.load %arg2[%c0_11, %c2, %c0_12] : memref<1x42x128xbf16, #tpu.memory_space<vmem>>, vector<1x24x128xbf16>
    %12 = vector.shape_cast %11 : vector<1x24x128xbf16> to vector<24x128xbf16>
    %c2_13 = arith.constant 2 : index
    %c0_14 = arith.constant 0 : index
    %c0_15 = arith.constant 0 : index
    %13 = vector.load %arg3[%c2_13, %c0_14, %c0_15] : memref<9x128x128xbf16, #tpu.memory_space<vmem>>, vector<1x128x128xbf16>
    %14 = vector.shape_cast %13 : vector<1x128x128xbf16> to vector<128x128xbf16>
    %cst_16 = arith.constant dense<0.000000e+00> : vector<24x128xf32>
    %15 = tpu.matmul %12, %14, %cst_16 {dimension_numbers = #tpu.dot_dimension_numbers<[1], [0], [0], [1], [0, 0, 1, 1], [], []>} : vector<24x128xbf16>, vector<128x128xbf16>, vector<24x128xf32> -> vector<24x128xf32>
    %16 = arith.addf %10, %15 : vector<24x128xf32>
    %c0_17 = arith.constant 0 : index
    %c6 = arith.constant 6 : index
    %c0_18 = arith.constant 0 : index
    %17 = vector.load %arg2[%c0_17, %c6, %c0_18] : memref<1x42x128xbf16, #tpu.memory_space<vmem>>, vector<1x24x128xbf16>
    %18 = vector.shape_cast %17 : vector<1x24x128xbf16> to vector<24x128xbf16>
    %c3 = arith.constant 3 : index
    %c0_19 = arith.constant 0 : index
    %c0_20 = arith.constant 0 : index
    %19 = vector.load %arg3[%c3, %c0_19, %c0_20] : memref<9x128x128xbf16, #tpu.memory_space<vmem>>, vector<1x128x128xbf16>
    %20 = vector.shape_cast %19 : vector<1x128x128xbf16> to vector<128x128xbf16>
    %cst_21 = arith.constant dense<0.000000e+00> : vector<24x128xf32>
    %21 = tpu.matmul %18, %20, %cst_21 {dimension_numbers = #tpu.dot_dimension_numbers<[1], [0], [0], [1], [0, 0, 1, 1], [], []>} : vector<24x128xbf16>, vector<128x128xbf16>, vector<24x128xf32> -> vector<24x128xf32>
    %22 = arith.addf %16, %21 : vector<24x128xf32>
    %c0_22 = arith.constant 0 : index
    %c7 = arith.constant 7 : index
    %c0_23 = arith.constant 0 : index
    %23 = vector.load %arg2[%c0_22, %c7, %c0_23] : memref<1x42x128xbf16, #tpu.memory_space<vmem>>, vector<1x24x128xbf16>
    %24 = vector.shape_cast %23 : vector<1x24x128xbf16> to vector<24x128xbf16>
    %c4 = arith.constant 4 : index
    %c0_24 = arith.constant 0 : index
    %c0_25 = arith.constant 0 : index
    %25 = vector.load %arg3[%c4, %c0_24, %c0_25] : memref<9x128x128xbf16, #tpu.memory_space<vmem>>, vector<1x128x128xbf16>
    %26 = vector.shape_cast %25 : vector<1x128x128xbf16> to vector<128x128xbf16>
    %cst_26 = arith.constant dense<0.000000e+00> : vector<24x128xf32>
    %27 = tpu.matmul %24, %26, %cst_26 {dimension_numbers = #tpu.dot_dimension_numbers<[1], [0], [0], [1], [0, 0, 1, 1], [], []>} : vector<24x128xbf16>, vector<128x128xbf16>, vector<24x128xf32> -> vector<24x128xf32>
    %28 = arith.addf %22, %27 : vector<24x128xf32>
    %c0_27 = arith.constant 0 : index
    %c8 = arith.constant 8 : index
    %c0_28 = arith.constant 0 : index
    %29 = vector.load %arg2[%c0_27, %c8, %c0_28] : memref<1x42x128xbf16, #tpu.memory_space<vmem>>, vector<1x24x128xbf16>
    %30 = vector.shape_cast %29 : vector<1x24x128xbf16> to vector<24x128xbf16>
    %c5 = arith.constant 5 : index
    %c0_29 = arith.constant 0 : index
    %c0_30 = arith.constant 0 : index
    %31 = vector.load %arg3[%c5, %c0_29, %c0_30] : memref<9x128x128xbf16, #tpu.memory_space<vmem>>, vector<1x128x128xbf16>
    %32 = vector.shape_cast %31 : vector<1x128x128xbf16> to vector<128x128xbf16>
    %cst_31 = arith.constant dense<0.000000e+00> : vector<24x128xf32>
    %33 = tpu.matmul %30, %32, %cst_31 {dimension_numbers = #tpu.dot_dimension_numbers<[1], [0], [0], [1], [0, 0, 1, 1], [], []>} : vector<24x128xbf16>, vector<128x128xbf16>, vector<24x128xf32> -> vector<24x128xf32>
    %34 = arith.addf %28, %33 : vector<24x128xf32>
    %c0_32 = arith.constant 0 : index
    %c12 = arith.constant 12 : index
    %c0_33 = arith.constant 0 : index
    %35 = vector.load %arg2[%c0_32, %c12, %c0_33] : memref<1x42x128xbf16, #tpu.memory_space<vmem>>, vector<1x24x128xbf16>
    %36 = vector.shape_cast %35 : vector<1x24x128xbf16> to vector<24x128xbf16>
    %c6_34 = arith.constant 6 : index
    %c0_35 = arith.constant 0 : index
    %c0_36 = arith.constant 0 : index
    %37 = vector.load %arg3[%c6_34, %c0_35, %c0_36] : memref<9x128x128xbf16, #tpu.memory_space<vmem>>, vector<1x128x128xbf16>
    %38 = vector.shape_cast %37 : vector<1x128x128xbf16> to vector<128x128xbf16>
    %cst_37 = arith.constant dense<0.000000e+00> : vector<24x128xf32>
    %39 = tpu.matmul %36, %38, %cst_37 {dimension_numbers = #tpu.dot_dimension_numbers<[1], [0], [0], [1], [0, 0, 1, 1], [], []>} : vector<24x128xbf16>, vector<128x128xbf16>, vector<24x128xf32> -> vector<24x128xf32>
    %40 = arith.addf %34, %39 : vector<24x128xf32>
    %c0_38 = arith.constant 0 : index
    %c13 = arith.constant 13 : index
    %c0_39 = arith.constant 0 : index
    %41 = vector.load %arg2[%c0_38, %c13, %c0_39] : memref<1x42x128xbf16, #tpu.memory_space<vmem>>, vector<1x24x128xbf16>
    %42 = vector.shape_cast %41 : vector<1x24x128xbf16> to vector<24x128xbf16>
    %c7_40 = arith.constant 7 : index
    %c0_41 = arith.constant 0 : index
    %c0_42 = arith.constant 0 : index
    %43 = vector.load %arg3[%c7_40, %c0_41, %c0_42] : memref<9x128x128xbf16, #tpu.memory_space<vmem>>, vector<1x128x128xbf16>
    %44 = vector.shape_cast %43 : vector<1x128x128xbf16> to vector<128x128xbf16>
    %cst_43 = arith.constant dense<0.000000e+00> : vector<24x128xf32>
    %45 = tpu.matmul %42, %44, %cst_43 {dimension_numbers = #tpu.dot_dimension_numbers<[1], [0], [0], [1], [0, 0, 1, 1], [], []>} : vector<24x128xbf16>, vector<128x128xbf16>, vector<24x128xf32> -> vector<24x128xf32>
    %46 = arith.addf %40, %45 : vector<24x128xf32>
    %c0_44 = arith.constant 0 : index
    %c14 = arith.constant 14 : index
    %c0_45 = arith.constant 0 : index
    %47 = vector.load %arg2[%c0_44, %c14, %c0_45] : memref<1x42x128xbf16, #tpu.memory_space<vmem>>, vector<1x24x128xbf16>
    %48 = vector.shape_cast %47 : vector<1x24x128xbf16> to vector<24x128xbf16>
    %c8_46 = arith.constant 8 : index
    %c0_47 = arith.constant 0 : index
    %c0_48 = arith.constant 0 : index
    %49 = vector.load %arg3[%c8_46, %c0_47, %c0_48] : memref<9x128x128xbf16, #tpu.memory_space<vmem>>, vector<1x128x128xbf16>
    %50 = vector.shape_cast %49 : vector<1x128x128xbf16> to vector<128x128xbf16>
    %cst_49 = arith.constant dense<0.000000e+00> : vector<24x128xf32>
    %51 = tpu.matmul %48, %50, %cst_49 {dimension_numbers = #tpu.dot_dimension_numbers<[1], [0], [0], [1], [0, 0, 1, 1], [], []>} : vector<24x128xbf16>, vector<128x128xbf16>, vector<24x128xf32> -> vector<24x128xf32>
    %52 = arith.addf %46, %51 : vector<24x128xf32>
    %c0_50 = arith.constant 0 : index
    %c0_51 = arith.constant 0 : index
    %53 = vector.load %arg4[%c0_50, %c0_51] : memref<1x128xf32, #tpu.memory_space<vmem>>, vector<1x128xf32>
    %54 = vector.broadcast %53 : vector<1x128xf32> to vector<24x128xf32>
    %55 = arith.addf %52, %54 : vector<24x128xf32>
    %cst_52 = arith.constant 0.000000e+00 : f32
    %56 = vector.broadcast %cst_52 : f32 to vector<24x128xf32>
    %57 = arith.cmpf oge, %55, %56 : vector<24x128xf32>
    %cst_53 = arith.constant 2.500000e-01 : f32
    %58 = vector.broadcast %cst_53 : f32 to vector<24x128xf32>
    %59 = arith.mulf %58, %55 : vector<24x128xf32>
    %60 = arith.select %57, %55, %59 : vector<24x128xi1>, vector<24x128xf32>
    %61 = arith.truncf %60 : vector<24x128xf32> to vector<24x128xbf16>
    %c0_54 = arith.constant 0 : index
    %c0_55 = arith.constant 0 : index
    %c0_56 = arith.constant 0 : index
    %62 = vector.load %arg5[%c0_54, %c0_55, %c0_56] : memref<1x24x128xbf16, #tpu.memory_space<vmem>>, vector<1x24x128xbf16>
    %63 = vector.shape_cast %62 : vector<1x24x128xbf16> to vector<24x128xbf16>
    %64 = vector.shape_cast %61 : vector<24x128xbf16> to vector<1x24x128xbf16>
    tpu.vector_store %arg5[%c0_54, %c0_55, %c0_56], %64 {strides = array<i32>} : memref<1x24x128xbf16, #tpu.memory_space<vmem>>, vector<1x24x128xbf16>,
    return
  }
  func.func @transform_0(%arg0: i32, %arg1: i32) -> (i32, i32, i32) {
    %c0_i32 = arith.constant 0 : i32
    %c0_i32_0 = arith.constant 0 : i32
    %c0_i32_1 = arith.constant 0 : i32
    return %arg0, %c0_i32, %c0_i32_0 : i32, i32, i32
  }
  func.func @transform_1(%arg0: i32, %arg1: i32) -> (i32, i32, i32) {
    %c0_i32 = arith.constant 0 : i32
    %c0_i32_0 = arith.constant 0 : i32
    %c0_i32_1 = arith.constant 0 : i32
    return %c0_i32, %c0_i32_0, %arg1 : i32, i32, i32
  }
  func.func @transform_2(%arg0: i32, %arg1: i32) -> (i32, i32) {
    %c0_i32 = arith.constant 0 : i32
    %c0_i32_0 = arith.constant 0 : i32
    return %c0_i32, %arg1 : i32, i32
  }
  func.func @transform_3(%arg0: i32, %arg1: i32) -> (i32, i32, i32) {
    %c0_i32 = arith.constant 0 : i32
    %c0_i32_0 = arith.constant 0 : i32
    return %arg0, %c0_i32, %arg1 : i32, i32, i32
  }
}

module attributes {stable_mosaic.version = 11 : i64} {
  func.func @kernel(%arg0: i32, %arg1: i32, %arg2: memref<8x256xbf16, #tpu.memory_space<vmem>>, %arg3: memref<256x128xbf16, #tpu.memory_space<vmem>>, %arg4: memref<1x128xf32, #tpu.memory_space<vmem>>, %arg5: memref<8x128xf32, #tpu.memory_space<vmem>>) attributes {dimension_semantics = [#tpu.dimension_semantics<parallel>, #tpu.dimension_semantics<parallel>], iteration_bounds = array<i64: 1, 1>, scalar_prefetch = 0 : i64, scratch_operands = 0 : i64, tpu.core_type = #tpu.core_type<tc>, window_params = [{transform_indices = @transform_0, window_bounds = array<i64: 8, 256>}, {transform_indices = @transform_1, window_bounds = array<i64: 256, 128>}, {transform_indices = @transform_2, window_bounds = array<i64: 1, 128>}, {transform_indices = @transform_3, window_bounds = array<i64: 8, 128>}]} {
    %c0 = arith.constant 0 : index
    %c0_0 = arith.constant 0 : index
    %0 = vector.load %arg2[%c0, %c0_0] : memref<8x256xbf16, #tpu.memory_space<vmem>>, vector<8x256xbf16>
    %c0_1 = arith.constant 0 : index
    %c0_2 = arith.constant 0 : index
    %1 = vector.load %arg3[%c0_1, %c0_2] : memref<256x128xbf16, #tpu.memory_space<vmem>>, vector<256x128xbf16>
    %cst = arith.constant dense<0.000000e+00> : vector<8x128xf32>
    %2 = tpu.matmul %0, %1, %cst {dimension_numbers = #tpu.dot_dimension_numbers<[1], [0], [0], [1], [0, 0, 1, 1], [], []>} : vector<8x256xbf16>, vector<256x128xbf16>, vector<8x128xf32> -> vector<8x128xf32>
    %c0_3 = arith.constant 0 : index
    %c0_4 = arith.constant 0 : index
    %3 = vector.load %arg4[%c0_3, %c0_4] : memref<1x128xf32, #tpu.memory_space<vmem>>, vector<1x128xf32>
    %4 = vector.broadcast %3 : vector<1x128xf32> to vector<8x128xf32>
    %5 = arith.addf %2, %4 : vector<8x128xf32>
    %c0_5 = arith.constant 0 : index
    %c0_6 = arith.constant 0 : index
    %6 = vector.load %arg5[%c0_5, %c0_6] : memref<8x128xf32, #tpu.memory_space<vmem>>, vector<8x128xf32>
    tpu.vector_store %arg5[%c0_5, %c0_6], %5 {strides = array<i32>} : memref<8x128xf32, #tpu.memory_space<vmem>>, vector<8x128xf32>,
    return
  }
  func.func @transform_0(%arg0: i32, %arg1: i32) -> (i32, i32) {
    %c0_i32 = arith.constant 0 : i32
    %c0_i32_0 = arith.constant 0 : i32
    return %arg0, %c0_i32 : i32, i32
  }
  func.func @transform_1(%arg0: i32, %arg1: i32) -> (i32, i32) {
    %c0_i32 = arith.constant 0 : i32
    %c0_i32_0 = arith.constant 0 : i32
    return %c0_i32, %arg1 : i32, i32
  }
  func.func @transform_2(%arg0: i32, %arg1: i32) -> (i32, i32) {
    %c0_i32 = arith.constant 0 : i32
    %c0_i32_0 = arith.constant 0 : i32
    return %c0_i32, %arg1 : i32, i32
  }
  func.func @transform_3(%arg0: i32, %arg1: i32) -> (i32, i32) {
    %c0_i32 = arith.constant 0 : i32
    return %arg0, %arg1 : i32, i32
  }
}

</mosaic_0001>

<bundles_post_ra>
// kernel: _lambda_.19
= control target key start
LH: loop header
LB: loop body
LE: loop exit
PB: predicated region body
PF: predicated region fallthrough
CT: control target
= control target key end

     0   :  { %s757_s12 = smov 0   ;;  %s759_s13 = smov 0   ;;  %s832_s0 = inlined_call_operand.vmem [shape: bf16[128,128], index: 0, kind: input, shape index: {}]   ;;  %s833_s1 = inlined_call_operand.vmem [shape: bf16[128,128], index: 1, kind: input, shape index: {}]   ;;  %s834_s2 = inlined_call_operand.vmem [shape: f32[1,128], index: 2, kind: input, shape index: {}]   ;;  %s835_s3 = inlined_call_operand.vmem [shape: bf16[128,128], index: 3, kind: output, shape index: {}]  }
   0x1   :  { %s761_s14 = smov 0  }
   0x2 LB: > { %s25_s15 = sadd.s32 1, %s731_s13  ;;  %p566_p0 = scmp.ge.s32.totalorder %s735_s14, 1  ;;  %s735_s14 = sphi %s761_s14, %s13_s14   ;;  %s731_s13 = sphi %s759_s13, %s837_s13   ;;  %s727_s12 = sphi %s757_s12, %s836_s12  }
   0x3   : > { %p27_p1 = scmp.ge.s32.totalorder %s25_s15, 2  ;;  %p169_p2 = scmp.lt.s32.totalorder %s735_s14, 3 }
   0x5   : > { %s839_s15 = smov (%p27_p1, %s25_s15), 0  ;;  %p170_p3 = pnand %p566_p0, %p169_p2 }
   0x6   : > { %v701_v0 = vld [vmem:[%s833_s1] sm:$0xff] (!%p170_p3)   ;;  %s567_s18 = sshll.u32 (!%p170_p3), %s727_s12, 3  ;;  %v702_v1 = vld [vmem:[%s833_s1 + $0x8] sm:$0xff] (!%p170_p3)   ;;  %v703_v2 = vld [vmem:[%s833_s1 + $0x10] sm:$0xff] (!%p170_p3)  }
   0x7   : > { %173 = sbr.rel (%p170_p3) target bundleno = 264 (0x108), region = 32  ;;  %p204_p4 = scmp.lt.s32.totalorder (!%p170_p3), %s567_s18, 15  ;;  %637 = vmatprep.subr.bf16.mxu0 (!%p170_p3), %v701_v0  ;;  %661 = vmatprep.subr.bf16.mxu1 (!%p170_p3), %v701_v0  ;;  %v704_v3 = vld [vmem:[%s833_s1 + $0x18] sm:$0xff] (!%p170_p3)   ;;  %v705_v6 = vld [vmem:[%s833_s1 + $0x20] sm:$0xff] (!%p170_p3)   ;;  %v706_v7 = vld [vmem:[%s833_s1 + $0x28] sm:$0xff] (!%p170_p3)  }
   0x8   : > { %638 = vmatpush3.bf16.msra.mxu0 (!%p170_p3), %v701_v0  ;;  %669 = vmatpush3.bf16.msra.mxu1 (!%p170_p3), %v701_v0  ;;  %v707_v8 = vld [vmem:[%s833_s1 + $0x30] sm:$0xff] (!%p170_p3)   ;;  %v708_v9 = vld [vmem:[%s833_s1 + $0x38] sm:$0xff] (!%p170_p3)   ;;  %v571_v12 = vld [vmem:[%s834_s2] ss:$0 sm:$0xff] (!%p170_p3) }
   0x9   : > { %639 = vmatprep.subr.bf16.mxu0 (!%p170_p3), %v702_v1  ;;  %662 = vmatprep.subr.bf16.mxu1 (!%p170_p3), %v702_v1 }
   0xc   : > { %640 = vmatpush3.bf16.msra.mxu0 (!%p170_p3), %v702_v1  ;;  %670 = vmatpush3.bf16.msra.mxu1 (!%p170_p3), %v702_v1 }
   0xd   : > { %641 = vmatprep.subr.bf16.mxu0 (!%p170_p3), %v703_v2  ;;  %663 = vmatprep.subr.bf16.mxu1 (!%p170_p3), %v703_v2 }
   0xe   : > { %s841_s18 = smov (!%p204_p4, %s567_s18), 15 }
   0xf   : > { %s568_s23 = sshll.u32 %s841_s18, 2 }
  0x10   : > { %s792_s26 = scalar_lea.vmem %s832_s0, %s568_s23  ;;  %642 = vmatpush3.bf16.msra.mxu0 %v703_v2  ;;  %671 = vmatpush3.bf16.msra.mxu1 %v703_v2  ;;  %s223_s17 = scalar_lea.vmem %s835_s3, %s568_s23 }
  0x11   : > { %v709_v4 = vld [vmem:[%s792_s26] sm:$0xff]   ;;  %v710_v5 = vld [vmem:[%s792_s26 + $0x10] sm:$0xff]   ;;  %643 = vmatprep.subr.bf16.mxu0 %v704_v3  ;;  %664 = vmatprep.subr.bf16.mxu1 %v704_v3  ;;  %v711_v10 = vld [vmem:[%s792_s26 + $0x8] sm:$0xff]  }
  0x12   : > { %653 = vmatprep.mubr.bf16.mxu0 %v709_v4  ;;  %657 = vmatprep.mubr.bf16.mxu1 %v710_v5  ;;  %v712_v11 = vld [vmem:[%s792_s26 + $0x18] sm:$0xff]  }
  0x14   : > { %644 = vmatpush3.bf16.msra.mxu0 %v704_v3  ;;  %672 = vmatpush3.bf16.msra.mxu1 %v704_v3 }
  0x15   : > { %645 = vmatprep.subr.bf16.mxu0 %v705_v6  ;;  %665 = vmatprep.subr.bf16.mxu1 %v705_v6 }
  0x18   : > { %646 = vmatpush3.bf16.msra.mxu0 %v705_v6  ;;  %673 = vmatpush3.bf16.msra.mxu1 %v705_v6 }
  0x19   : > { %647 = vmatprep.subr.bf16.mxu0 %v706_v7  ;;  %666 = vmatprep.subr.bf16.mxu1 %v706_v7 }
  0x1c   : > { %648 = vmatpush3.bf16.msra.mxu0 %v706_v7  ;;  %674 = vmatpush3.bf16.msra.mxu1 %v706_v7 }
  0x1d   : > { %649 = vmatprep.subr.bf16.mxu0 %v707_v8  ;;  %667 = vmatprep.subr.bf16.mxu1 %v707_v8 }
  0x20   : > { %650 = vmatpush3.bf16.msra.mxu0 %v707_v8  ;;  %675 = vmatpush3.bf16.msra.mxu1 %v707_v8 }
  0x21   : > { %651 = vmatprep.subr.bf16.mxu0 %v708_v9  ;;  %668 = vmatprep.subr.bf16.mxu1 %v708_v9 }
  0x24   : > { %652 = vmatpush3.bf16.msra.mxu0 %v708_v9  ;;  %676 = vmatpush3.bf16.msra.mxu1 %v708_v9 }
  0x27   : > { %654 = vmatmul.mubr.bf16.vlgmr.msra.gmra.mrb[0].mxu0 %v711_v10  ;;  %658 = vmatmul.mubr.bf16.vlgmr.msra.gmra.mrb[0].mxu1 %v712_v11 }
  0xfa   : > { %v655_v13 = vpop.f32.mrb[0].mxu0  ;;  %v659_v14 = vpop.f32.mrb[0].mxu1 }
  0xfb   : > { %v372_v15 = vadd.f32 %v655_v13, %v571_v12  ;;  %v388_v16 = vadd.f32 %v659_v14, %v571_v12  ;;  %v363_v17 = vpop.f32.mrb[1].mxu0  ;;  %v379_v18 = vpop.f32.mrb[1].mxu1 }
  0xfc   : > { %v364_v19 = vadd.f32 %v571_v12, %v363_v17  ;;  %v380_v20 = vadd.f32 %v571_v12, %v379_v18  ;;  %v656_v21 = vpop.f32.mrb[2].mxu0  ;;  %v660_v22 = vpop.f32.mrb[2].mxu1 }
  0xfd   : > { %vm396_vm0 = vcmp.ge.f32.partialorder %v372_v15, 0.0  ;;  %v404_v23 = vmul.f32 0.25, %v372_v15  ;;  %vm400_vm1 = vcmp.ge.f32.partialorder %v388_v16, 0.0  ;;  %v408_v24 = vmul.f32 0.25, %v388_v16  ;;  %v366_v25 = vpop.f32.mrb[3].mxu0  ;;  %v382_v26 = vpop.f32.mrb[3].mxu1 }
  0xfe   : > { %vm394_vm2 = vcmp.ge.f32.partialorder %v364_v19, 0.0  ;;  %v402_v27 = vmul.f32 0.25, %v364_v19  ;;  %vm398_vm3 = vcmp.ge.f32.partialorder %v380_v20, 0.0  ;;  %v406_v28 = vmul.f32 0.25, %v380_v20 }
  0xff   : > { %v375_v29 = vadd.f32 %v656_v21, %v571_v12  ;;  %v391_v30 = vadd.f32 %v660_v22, %v571_v12  ;;  %v412_v31 = vsel %vm396_vm0, %v372_v15, %v404_v23  ;;  %v416_v32 = vsel %vm400_vm1, %v388_v16, %v408_v24 }
 0x100   : > { %v367_v33 = vadd.f32 %v571_v12, %v366_v25  ;;  %v383_v34 = vadd.f32 %v571_v12, %v382_v26  ;;  %v410_v39 = vsel %vm394_vm2, %v364_v19, %v402_v27  ;;  %v414_v40 = vsel %vm398_vm3, %v380_v20, %v406_v28 }
 0x101   : > { %vm397_vm4 = vcmp.ge.f32.partialorder %v375_v29, 0.0  ;;  %v405_v35 = vmul.f32 0.25, %v375_v29  ;;  %vm401_vm5 = vcmp.ge.f32.partialorder %v391_v30, 0.0  ;;  %v409_v36 = vmul.f32 0.25, %v391_v30 }
 0x102   : > { %vm395_vm6 = vcmp.ge.f32.partialorder %v367_v33, 0.0  ;;  %v403_v37 = vmul.f32 0.25, %v367_v33  ;;  %vm399_vm7 = vcmp.ge.f32.partialorder %v383_v34, 0.0  ;;  %v407_v38 = vmul.f32 0.25, %v383_v34 }
 0x103   : > { %v413_v41 = vsel %vm397_vm4, %v375_v29, %v405_v35  ;;  %v417_v42 = vsel %vm401_vm5, %v391_v30, %v409_v36 }
 0x104   : > { %v610_v43 = vpack.c.bf16 %v413_v41, %v412_v31  ;;  %v620_v44 = vpack.c.bf16 %v417_v42, %v416_v32  ;;  %v411_v45 = vsel %vm395_vm6, %v367_v33, %v403_v37  ;;  %v415_v46 = vsel %vm399_vm7, %v383_v34, %v407_v38 }
 0x105   : > { %v605_v47 = vpack.c.bf16 %v411_v45, %v410_v39  ;;  %v615_v48 = vpack.c.bf16 %v415_v46, %v414_v40 }
 0x106   : > { %622 = vst [vmem:[%s223_s17 + $0x8] sm:$0xff] %v610_v43   ;;  %624 = vst [vmem:[%s223_s17 + $0x18] sm:$0xff] %v620_v44  }
 0x107   : > { %606 = vst [vmem:[%s223_s17] sm:$0xff] %v605_v47   ;;  %623 = vst [vmem:[%s223_s17 + $0x10] sm:$0xff] %v615_v48  }
 0x108 PF: > { %s13_s14 = sadd.s32 1, %s735_s14   ;;  %s836_s12 = smov %s731_s13 }
 0x109   : > { %p10_p5 = scmp.ge.s32.totalorder %s13_s14, 4   ;;  %s837_s13 = smov %s839_s15 }
 0x10b   :  { %12 = sbr.rel (!%p10_p5) target bundleno = 2 (0x2), region = 68 }

// kernel: _lambda_.17
= control target key start
LH: loop header
LB: loop body
LE: loop exit
PB: predicated region body
PF: predicated region fallthrough
CT: control target
= control target key end

     0   :  { %s1462_s12 = smov 0   ;;  %s1464_s13 = smov 0   ;;  %s1636_s0 = inlined_call_operand.vmem [shape: bf16[512,256], index: 0, kind: input, shape index: {}]   ;;  %s1637_s1 = inlined_call_operand.vmem [shape: bf16[256,128], index: 1, kind: input, shape index: {}]   ;;  %s1638_s2 = inlined_call_operand.vmem [shape: f32[1,128], index: 2, kind: input, shape index: {}]   ;;  %s1639_s3 = inlined_call_operand.vmem [shape: bf16[512,128], index: 3, kind: output, shape index: {}]  }
   0x1   :  { %s1466_s14 = smov 0  }
   0x2 LB: > { %s25_s15 = sadd.s32 1, %s1436_s13  ;;  %p985_p0 = scmp.ge.s32.totalorder %s1440_s14, 1  ;;  %s1440_s14 = sphi %s1466_s14, %s13_s14   ;;  %s1436_s13 = sphi %s1464_s13, %s1641_s13   ;;  %s1432_s12 = sphi %s1462_s12, %s1640_s12  }
   0x3   : > { %p27_p1 = scmp.ge.s32.totalorder %s25_s15, 2  ;;  %p170_p2 = scmp.lt.s32.totalorder %s1440_s14, 3 }
   0x5   : > { %s1643_s15 = smov (%p27_p1, %s25_s15), 0  ;;  %p171_p3 = pnand %p985_p0, %p170_p2 }
   0x6   : > { %v1354_v0 = vld [vmem:[%s1637_s1 + $0x40] sm:$0xff] (!%p171_p3)   ;;  %s986_s18 = sshll.u32 (!%p171_p3), %s1432_s12, 5  ;;  %v1356_v2 = vld [vmem:[%s1637_s1 + $0x48] sm:$0xff] (!%p171_p3)   ;;  %v1358_v4 = vld [vmem:[%s1637_s1 + $0x50] sm:$0xff] (!%p171_p3)  }
   0x7   : > { %174 = sbr.rel (%p171_p3) target bundleno = 317 (0x13d), region = 32  ;;  %v1355_v1 = vld [vmem:[%s1637_s1] sm:$0xff] (!%p171_p3)   ;;  %1202 = vmatprep.subr.bf16.mxu0 (!%p171_p3), %v1354_v0  ;;  %1314 = vmatprep.subr.bf16.mxu1 (!%p171_p3), %v1354_v0  ;;  %v1357_v3 = vld [vmem:[%s1637_s1 + $0x8] sm:$0xff] (!%p171_p3)   ;;  %p206_p4 = scmp.lt.s32.totalorder (!%p171_p3), %s986_s18, 63  ;;  %v1359_v5 = vld [vmem:[%s1637_s1 + $0x10] sm:$0xff] (!%p171_p3)  }
   0x8   : > { %1203 = vmatpush3.bf16.msra.mxu0 (!%p171_p3), %v1355_v1  ;;  %1322 = vmatpush3.bf16.msra.mxu1 (!%p171_p3), %v1355_v1  ;;  %v1360_v6 = vld [vmem:[%s1637_s1 + $0x58] sm:$0xff] (!%p171_p3)   ;;  %v1362_v8 = vld [vmem:[%s1637_s1 + $0x60] sm:$0xff] (!%p171_p3)   ;;  %v1364_v10 = vld [vmem:[%s1637_s1 + $0x68] sm:$0xff] (!%p171_p3)  }
   0x9   : > { %1204 = vmatprep.subr.bf16.mxu0 (!%p171_p3), %v1356_v2  ;;  %1315 = vmatprep.subr.bf16.mxu1 (!%p171_p3), %v1356_v2  ;;  %v1361_v7 = vld [vmem:[%s1637_s1 + $0x18] sm:$0xff] (!%p171_p3)   ;;  %v1363_v9 = vld [vmem:[%s1637_s1 + $0x20] sm:$0xff] (!%p171_p3)   ;;  %v1365_v13 = vld [vmem:[%s1637_s1 + $0x28] sm:$0xff] (!%p171_p3)  }
   0xa   : > { %v1366_v14 = vld [vmem:[%s1637_s1 + $0x70] sm:$0xff] (!%p171_p3)   ;;  %v1368_v16 = vld [vmem:[%s1637_s1 + $0x78] sm:$0xff] (!%p171_p3)   ;;  %v1571_v56 = vld [vmem:[%s1638_s2] ss:$0 sm:$0xff] (!%p171_p3) }
   0xb   : > { %v1367_v15 = vld [vmem:[%s1637_s1 + $0x30] sm:$0xff] (!%p171_p3)   ;;  %v1369_v17 = vld [vmem:[%s1637_s1 + $0x38] sm:$0xff] (!%p171_p3)  }
   0xc   : > { %1205 = vmatpush3.bf16.msra.mxu0 (!%p171_p3), %v1357_v3  ;;  %1323 = vmatpush3.bf16.msra.mxu1 (!%p171_p3), %v1357_v3 }
   0xd   : > { %1206 = vmatprep.subr.bf16.mxu0 (!%p171_p3), %v1358_v4  ;;  %1316 = vmatprep.subr.bf16.mxu1 (!%p171_p3), %v1358_v4 }
   0xe   : > { %s1645_s18 = smov (!%p206_p4, %s986_s18), 63 }
   0xf   : > { %s1074_s6 = sshll.u32 %s1645_s18, 3  ;;  %s990_s5 = sshll.u32 %s1645_s18, 2 }
  0x10   : > { %1207 = vmatpush3.bf16.msra.mxu0 %v1359_v5  ;;  %1324 = vmatpush3.bf16.msra.mxu1 %v1359_v5  ;;  %s1513_s11 = scalar_lea.vmem %s1636_s0, %s1074_s6  ;;  %s1581_s8 = scalar_lea.vmem %s1639_s3, %s990_s5 }
  0x11   : > { %1208 = vmatprep.subr.bf16.mxu0 %v1360_v6  ;;  %1317 = vmatprep.subr.bf16.mxu1 %v1360_v6  ;;  %v1372_v11 = vld [vmem:[%s1513_s11 + $0x4] ss:$8 sps:$4 sm:$0xff]   ;;  %v1370_v18 = vld [vmem:[%s1513_s11] ss:$8 sps:$4 sm:$0xff]   ;;  %v1376_v20 = vld [vmem:[%s1513_s11 + $0x14] ss:$8 sps:$4 sm:$0xff]  }
  0x12   : > { %v1375_v12 = vld [vmem:[%s1513_s11 + $0x84] ss:$8 sps:$4 sm:$0xff]   ;;  %588 = vmatprep.mubr.bf16.mxu0 %v1372_v11  ;;  %v1373_v19 = vld [vmem:[%s1513_s11 + $0x80] ss:$8 sps:$4 sm:$0xff]   ;;  %v1378_v21 = vld [vmem:[%s1513_s11 + $0x94] ss:$8 sps:$4 sm:$0xff]  }
  0x13   : > { %652 = vmatprep.mubr.bf16.mxu1 %v1375_v12  ;;  %v1380_v22 = vld [vmem:[%s1513_s11 + $0x10] ss:$8 sps:$4 sm:$0xff]   ;;  %v1382_v24 = vld [vmem:[%s1513_s11 + $0x24] ss:$8 sps:$4 sm:$0xff]   ;;  %v1386_v26 = vld [vmem:[%s1513_s11 + $0x20] ss:$8 sps:$4 sm:$0xff]  }
  0x14   : > { %1209 = vmatpush3.bf16.msra.mxu0 %v1361_v7  ;;  %1325 = vmatpush3.bf16.msra.mxu1 %v1361_v7  ;;  %v1381_v23 = vld [vmem:[%s1513_s11 + $0x90] ss:$8 sps:$4 sm:$0xff]   ;;  %v1384_v25 = vld [vmem:[%s1513_s11 + $0xa4] ss:$8 sps:$4 sm:$0xff]   ;;  %v1387_v27 = vld [vmem:[%s1513_s11 + $0xa0] ss:$8 sps:$4 sm:$0xff]  }
  0x15   : > { %1210 = vmatprep.subr.bf16.mxu0 %v1362_v8  ;;  %1318 = vmatprep.subr.bf16.mxu1 %v1362_v8  ;;  %v1388_v28 = vld [vmem:[%s1513_s11 + $0x34] ss:$8 sps:$4 sm:$0xff]   ;;  %v1392_v30 = vld [vmem:[%s1513_s11 + $0x30] ss:$8 sps:$4 sm:$0xff]   ;;  %v1394_v32 = vld [vmem:[%s1513_s11 + $0x44] ss:$8 sps:$4 sm:$0xff]  }
  0x16   : > { %v1390_v29 = vld [vmem:[%s1513_s11 + $0xb4] ss:$8 sps:$4 sm:$0xff]   ;;  %v1393_v31 = vld [vmem:[%s1513_s11 + $0xb0] ss:$8 sps:$4 sm:$0xff]   ;;  %v1396_v33 = vld [vmem:[%s1513_s11 + $0xc4] ss:$8 sps:$4 sm:$0xff]  }
  0x17   : > { %v1398_v34 = vld [vmem:[%s1513_s11 + $0x40] ss:$8 sps:$4 sm:$0xff]   ;;  %v1400_v36 = vld [vmem:[%s1513_s11 + $0x54] ss:$8 sps:$4 sm:$0xff]   ;;  %v1404_v38 = vld [vmem:[%s1513_s11 + $0x50] ss:$8 sps:$4 sm:$0xff]  }
  0x18   : > { %1211 = vmatpush3.bf16.msra.mxu0 %v1363_v9  ;;  %1326 = vmatpush3.bf16.msra.mxu1 %v1363_v9  ;;  %v1399_v35 = vld [vmem:[%s1513_s11 + $0xc0] ss:$8 sps:$4 sm:$0xff]   ;;  %v1402_v37 = vld [vmem:[%s1513_s11 + $0xd4] ss:$8 sps:$4 sm:$0xff]   ;;  %v1405_v39 = vld [vmem:[%s1513_s11 + $0xd0] ss:$8 sps:$4 sm:$0xff]  }
  0x19   : > { %1212 = vmatprep.subr.bf16.mxu0 %v1364_v10  ;;  %1319 = vmatprep.subr.bf16.mxu1 %v1364_v10  ;;  %v1406_v40 = vld [vmem:[%s1513_s11 + $0x64] ss:$8 sps:$4 sm:$0xff]   ;;  %v1410_v42 = vld [vmem:[%s1513_s11 + $0x60] ss:$8 sps:$4 sm:$0xff]   ;;  %v1412_v44 = vld [vmem:[%s1513_s11 + $0x74] ss:$8 sps:$4 sm:$0xff]  }
  0x1a   : > { %v1408_v41 = vld [vmem:[%s1513_s11 + $0xe4] ss:$8 sps:$4 sm:$0xff]   ;;  %v1411_v43 = vld [vmem:[%s1513_s11 + $0xe0] ss:$8 sps:$4 sm:$0xff]   ;;  %v1414_v45 = vld [vmem:[%s1513_s11 + $0xf4] ss:$8 sps:$4 sm:$0xff]  }
  0x1b   : > { %v1416_v46 = vld [vmem:[%s1513_s11 + $0x70] ss:$8 sps:$4 sm:$0xff]  }
  0x1c   : > { %1213 = vmatpush3.bf16.msra.mxu0 %v1365_v13  ;;  %1327 = vmatpush3.bf16.msra.mxu1 %v1365_v13  ;;  %v1417_v47 = vld [vmem:[%s1513_s11 + $0xf0] ss:$8 sps:$4 sm:$0xff]  }
  0x1d   : > { %1214 = vmatprep.subr.bf16.mxu0 %v1366_v14  ;;  %1320 = vmatprep.subr.bf16.mxu1 %v1366_v14 }
  0x20   : > { %1215 = vmatpush3.bf16.msra.mxu0 %v1367_v15  ;;  %1328 = vmatpush3.bf16.msra.mxu1 %v1367_v15 }
  0x21   : > { %1216 = vmatprep.subr.bf16.mxu0 %v1368_v16  ;;  %1321 = vmatprep.subr.bf16.mxu1 %v1368_v16 }
  0x24   : > { %1217 = vmatpush3.bf16.msra.mxu0 %v1369_v17  ;;  %1329 = vmatpush3.bf16.msra.mxu1 %v1369_v17 }
  0x27   : > { %589 = vmatmul.mubr.bf16.vlgmr.msra.gmra.mrb[0].mxu0 %v1370_v18  ;;  %653 = vmatmul.mubr.bf16.vlgmr.msra.gmra.mrb[0].mxu1 %v1373_v19 }
  0x28   : > { %596 = vmatprep.mubr.bf16.mxu0 %v1376_v20  ;;  %660 = vmatprep.mubr.bf16.mxu1 %v1378_v21 }
  0x2f   : > { %597 = vmatmul.mubr.bf16.gmra.mrb[4].mxu0 %v1380_v22  ;;  %661 = vmatmul.mubr.bf16.gmra.mrb[4].mxu1 %v1381_v23 }
  0x30   : > { %604 = vmatprep.mubr.bf16.mxu0 %v1382_v24  ;;  %668 = vmatprep.mubr.bf16.mxu1 %v1384_v25 }
  0x37   : > { %605 = vmatmul.mubr.bf16.gmra.mrb[8].mxu0 %v1386_v26  ;;  %669 = vmatmul.mubr.bf16.gmra.mrb[8].mxu1 %v1387_v27 }
  0x38   : > { %612 = vmatprep.mubr.bf16.mxu0 %v1388_v28  ;;  %676 = vmatprep.mubr.bf16.mxu1 %v1390_v29 }
  0x3f   : > { %613 = vmatmul.mubr.bf16.gmra.mrb[12].mxu0 %v1392_v30  ;;  %677 = vmatmul.mubr.bf16.gmra.mrb[12].mxu1 %v1393_v31 }
  0x40   : > { %620 = vmatprep.mubr.bf16.mxu0 %v1394_v32  ;;  %684 = vmatprep.mubr.bf16.mxu1 %v1396_v33 }
  0x47   : > { %621 = vmatmul.mubr.bf16.gmra.mrb[16].mxu0 %v1398_v34  ;;  %685 = vmatmul.mubr.bf16.gmra.mrb[16].mxu1 %v1399_v35 }
  0x48   : > { %628 = vmatprep.mubr.bf16.mxu0 %v1400_v36  ;;  %692 = vmatprep.mubr.bf16.mxu1 %v1402_v37 }
  0x4f   : > { %629 = vmatmul.mubr.bf16.gmra.mrb[20].mxu0 %v1404_v38  ;;  %693 = vmatmul.mubr.bf16.gmra.mrb[20].mxu1 %v1405_v39 }
  0x50   : > { %636 = vmatprep.mubr.bf16.mxu0 %v1406_v40  ;;  %700 = vmatprep.mubr.bf16.mxu1 %v1408_v41 }
  0x57   : > { %637 = vmatmul.mubr.bf16.gmra.mrb[24].mxu0 %v1410_v42  ;;  %701 = vmatmul.mubr.bf16.gmra.mrb[24].mxu1 %v1411_v43 }
  0x58   : > { %644 = vmatprep.mubr.bf16.mxu0 %v1412_v44  ;;  %708 = vmatprep.mubr.bf16.mxu1 %v1414_v45 }
  0x5f   : > { %645 = vmatmul.mubr.bf16.gmra.mrb[28].mxu0 %v1416_v46  ;;  %709 = vmatmul.mubr.bf16.gmra.mrb[28].mxu1 %v1417_v47 }
  0xfa   : > { %v1218_v48 = vpop.f32.mrb[0].mxu0  ;;  %v1266_v49 = vpop.f32.mrb[0].mxu1 }
  0xfb   : > { %v1219_v50 = vpop.f32.mrb[1].mxu0  ;;  %v1267_v51 = vpop.f32.mrb[1].mxu1 }
  0xfc   : > { %v1220_v52 = vadd.f32 %v1219_v50, %v1218_v48  ;;  %v1268_v53 = vadd.f32 %v1267_v51, %v1266_v49  ;;  %v1221_v54 = vpop.f32.mrb[2].mxu0  ;;  %v1269_v55 = vpop.f32.mrb[2].mxu1 }
  0xfd   : > { %v1222_v57 = vpop.f32.mrb[3].mxu0  ;;  %v1270_v58 = vpop.f32.mrb[3].mxu1 }
  0xfe   : > { %v1223_v59 = vadd.f32 %v1222_v57, %v1221_v54  ;;  %v1271_v60 = vadd.f32 %v1270_v58, %v1269_v55  ;;  %v591_v61 = vadd.f32 %v1220_v52, %v1571_v56  ;;  %v655_v62 = vadd.f32 %v1268_v53, %v1571_v56 }
 0x100   : > { %v594_v63 = vadd.f32 %v1223_v59, %v1571_v56  ;;  %v658_v0 = vadd.f32 %v1271_v60, %v1571_v56 }
 0x102   : > { %v1110_v1 = vpack.c.bf16 %v594_v63, %v591_v61  ;;  %v1150_v2 = vpack.c.bf16 %v658_v0, %v655_v62  ;;  %v1224_v3 = vpop.f32.mrb[4].mxu0  ;;  %v1272_v4 = vpop.f32.mrb[4].mxu1 }
 0x103   : > { %v1225_v5 = vpop.f32.mrb[5].mxu0  ;;  %v1273_v6 = vpop.f32.mrb[5].mxu1 }
 0x104   : > { %1111 = vst [vmem:[%s1581_s8] sm:$0xff] %v1110_v1   ;;  %1194 = vst [vmem:[%s1581_s8 + $0x40] sm:$0xff] %v1150_v2   ;;  %v1226_v7 = vadd.f32 %v1225_v5, %v1224_v3  ;;  %v1274_v8 = vadd.f32 %v1273_v6, %v1272_v4  ;;  %v1227_v9 = vpop.f32.mrb[6].mxu0  ;;  %v1275_v10 = vpop.f32.mrb[6].mxu1 }
 0x105   : > { %v1228_v11 = vpop.f32.mrb[7].mxu0  ;;  %v1276_v12 = vpop.f32.mrb[7].mxu1 }
 0x106   : > { %v1229_v13 = vadd.f32 %v1228_v11, %v1227_v9  ;;  %v1277_v14 = vadd.f32 %v1276_v12, %v1275_v10  ;;  %v599_v15 = vadd.f32 %v1226_v7, %v1571_v56  ;;  %v663_v16 = vadd.f32 %v1274_v8, %v1571_v56 }
 0x108   : > { %v602_v17 = vadd.f32 %v1229_v13, %v1571_v56  ;;  %v666_v18 = vadd.f32 %v1277_v14, %v1571_v56 }
 0x10a   : > { %v1115_v19 = vpack.c.bf16 %v602_v17, %v599_v15  ;;  %v1155_v20 = vpack.c.bf16 %v666_v18, %v663_v16  ;;  %v1230_v21 = vpop.f32.mrb[8].mxu0  ;;  %v1278_v22 = vpop.f32.mrb[8].mxu1 }
 0x10b   : > { %v1231_v23 = vpop.f32.mrb[9].mxu0  ;;  %v1279_v24 = vpop.f32.mrb[9].mxu1 }
 0x10c   : > { %1187 = vst [vmem:[%s1581_s8 + $0x8] sm:$0xff] %v1115_v19   ;;  %1195 = vst [vmem:[%s1581_s8 + $0x48] sm:$0xff] %v1155_v20   ;;  %v1232_v25 = vadd.f32 %v1231_v23, %v1230_v21  ;;  %v1280_v26 = vadd.f32 %v1279_v24, %v1278_v22  ;;  %v1233_v27 = vpop.f32.mrb[10].mxu0  ;;  %v1281_v28 = vpop.f32.mrb[10].mxu1 }
 0x10d   : > { %v1234_v29 = vpop.f32.mrb[11].mxu0  ;;  %v1282_v30 = vpop.f32.mrb[11].mxu1 }
 0x10e   : > { %v1235_v31 = vadd.f32 %v1234_v29, %v1233_v27  ;;  %v1283_v32 = vadd.f32 %v1282_v30, %v1281_v28  ;;  %v607_v33 = vadd.f32 %v1232_v25, %v1571_v56  ;;  %v671_v34 = vadd.f32 %v1280_v26, %v1571_v56 }
 0x110   : > { %v610_v35 = vadd.f32 %v1235_v31, %v1571_v56  ;;  %v674_v36 = vadd.f32 %v1283_v32, %v1571_v56 }
 0x112   : > { %v1120_v37 = vpack.c.bf16 %v610_v35, %v607_v33  ;;  %v1160_v38 = vpack.c.bf16 %v674_v36, %v671_v34  ;;  %v1236_v39 = vpop.f32.mrb[12].mxu0  ;;  %v1284_v40 = vpop.f32.mrb[12].mxu1 }
 0x113   : > { %v1237_v41 = vpop.f32.mrb[13].mxu0  ;;  %v1285_v42 = vpop.f32.mrb[13].mxu1 }
 0x114   : > { %1188 = vst [vmem:[%s1581_s8 + $0x10] sm:$0xff] %v1120_v37   ;;  %1196 = vst [vmem:[%s1581_s8 + $0x50] sm:$0xff] %v1160_v38   ;;  %v1238_v43 = vadd.f32 %v1237_v41, %v1236_v39  ;;  %v1286_v44 = vadd.f32 %v1285_v42, %v1284_v40  ;;  %v1239_v45 = vpop.f32.mrb[14].mxu0  ;;  %v1287_v46 = vpop.f32.mrb[14].mxu1 }
 0x115   : > { %v1240_v47 = vpop.f32.mrb[15].mxu0  ;;  %v1288_v48 = vpop.f32.mrb[15].mxu1 }
 0x116   : > { %v1241_v49 = vadd.f32 %v1240_v47, %v1239_v45  ;;  %v1289_v50 = vadd.f32 %v1288_v48, %v1287_v46  ;;  %v615_v51 = vadd.f32 %v1238_v43, %v1571_v56  ;;  %v679_v52 = vadd.f32 %v1286_v44, %v1571_v56 }
 0x118   : > { %v618_v53 = vadd.f32 %v1241_v49, %v1571_v56  ;;  %v682_v54 = vadd.f32 %v1289_v50, %v1571_v56 }
 0x11a   : > { %v1125_v55 = vpack.c.bf16 %v618_v53, %v615_v51  ;;  %v1165_v57 = vpack.c.bf16 %v682_v54, %v679_v52  ;;  %v1242_v58 = vpop.f32.mrb[16].mxu0  ;;  %v1290_v59 = vpop.f32.mrb[16].mxu1 }
 0x11b   : > { %v1243_v60 = vpop.f32.mrb[17].mxu0  ;;  %v1291_v61 = vpop.f32.mrb[17].mxu1 }
 0x11c   : > { %1189 = vst [vmem:[%s1581_s8 + $0x18] sm:$0xff] %v1125_v55   ;;  %1197 = vst [vmem:[%s1581_s8 + $0x58] sm:$0xff] %v1165_v57   ;;  %v1244_v62 = vadd.f32 %v1243_v60, %v1242_v58  ;;  %v1292_v63 = vadd.f32 %v1291_v61, %v1290_v59  ;;  %v1245_v0 = vpop.f32.mrb[18].mxu0  ;;  %v1293_v1 = vpop.f32.mrb[18].mxu1 }
 0x11d   : > { %v1246_v2 = vpop.f32.mrb[19].mxu0  ;;  %v1294_v3 = vpop.f32.mrb[19].mxu1 }
 0x11e   : > { %v1247_v4 = vadd.f32 %v1246_v2, %v1245_v0  ;;  %v1295_v5 = vadd.f32 %v1294_v3, %v1293_v1  ;;  %v623_v6 = vadd.f32 %v1244_v62, %v1571_v56  ;;  %v687_v7 = vadd.f32 %v1292_v63, %v1571_v56 }
 0x120   : > { %v626_v8 = vadd.f32 %v1247_v4, %v1571_v56  ;;  %v690_v9 = vadd.f32 %v1295_v5, %v1571_v56 }
 0x122   : > { %v1130_v10 = vpack.c.bf16 %v626_v8, %v623_v6  ;;  %v1170_v11 = vpack.c.bf16 %v690_v9, %v687_v7  ;;  %v1248_v12 = vpop.f32.mrb[20].mxu0  ;;  %v1296_v13 = vpop.f32.mrb[20].mxu1 }
 0x123   : > { %v1249_v14 = vpop.f32.mrb[21].mxu0  ;;  %v1297_v15 = vpop.f32.mrb[21].mxu1 }
 0x124   : > { %1190 = vst [vmem:[%s1581_s8 + $0x20] sm:$0xff] %v1130_v10   ;;  %1198 = vst [vmem:[%s1581_s8 + $0x60] sm:$0xff] %v1170_v11   ;;  %v1250_v16 = vadd.f32 %v1249_v14, %v1248_v12  ;;  %v1298_v17 = vadd.f32 %v1297_v15, %v1296_v13  ;;  %v1251_v18 = vpop.f32.mrb[22].mxu0  ;;  %v1299_v19 = vpop.f32.mrb[22].mxu1 }
 0x125   : > { %v1252_v20 = vpop.f32.mrb[23].mxu0  ;;  %v1300_v21 = vpop.f32.mrb[23].mxu1 }
 0x126   : > { %v1253_v22 = vadd.f32 %v1252_v20, %v1251_v18  ;;  %v1301_v23 = vadd.f32 %v1300_v21, %v1299_v19  ;;  %v631_v24 = vadd.f32 %v1250_v16, %v1571_v56  ;;  %v695_v25 = vadd.f32 %v1298_v17, %v1571_v56 }
 0x128   : > { %v634_v26 = vadd.f32 %v1253_v22, %v1571_v56  ;;  %v698_v27 = vadd.f32 %v1301_v23, %v1571_v56 }
 0x12a   : > { %v1135_v28 = vpack.c.bf16 %v634_v26, %v631_v24  ;;  %v1175_v29 = vpack.c.bf16 %v698_v27, %v695_v25  ;;  %v1254_v30 = vpop.f32.mrb[24].mxu0  ;;  %v1302_v31 = vpop.f32.mrb[24].mxu1 }
 0x12b   : > { %v1255_v32 = vpop.f32.mrb[25].mxu0  ;;  %v1303_v33 = vpop.f32.mrb[25].mxu1 }
 0x12c   : > { %1191 = vst [vmem:[%s1581_s8 + $0x28] sm:$0xff] %v1135_v28   ;;  %1199 = vst [vmem:[%s1581_s8 + $0x68] sm:$0xff] %v1175_v29   ;;  %v1256_v34 = vadd.f32 %v1255_v32, %v1254_v30  ;;  %v1304_v35 = vadd.f32 %v1303_v33, %v1302_v31  ;;  %v1257_v36 = vpop.f32.mrb[26].mxu0  ;;  %v1305_v37 = vpop.f32.mrb[26].mxu1 }
 0x12d   : > { %v1258_v38 = vpop.f32.mrb[27].mxu0  ;;  %v1306_v39 = vpop.f32.mrb[27].mxu1 }
 0x12e   : > { %v1259_v40 = vadd.f32 %v1258_v38, %v1257_v36  ;;  %v1307_v41 = vadd.f32 %v1306_v39, %v1305_v37  ;;  %v639_v42 = vadd.f32 %v1256_v34, %v1571_v56  ;;  %v703_v43 = vadd.f32 %v1304_v35, %v1571_v56 }
 0x130   : > { %v642_v44 = vadd.f32 %v1259_v40, %v1571_v56  ;;  %v706_v45 = vadd.f32 %v1307_v41, %v1571_v56 }
 0x132   : > { %v1140_v46 = vpack.c.bf16 %v642_v44, %v639_v42  ;;  %v1180_v47 = vpack.c.bf16 %v706_v45, %v703_v43  ;;  %v1260_v48 = vpop.f32.mrb[28].mxu0  ;;  %v1308_v49 = vpop.f32.mrb[28].mxu1 }
 0x133   : > { %v1261_v50 = vpop.f32.mrb[29].mxu0  ;;  %v1309_v51 = vpop.f32.mrb[29].mxu1 }
 0x134   : > { %1192 = vst [vmem:[%s1581_s8 + $0x30] sm:$0xff] %v1140_v46   ;;  %1200 = vst [vmem:[%s1581_s8 + $0x70] sm:$0xff] %v1180_v47   ;;  %v1262_v52 = vadd.f32 %v1261_v50, %v1260_v48  ;;  %v1310_v53 = vadd.f32 %v1309_v51, %v1308_v49  ;;  %v1263_v54 = vpop.f32.mrb[30].mxu0  ;;  %v1311_v55 = vpop.f32.mrb[30].mxu1 }
 0x135   : > { %v1264_v57 = vpop.f32.mrb[31].mxu0  ;;  %v1312_v58 = vpop.f32.mrb[31].mxu1 }
 0x136   : > { %v1265_v59 = vadd.f32 %v1264_v57, %v1263_v54  ;;  %v1313_v60 = vadd.f32 %v1312_v58, %v1311_v55  ;;  %v647_v61 = vadd.f32 %v1262_v52, %v1571_v56  ;;  %v711_v62 = vadd.f32 %v1310_v53, %v1571_v56 }
 0x138   : > { %v650_v63 = vadd.f32 %v1265_v59, %v1571_v56  ;;  %v714_v0 = vadd.f32 %v1313_v60, %v1571_v56 }
 0x13a   : > { %v1145_v1 = vpack.c.bf16 %v650_v63, %v647_v61  ;;  %v1185_v2 = vpack.c.bf16 %v714_v0, %v711_v62 }
 0x13c   : > { %1193 = vst [vmem:[%s1581_s8 + $0x38] sm:$0xff] %v1145_v1   ;;  %1201 = vst [vmem:[%s1581_s8 + $0x78] sm:$0xff] %v1185_v2  }
 0x13d PF: > { %s13_s14 = sadd.s32 1, %s1440_s14   ;;  %s1640_s12 = smov %s1436_s13 }
 0x13e   : > { %p10_p5 = scmp.ge.s32.totalorder %s13_s14, 4   ;;  %s1641_s13 = smov %s1643_s15 }
 0x140   :  { %12 = sbr.rel (!%p10_p5) target bundleno = 2 (0x2), region = 68 }

// kernel: _lambda_.18
= control target key start
LH: loop header
LB: loop body
LE: loop exit
PB: predicated region body
PF: predicated region fallthrough
CT: control target
= control target key end

     0   :  { %s669_s9 = smov 0   ;;  %s1086_s0 = inlined_call_operand.vmem [shape: bf16[2,18,9,128], index: 0, kind: input, shape index: {}]   ;;  %s1087_s1 = inlined_call_operand.vmem [shape: bf16[2,18,9,128], index: 1, kind: input, shape index: {}]   ;;  %s1088_s2 = inlined_call_operand.vmem [shape: bf16[2,8,8,128], index: 2, kind: output, shape index: {}]  }
   0x1 LB: > { %s598_s10 = sadd.s32 4294967295, %s652_s9   ;;  %p602_p0 = scmp.ge.s32.totalorder %s652_s9, 1  ;;  %s652_s9 = sphi %s669_s9, %s12_s9  }
   0x2   : > { %p122_p1 = scmp.lt.s32.totalorder %s652_s9, 3 }
   0x4   : > { %p123_p2 = pnand %p602_p0, %p122_p1 }
   0x6   : > { %126 = sbr.rel (%p123_p2) target bundleno = 89 (0x59), region = 28 }
   0xd   : > { %p149_p3 = scmp.lt.s32.totalorder %s598_s10, 1  ;;  %vm232_vm0 = vsmask.f32 3328  ;;  %vm233_vm1 = vsmask.f32 7440 }
   0xe   : > { %vm845_vm2 = vmor %vm232_vm0, %vm233_vm1 }
   0xf   : > { %s1172_s10 = smov (!%p149_p3, %s598_s10), 1 }
  0x10   : > { %s637_s11 = smul.u32 144, %s1172_s10  ;;  %s609_s18 = sshll.u32 %s1172_s10, 5 }
  0x11   : > { %s163_s21 = scalar_lea.vmem %s1088_s2, %s609_s18 }
  0x12   : > { %s683_s14 = scalar_lea.vmem %s1087_s1, %s637_s11  ;;  %s688_s17 = scalar_lea.vmem %s1086_s0, %s637_s11 }
  0x13   : > { %v691_v0 = vld [vmem:[%s683_s14] sm:$0xf]  ;;  %v694_v1 = vld [vmem:[%s683_s14 + $0x8] sm:$0xf]  ;;  %v700_v3 = vld [vmem:[%s683_s14 + $0x10] sm:$0xf] }
  0x14   : > { %v697_v2 = vld [vmem:[%s688_s17] sm:$0xf]  ;;  %v703_v4 = vld [vmem:[%s683_s14 + $0x18] sm:$0xf]  ;;  %v709_v6 = vld [vmem:[%s688_s17 + $0x8] sm:$0xf] }
  0x15   : > { %v706_v5 = vld [vmem:[%s683_s14 + $0x20] sm:$0xf]  ;;  %v712_v7 = vld [vmem:[%s688_s17 + $0x10] sm:$0xf]  ;;  %v715_v8 = vld [vmem:[%s688_s17 + $0x18] sm:$0xf] }
  0x16   : > { %v718_v9 = vld [vmem:[%s688_s17 + $0x20] sm:$0xf]  ;;  %v721_v10 = vld [vmem:[%s683_s14 + $0x28] sm:$0xf]  ;;  %v724_v11 = vld [vmem:[%s683_s14 + $0x30] sm:$0xf] }
  0x17   : > { %v727_v12 = vld [vmem:[%s683_s14 + $0x38] sm:$0xf]  ;;  %v730_v13 = vld [vmem:[%s688_s17 + $0x28] sm:$0xf]  ;;  %v733_v14 = vld [vmem:[%s688_s17 + $0x30] sm:$0xf] }
  0x18   : > { %v736_v15 = vld [vmem:[%s688_s17 + $0x38] sm:$0xf]  ;;  %v739_v16 = vld [vmem:[%s688_s17 + $0x40] sm:$0xf]  ;;  %v745_v18 = vld [vmem:[%s683_s14 + $0x48] sm:$0xf] }
  0x19   : > { %1107 = vst [vmem:[#allocation2_spill] sm:$0xff] %v739_v16  ;;  %v742_v17 = vld [vmem:[%s683_s14 + $0x40] sm:$0xf]  ;;  %1109 = vst [vmem:[#allocation4_spill] sm:$0xff] %v745_v18  ;;  %v748_v19 = vld [vmem:[%s683_s14 + $0x50] sm:$0xf] }
  0x1a   : > { %1108 = vst [vmem:[#allocation3_spill] sm:$0xff] %v742_v17  ;;  %1110 = vst [vmem:[#allocation5_spill] sm:$0xff] %v748_v19  ;;  %v751_v20 = vld [vmem:[%s688_s17 + $0x48] sm:$0xf]  ;;  %v754_v21 = vld [vmem:[%s688_s17 + $0x50] sm:$0xf] }
  0x1b   : > { %1111 = vst [vmem:[#allocation6_spill] sm:$0xff] %v751_v20  ;;  %1112 = vst [vmem:[#allocation7_spill] sm:$0xff] %v754_v21  ;;  %v757_v22 = vld [vmem:[%s688_s17 + $0x58] sm:$0xf]  ;;  %v760_v23 = vld [vmem:[%s688_s17 + $0x60] sm:$0xf] }
  0x1c   : > { %1113 = vst [vmem:[#allocation8_spill] sm:$0xff] %v757_v22  ;;  %1114 = vst [vmem:[#allocation9_spill] sm:$0xff] %v760_v23  ;;  %v763_v24 = vld [vmem:[%s683_s14 + $0x58] sm:$0xf]  ;;  %v766_v25 = vld [vmem:[%s683_s14 + $0x60] sm:$0xf] }
  0x1d   : > { %1115 = vst [vmem:[#allocation10_spill] sm:$0xff] %v763_v24  ;;  %1116 = vst [vmem:[#allocation11_spill] sm:$0xff] %v766_v25  ;;  %v769_v26 = vld [vmem:[%s683_s14 + $0x68] sm:$0xf]  ;;  %v774_v28 = vld [vmem:[%s683_s14 + $0x70] sm:$0xf] }
  0x1e   : > { %1117 = vst [vmem:[#allocation12_spill] sm:$0xff] %v769_v26  ;;  %1118 = vst [vmem:[#allocation13_spill] sm:$0xff] %v774_v28  ;;  %v777_v29 = vld [vmem:[%s683_s14 + $0x78] sm:$0xf]  ;;  %v780_v30 = vld [vmem:[%s683_s14 + $0x80] sm:$0xf] }
  0x1f   : > { %1119 = vst [vmem:[#allocation14_spill] sm:$0xff] %v777_v29  ;;  %1120 = vst [vmem:[#allocation15_spill] sm:$0xff] %v780_v30  ;;  %v791_v35 = vld [vmem:[%s688_s17 + $0x68] sm:$0xf]  ;;  %v794_v36 = vld [vmem:[%s688_s17 + $0x70] sm:$0xf] }
  0x20   : > { %1121 = vst [vmem:[#allocation16_spill] sm:$0xff] %v791_v35  ;;  %v198_v37 = vld [vmem:[%s688_s17 + $0x4] sm:$0x1]  ;;  %v806_v42 = vld [vmem:[%s688_s17 + $0x78] sm:$0xf]  ;;  %v236_v53 = vshrl.u32 %v697_v2, 16 }
  0x21   : > { %v809_v43 = vld [vmem:[%s688_s17 + $0x80] sm:$0xf]  ;;  %v199_v44 = vld [vmem:[%s688_s17 + $0xc] sm:$0x1]  ;;  %v239_v54 = vshll.u32 %v697_v2, 16  ;;  %v245_v55 = vshll.u32 %v198_v37, 16 }
  0x22   : > { %v250_v56 = vshrl.u32 %v709_v6, 16  ;;  %v200_v57 = vld [vmem:[%s688_s17 + $0x14] sm:$0x1]  ;;  %v253_v58 = vshll.u32 %v709_v6, 16  ;;  %v259_v59 = vshll.u32 %v199_v44, 16  ;;  %v264_v60 = vshrl.u32 %v712_v7, 16 }
  0x23   : > { %v267_v61 = vshll.u32 %v712_v7, 16  ;;  %v201_v62 = vld [vmem:[%s688_s17 + $0x1c] sm:$0x1]  ;;  %v238_v63 = vrot.slane %v236_v53, 4  ;;  %v241_v51 = vrot.slane %v239_v54, 5  ;;  %v836_v52 = vrot.slane %v245_v55, 5 }
  0x24   : > { %v252_v50 = vrot.slane %v250_v56, 4  ;;  %v255_v49 = vrot.slane %v253_v58, 5  ;;  %v838_v48 = vrot.slane %v259_v59, 5  ;;  %v266_v37 = vrot.slane %v264_v60, 4  ;;  %v202_v40 = vld [vmem:[%s688_s17 + $0x24] sm:$0x1] }
  0x25   : > { %v269_v47 = vrot.slane %v267_v61, 5  ;;  %v242_v46 = vor.u32 %v241_v51, %v238_v63  ;;  %v273_v45 = vshll.u32 %v200_v57, 16  ;;  %v278_v44 = vshrl.u32 %v715_v8, 16  ;;  %v203_v61 = vld [vmem:[%s688_s17 + $0x2c] sm:$0x1] }
  0x26   : > { %v281_v41 = vshll.u32 %v715_v8, 16  ;;  %v256_v54 = vor.u32 %v255_v49, %v252_v50  ;;  %v287_v56 = vshll.u32 %v201_v62, 16  ;;  %v292_v58 = vshrl.u32 %v718_v9, 16  ;;  %v204_v62 = vld [vmem:[%s688_s17 + $0x34] sm:$0x1] }
  0x27   : > { %v270_v55 = vor.u32 %v269_v47, %v266_v37  ;;  %v850_v59 = vrot.slane %v242_v46, 4  ;;  %v852_v51 = vrot.slane %v273_v45, 5  ;;  %v280_v57 = vrot.slane %v278_v44, 4 }
  0x28   : > { %v283_v60 = vrot.slane %v281_v41, 5  ;;  %v855_v63 = vrot.slane %v256_v54, 4  ;;  %v859_v38 = vrot.slane %v287_v56, 5  ;;  %v294_v49 = vrot.slane %v292_v58, 4 }
  0x29   : > { %v857_v39 = vrot.slane %v270_v55, 4  ;;  %v295_v45 = vshll.u32 %v718_v9, 16  ;;  %v301_v50 = vshll.u32 %v202_v40, 16  ;;  %v306_v44 = vshrl.u32 %v730_v13, 16 }
  0x2a   : > { %v284_v46 = vor.u32 %v283_v60, %v280_v57  ;;  %v309_v54 = vshll.u32 %v730_v13, 16  ;;  %v315_v58 = vshll.u32 %v203_v61, 16  ;;  %v205_v57 = vld [vmem:[%s688_s17 + $0x3c] sm:$0x1]  ;;  %v320_v33 = vshrl.u32 %v733_v14, 16 }
  0x2b   : > { %v297_v56 = vrot.slane %v295_v45, 5  ;;  %v879_v40 = vrot.slane %v301_v50, 5  ;;  %v308_v60 = vrot.slane %v306_v44, 4  ;;  %v323_v32 = vshll.u32 %v733_v14, 16 }
  0x2c   : > { %v877_v55 = vrot.slane %v284_v46, 4  ;;  %v311_v34 = vrot.slane %v309_v54, 5  ;;  %v888_v46 = vrot.slane %v315_v58, 5  ;;  %v329_v45 = vshll.u32 %v204_v62, 16  ;;  %v206_v54 = vld [vmem:[%s688_s17 + $0x44] sm:$0x1] }
  0x2d   : > { %v298_v41 = vor.u32 %v297_v56, %v294_v49  ;;  %v322_v31 = vrot.slane %v320_v33, 4  ;;  %v325_v61 = vrot.slane %v323_v32, 5  ;;  %v334_v44 = vshrl.u32 %v736_v15, 16 }
  0x2e   : > { %v312_v50 = vor.u32 %v311_v34, %v308_v60  ;;  %v894_v27 = vrot.slane %v329_v45, 5  ;;  %v337_v30 = vshll.u32 %v736_v15, 16  ;;  %v343_v29 = vshll.u32 %v205_v57, 16  ;;  %v207_v34 = vld [vmem:[%s688_s17 + $0x4c] sm:$0x1] }
  0x2f   : > { %v892_v47 = vrot.slane %v298_v41, 4  ;;  %v326_v49 = vor.u32 %v325_v61, %v322_v31  ;;  %v336_v56 = vrot.slane %v334_v44, 4  ;;  %v348_v62 = vshrl.u32 %v739_v16, 16 }
  0x30   : > { %v897_v37 = vrot.slane %v312_v50, 4  ;;  %v339_v33 = vrot.slane %v337_v30, 5  ;;  %v905_v41 = vrot.slane %v343_v29, 5  ;;  %v351_v58 = vshll.u32 %v739_v16, 16  ;;  %v208_v50 = vld [vmem:[%s688_s17 + $0x54] sm:$0x1] }
  0x31   : > { %v912_v57 = vrot.slane %v326_v49, 4  ;;  %v350_v60 = vrot.slane %v348_v62, 4  ;;  %v357_v45 = vshll.u32 %v206_v54, 16  ;;  %v362_v32 = vshrl.u32 %v751_v20, 16  ;;  %v209_v62 = vld [vmem:[%s688_s17 + $0x5c] sm:$0x1] }
  0x32   : > { %1124 = vst [vmem:[#allocation17_spill] sm:$0xff] %v905_v41  ;;  %v340_v61 = vor.u32 %v339_v33, %v336_v56  ;;  %v353_v44 = vrot.slane %v351_v58, 5  ;;  %v365_v30 = vshll.u32 %v751_v20, 16  ;;  %v371_v31 = vshll.u32 %v207_v34, 16 }
  0x33   : > { %v921_v28 = vrot.slane %v357_v45, 5  ;;  %v376_v49 = vshrl.u32 %v754_v21, 16  ;;  %v364_v33 = vrot.slane %v362_v32, 4  ;;  %v379_v24 = vshll.u32 %v754_v21, 16 }
  0x34   : > { %v925_v54 = vrot.slane %v340_v61, 4  ;;  %v354_v56 = vor.u32 %v353_v44, %v350_v60  ;;  %v367_v58 = vrot.slane %v365_v30, 5  ;;  %v927_v26 = vrot.slane %v371_v31, 5  ;;  %v210_v60 = vld [vmem:[%s688_s17 + $0x64] sm:$0x1] }
  0x35   : > { %1125 = vst [vmem:[#allocation18_spill] sm:$0xff] %v921_v28  ;;  %v378_v25 = vrot.slane %v376_v49, 4  ;;  %v385_v19 = vshll.u32 %v208_v50, 16  ;;  %v390_v61 = vshrl.u32 %v757_v22, 16  ;;  %v381_v32 = vrot.slane %v379_v24, 5 }
  0x36   : > { %v934_v45 = vrot.slane %v354_v56, 4  ;;  %v368_v29 = vor.u32 %v367_v58, %v364_v33  ;;  %v393_v31 = vshll.u32 %v757_v22, 16  ;;  %v399_v30 = vshll.u32 %v209_v62, 16  ;;  %v211_v58 = vld [vmem:[%s688_s17 + $0x6c] sm:$0x1] }
  0x37   : > { %v938_v44 = vrot.slane %v385_v19, 5  ;;  %v392_v56 = vrot.slane %v390_v61, 4  ;;  %v404_v33 = vshrl.u32 %v760_v23, 16  ;;  %v382_v34 = vor.u32 %v381_v32, %v378_v25  ;;  %v212_v61 = vld [vmem:[%s688_s17 + $0x74] sm:$0x1] }
  0x38   : > { %1126 = vst [vmem:[#allocation19_spill] sm:$0xff] %v934_v45  ;;  %v945_v49 = vrot.slane %v368_v29, 4  ;;  %v395_v21 = vrot.slane %v393_v31, 5  ;;  %v949_v19 = vrot.slane %v399_v30, 5  ;;  %v407_v24 = vshll.u32 %v760_v23, 16 }
  0x39   : > { %v406_v22 = vrot.slane %v404_v33, 4  ;;  %v413_v50 = vshll.u32 %v210_v60, 16  ;;  %v418_v29 = vshrl.u32 %v791_v35, 16  ;;  %v383_v20 = vrot.slane %v382_v34, 4  ;;  %v213_v45 = vld [vmem:[%s688_s17 + $0x7c] sm:$0x1] }
  0x3a   : > { %v374_v62 = vsel %vm845_vm2, %v945_v49, %v927_v26  ;;  %v396_v18 = vor.u32 %v395_v21, %v392_v56  ;;  %v409_v28 = vrot.slane %v407_v24, 5  ;;  %v421_v25 = vshll.u32 %v791_v35, 16  ;;  %v214_v35 = vld [vmem:[%s688_s17 + $0x84] sm:$0x1] }
  0x3b   : > { %v415_v32 = vrot.slane %v413_v50, 5  ;;  %v420_v31 = vrot.slane %v418_v29, 4  ;;  %v427_v30 = vshll.u32 %v211_v58, 16  ;;  %v432_v23 = vshrl.u32 %v794_v36, 16 }
  0x3c   : > { %v388_v26 = vsel %vm845_vm2, %v383_v20, %v938_v44  ;;  %v397_v60 = vrot.slane %v396_v18, 4  ;;  %v410_v49 = vor.u32 %v409_v28, %v406_v22  ;;  %v423_v33 = vrot.slane %v421_v25, 5 }
  0x3d   : > { %v429_v16 = vrot.slane %v427_v30, 5  ;;  %v434_v34 = vrot.slane %v432_v23, 4  ;;  %v435_v21 = vshll.u32 %v794_v36, 16  ;;  %v441_v56 = vshll.u32 %v212_v61, 16 }
  0x3e   : > { %v402_v50 = vsel %vm845_vm2, %v397_v60, %v949_v19  ;;  %v411_v58 = vrot.slane %v410_v49, 4  ;;  %v424_v24 = vor.u32 %v423_v33, %v420_v31  ;;  %v446_v29 = vshrl.u32 %v806_v42, 16 }
  0x3f   : > { %v437_v17 = vrot.slane %v435_v21, 5  ;;  %v443_v41 = vrot.slane %v441_v56, 5  ;;  %v449_v18 = vshll.u32 %v806_v42, 16  ;;  %v455_v20 = vshll.u32 %v213_v45, 16 }
  0x40   : > { %v416_v22 = vsel %vm845_vm2, %v411_v58, %v415_v32  ;;  %v425_v23 = vrot.slane %v424_v24, 4  ;;  %v448_v28 = vrot.slane %v446_v29, 4  ;;  %v460_v44 = vshrl.u32 %v809_v43, 16 }
  0x41   : > { %v438_v61 = vor.u32 %v437_v17, %v434_v34  ;;  %v451_v25 = vrot.slane %v449_v18, 5  ;;  %v457_v19 = vrot.slane %v455_v20, 5  ;;  %v463_v31 = vshll.u32 %v809_v43, 16 }
  0x42   : > { %v430_v30 = vsel %vm845_vm2, %v425_v23, %v429_v16  ;;  %v462_v60 = vrot.slane %v460_v44, 4  ;;  %v469_v49 = vshll.u32 %v214_v35, 16  ;;  %v1127_v45 = vmax.bf16 %v691_v0, %v697_v2  ;;  %v1153_v23 = vld [vmem:[#allocation5_spill] sm:$0xff] }
  0x43   : > { %v1128_v32 = vsel %vm845_vm2, %v850_v59, %v836_v52  ;;  %v439_v21 = vrot.slane %v438_v61, 4  ;;  %v452_v17 = vor.u32 %v451_v25, %v448_v28  ;;  %v465_v34 = vrot.slane %v463_v31, 5  ;;  %v1156_v61 = vld [vmem:[#allocation10_spill] sm:$0xff]  ;;  %v1157_v25 = vld [vmem:[#allocation8_spill] sm:$0xff] }
  0x44   : > { %v490_v33 = vmax.bf16 %v1128_v32, %v1127_v45  ;;  %v1129_v56 = vmax.bf16 %v694_v1, %v709_v6  ;;  %v1130_v16 = vsel %vm845_vm2, %v855_v63, %v838_v48  ;;  %v471_v58 = vrot.slane %v469_v49, 5  ;;  %v1159_v49 = vld [vmem:[#allocation11_spill] sm:$0xff]  ;;  %v1160_v45 = vld [vmem:[#allocation9_spill] sm:$0xff] }
  0x45   : > { %v1131_v0 = vmax.bf16 %v700_v3, %v712_v7  ;;  %v1132_v2 = vsel %vm845_vm2, %v857_v39, %v852_v51  ;;  %v1133_v59 = vmax.bf16 %v703_v4, %v715_v8  ;;  %v1134_v1 = vsel %vm845_vm2, %v877_v55, %v859_v38 }
  0x46   : > { %v491_v35 = vmax.bf16 %v1130_v16, %v1129_v56  ;;  %v1135_v48 = vmax.bf16 %v706_v5, %v718_v9  ;;  %v1136_v3 = vsel %vm845_vm2, %v892_v47, %v879_v40  ;;  %v444_v39 = vsel %vm845_vm2, %v439_v21, %v443_v41  ;;  %v1165_v16 = vld [vmem:[#allocation13_spill] sm:$0xff] }
  0x47   : > { %v492_v52 = vmax.bf16 %v1132_v2, %v1131_v0  ;;  %v493_v6 = vmax.bf16 %v1134_v1, %v1133_v59  ;;  %v453_v4 = vrot.slane %v452_v17, 4  ;;  %v466_v8 = vor.u32 %v465_v34, %v462_v60  ;;  %v1162_v17 = vld [vmem:[#allocation12_spill] sm:$0xff]  ;;  %v1167_v2 = vld [vmem:[#allocation14_spill] sm:$0xff] }
  0x48   : > { %v494_v7 = vmax.bf16 %v1136_v3, %v1135_v48  ;;  %v1137_v51 = vmax.bf16 %v721_v10, %v730_v13  ;;  %v1138_v5 = vsel %vm845_vm2, %v897_v37, %v888_v46  ;;  %v1139_v38 = vmax.bf16 %v724_v11, %v733_v14  ;;  %v1142_v10 = vld [vmem:[#allocation17_spill] sm:$0xff]  ;;  %v1144_v37 = vld [vmem:[#allocation3_spill] sm:$0xff]  ;;  %v1145_v46 = vld [vmem:[#allocation2_spill] sm:$0xff] }
  0x49   : > { %v1140_v63 = vsel %vm845_vm2, %v912_v57, %v894_v27  ;;  %v1141_v55 = vmax.bf16 %v727_v12, %v736_v15  ;;  %v1143_v13 = vsel %vm845_vm2, %v925_v54, %v1142_v10  ;;  %v1146_v41 = vmax.bf16 %v1144_v37, %v1145_v46  ;;  %v1147_v11 = vld [vmem:[#allocation19_spill] sm:$0xff]  ;;  %v1148_v14 = vld [vmem:[#allocation18_spill] sm:$0xff]  ;;  %v1150_v27 = vld [vmem:[#allocation4_spill] sm:$0xff] }
  0x4a   : > { %v495_v9 = vmax.bf16 %v1138_v5, %v1137_v51  ;;  %v496_v47 = vmax.bf16 %v1140_v63, %v1139_v38  ;;  %v1149_v24 = vsel %vm845_vm2, %v1147_v11, %v1148_v14  ;;  %v1151_v57 = vld [vmem:[#allocation6_spill] sm:$0xff]  ;;  %v458_v12 = vsel %vm845_vm2, %v453_v4, %v457_v19  ;;  %v1154_v54 = vld [vmem:[#allocation7_spill] sm:$0xff]  ;;  %v1163_v34 = vld [vmem:[#allocation16_spill] sm:$0xff] }
  0x4b   : > { %v497_v40 = vmax.bf16 %v1143_v13, %v1141_v55  ;;  %v498_v29 = vmax.bf16 %v1149_v24, %v1146_v41  ;;  %v1152_v18 = vmax.bf16 %v1150_v27, %v1151_v57  ;;  %v467_v15 = vrot.slane %v466_v8, 4 }
  0x4c   : > { %v1155_v28 = vmax.bf16 %v1153_v23, %v1154_v54  ;;  %v1158_v31 = vmax.bf16 %v1156_v61, %v1157_v25  ;;  %v1161_v32 = vmax.bf16 %v1159_v49, %v1160_v45  ;;  %v1164_v56 = vmax.bf16 %v1162_v17, %v1163_v34 }
  0x4d   : > { %v499_v20 = vmax.bf16 %v374_v62, %v1152_v18  ;;  %v1166_v19 = vmax.bf16 %v1165_v16, %v794_v36  ;;  %v1168_v59 = vmax.bf16 %v1167_v2, %v806_v42  ;;  %v507_v1 = vmax.bf16 %v491_v35, %v490_v33 }
  0x4e   : > { %v500_v44 = vmax.bf16 %v388_v26, %v1155_v28  ;;  %v501_v60 = vmax.bf16 %v402_v50, %v1158_v31  ;;  %v502_v21 = vmax.bf16 %v416_v22, %v1161_v32  ;;  %v503_v62 = vmax.bf16 %v430_v30, %v1164_v56  ;;  %v1169_v22 = vld [vmem:[#allocation15_spill] sm:$0xff] }
  0x4f   : > { %v504_v0 = vmax.bf16 %v444_v39, %v1166_v19  ;;  %v505_v26 = vmax.bf16 %v458_v12, %v1168_v59  ;;  %v472_v50 = vsel %vm845_vm2, %v467_v15, %v471_v58  ;;  %v508_v48 = vmax.bf16 %v493_v6, %v492_v52 }
  0x50   : > { %v509_v3 = vmax.bf16 %v495_v9, %v494_v7  ;;  %v1170_v4 = vmax.bf16 %v1169_v22, %v809_v43  ;;  %v510_v30 = vmax.bf16 %v497_v40, %v496_v47  ;;  %v511_v51 = vmax.bf16 %v499_v20, %v498_v29 }
  0x51   : > { %v512_v5 = vmax.bf16 %v501_v60, %v500_v44  ;;  %v513_v36 = vmax.bf16 %v503_v62, %v502_v21  ;;  %v514_v39 = vmax.bf16 %v505_v26, %v504_v0  ;;  %v515_v38 = vmax.bf16 %v507_v1, %v492_v52 }
  0x52   : > { %v506_v8 = vmax.bf16 %v472_v50, %v1170_v4  ;;  %v516_v63 = vmax.bf16 %v508_v48, %v494_v7  ;;  %v517_v42 = vmax.bf16 %v509_v3, %v496_v47  ;;  %v518_v53 = vmax.bf16 %v510_v30, %v498_v29 }
  0x53   : > { %v519_v33 = vmax.bf16 %v511_v51, %v500_v44  ;;  %v520_v35 = vmax.bf16 %v512_v5, %v502_v21  ;;  %v521_v58 = vmax.bf16 %v513_v36, %v504_v0 }
  0x54   : > { %v522_v6 = vmax.bf16 %v514_v39, %v506_v8  ;;  %v630_v9 = vcombine.low %v515_v38, %v516_v63  ;;  %v631_v43 = vcombine.low %v517_v42, %v518_v53 }
  0x55   : > { %v633_v55 = vcombine.low %v519_v33, %v520_v35 }
  0x56   : > { %614 = vst [vmem:[%s163_s21] sm:$0xff] %v630_v9   ;;  %v635_v10 = vcombine.low %v521_v58, %v522_v6  ;;  %632 = vst [vmem:[%s163_s21 + $0x8] sm:$0xff] %v631_v43  }
  0x57   : > { %634 = vst [vmem:[%s163_s21 + $0x10] sm:$0xff] %v633_v55  }
  0x58   : > { %636 = vst [vmem:[%s163_s21 + $0x18] sm:$0xff] %v635_v10  }
  0x59 PF: > { %s12_s9 = sadd.s32 1, %s652_s9  }
  0x5a   : > { %p9_p4 = scmp.ge.s32.totalorder %s12_s9, 4  }
  0x5c   :  { %11 = sbr.rel (!%p9_p4) target bundleno = 1 (0x1), region = 61 }

// kernel: _lambda_.21
= control target key start
LH: loop header
LB: loop body
LE: loop exit
PB: predicated region body
PF: predicated region fallthrough
CT: control target
= control target key end

     0   :  { %s733_s12 = smov 0   ;;  %s735_s13 = smov 0   ;;  %s806_s0 = inlined_call_operand.vmem [shape: bf16[128,128], index: 0, kind: input, shape index: {}]   ;;  %s807_s1 = inlined_call_operand.vmem [shape: bf16[128,128], index: 1, kind: input, shape index: {}]   ;;  %s808_s2 = inlined_call_operand.vmem [shape: f32[1,128], index: 2, kind: input, shape index: {}]   ;;  %s809_s3 = inlined_call_operand.vmem [shape: bf16[128,128], index: 3, kind: output, shape index: {}]  }
   0x1   :  { %s737_s14 = smov 0  }
   0x2 LB: > { %s25_s15 = sadd.s32 1, %s707_s13  ;;  %p542_p0 = scmp.ge.s32.totalorder %s711_s14, 1  ;;  %s711_s14 = sphi %s737_s14, %s13_s14   ;;  %s707_s13 = sphi %s735_s13, %s811_s13   ;;  %s703_s12 = sphi %s733_s12, %s810_s12  }
   0x3   : > { %p27_p1 = scmp.ge.s32.totalorder %s25_s15, 2  ;;  %p169_p2 = scmp.lt.s32.totalorder %s711_s14, 3 }
   0x5   : > { %s813_s15 = smov (%p27_p1, %s25_s15), 0  ;;  %p170_p3 = pnand %p542_p0, %p169_p2 }
   0x6   : > { %v677_v0 = vld [vmem:[%s807_s1] sm:$0xff] (!%p170_p3)   ;;  %s543_s18 = sshll.u32 (!%p170_p3), %s703_s12, 3  ;;  %v678_v1 = vld [vmem:[%s807_s1 + $0x8] sm:$0xff] (!%p170_p3)   ;;  %v679_v2 = vld [vmem:[%s807_s1 + $0x10] sm:$0xff] (!%p170_p3)  }
   0x7   : > { %173 = sbr.rel (%p170_p3) target bundleno = 259 (0x103), region = 32  ;;  %p204_p4 = scmp.lt.s32.totalorder (!%p170_p3), %s543_s18, 15  ;;  %613 = vmatprep.subr.bf16.mxu0 (!%p170_p3), %v677_v0  ;;  %637 = vmatprep.subr.bf16.mxu1 (!%p170_p3), %v677_v0  ;;  %v680_v3 = vld [vmem:[%s807_s1 + $0x18] sm:$0xff] (!%p170_p3)   ;;  %v681_v6 = vld [vmem:[%s807_s1 + $0x20] sm:$0xff] (!%p170_p3)   ;;  %v682_v7 = vld [vmem:[%s807_s1 + $0x28] sm:$0xff] (!%p170_p3)  }
   0x8   : > { %614 = vmatpush3.bf16.msra.mxu0 (!%p170_p3), %v677_v0  ;;  %645 = vmatpush3.bf16.msra.mxu1 (!%p170_p3), %v677_v0  ;;  %v683_v8 = vld [vmem:[%s807_s1 + $0x30] sm:$0xff] (!%p170_p3)   ;;  %v684_v9 = vld [vmem:[%s807_s1 + $0x38] sm:$0xff] (!%p170_p3)   ;;  %v547_v13 = vld [vmem:[%s808_s2] ss:$0 sm:$0xff] (!%p170_p3) }
   0x9   : > { %615 = vmatprep.subr.bf16.mxu0 (!%p170_p3), %v678_v1  ;;  %638 = vmatprep.subr.bf16.mxu1 (!%p170_p3), %v678_v1 }
   0xc   : > { %616 = vmatpush3.bf16.msra.mxu0 (!%p170_p3), %v678_v1  ;;  %646 = vmatpush3.bf16.msra.mxu1 (!%p170_p3), %v678_v1 }
   0xd   : > { %617 = vmatprep.subr.bf16.mxu0 (!%p170_p3), %v679_v2  ;;  %639 = vmatprep.subr.bf16.mxu1 (!%p170_p3), %v679_v2 }
   0xe   : > { %s815_s18 = smov (!%p204_p4, %s543_s18), 15 }
   0xf   : > { %s544_s23 = sshll.u32 %s815_s18, 2 }
  0x10   : > { %s768_s26 = scalar_lea.vmem %s806_s0, %s544_s23  ;;  %618 = vmatpush3.bf16.msra.mxu0 %v679_v2  ;;  %647 = vmatpush3.bf16.msra.mxu1 %v679_v2  ;;  %s223_s17 = scalar_lea.vmem %s809_s3, %s544_s23 }
  0x11   : > { %v685_v4 = vld [vmem:[%s768_s26] sm:$0xff]   ;;  %v686_v5 = vld [vmem:[%s768_s26 + $0x10] sm:$0xff]   ;;  %619 = vmatprep.subr.bf16.mxu0 %v680_v3  ;;  %640 = vmatprep.subr.bf16.mxu1 %v680_v3  ;;  %v687_v10 = vld [vmem:[%s768_s26 + $0x8] sm:$0xff]  }
  0x12   : > { %629 = vmatprep.mubr.bf16.mxu0 %v685_v4  ;;  %633 = vmatprep.mubr.bf16.mxu1 %v686_v5  ;;  %v688_v11 = vld [vmem:[%s768_s26 + $0x18] sm:$0xff]  }
  0x14   : > { %620 = vmatpush3.bf16.msra.mxu0 %v680_v3  ;;  %648 = vmatpush3.bf16.msra.mxu1 %v680_v3 }
  0x15   : > { %621 = vmatprep.subr.bf16.mxu0 %v681_v6  ;;  %641 = vmatprep.subr.bf16.mxu1 %v681_v6 }
  0x18   : > { %622 = vmatpush3.bf16.msra.mxu0 %v681_v6  ;;  %649 = vmatpush3.bf16.msra.mxu1 %v681_v6 }
  0x19   : > { %623 = vmatprep.subr.bf16.mxu0 %v682_v7  ;;  %642 = vmatprep.subr.bf16.mxu1 %v682_v7 }
  0x1c   : > { %624 = vmatpush3.bf16.msra.mxu0 %v682_v7  ;;  %650 = vmatpush3.bf16.msra.mxu1 %v682_v7 }
  0x1d   : > { %625 = vmatprep.subr.bf16.mxu0 %v683_v8  ;;  %643 = vmatprep.subr.bf16.mxu1 %v683_v8 }
  0x20   : > { %626 = vmatpush3.bf16.msra.mxu0 %v683_v8  ;;  %651 = vmatpush3.bf16.msra.mxu1 %v683_v8 }
  0x21   : > { %627 = vmatprep.subr.bf16.mxu0 %v684_v9  ;;  %644 = vmatprep.subr.bf16.mxu1 %v684_v9 }
  0x24   : > { %628 = vmatpush3.bf16.msra.mxu0 %v684_v9  ;;  %652 = vmatpush3.bf16.msra.mxu1 %v684_v9 }
  0x27   : > { %630 = vmatmul.mubr.bf16.vlgmr.msra.gmra.mrb[0].mxu0 %v687_v10  ;;  %634 = vmatmul.mubr.bf16.vlgmr.msra.gmra.mrb[0].mxu1 %v688_v11 }
  0xfa   : > { %v631_v12 = vpop.f32.mrb[0].mxu0  ;;  %v635_v14 = vpop.f32.mrb[0].mxu1 }
  0xfb   : > { %v363_v15 = vpop.f32.mrb[1].mxu0  ;;  %v379_v16 = vpop.f32.mrb[1].mxu1  ;;  %v372_v19 = vadd.f32 %v631_v12, %v547_v13  ;;  %v388_v20 = vadd.f32 %v635_v14, %v547_v13 }
  0xfc   : > { %v632_v17 = vpop.f32.mrb[2].mxu0  ;;  %v636_v18 = vpop.f32.mrb[2].mxu1  ;;  %v364_v25 = vadd.f32 %v547_v13, %v363_v15  ;;  %v380_v26 = vadd.f32 %v547_v13, %v379_v16 }
  0xfd   : > { %v375_v21 = vadd.f32 %v632_v17, %v547_v13  ;;  %v391_v22 = vadd.f32 %v636_v18, %v547_v13  ;;  %v366_v23 = vpop.f32.mrb[3].mxu0  ;;  %v382_v24 = vpop.f32.mrb[3].mxu1 }
  0xfe   : > { %v367_v27 = vadd.f32 %v547_v13, %v366_v23  ;;  %v383_v28 = vadd.f32 %v547_v13, %v382_v24 }
  0xff   : > { %v586_v29 = vpack.c.bf16 %v375_v21, %v372_v19  ;;  %v596_v30 = vpack.c.bf16 %v391_v22, %v388_v20 }
 0x100   : > { %v581_v31 = vpack.c.bf16 %v367_v27, %v364_v25  ;;  %v591_v32 = vpack.c.bf16 %v383_v28, %v380_v26 }
 0x101   : > { %598 = vst [vmem:[%s223_s17 + $0x8] sm:$0xff] %v586_v29   ;;  %600 = vst [vmem:[%s223_s17 + $0x18] sm:$0xff] %v596_v30  }
 0x102   : > { %582 = vst [vmem:[%s223_s17] sm:$0xff] %v581_v31   ;;  %599 = vst [vmem:[%s223_s17 + $0x10] sm:$0xff] %v591_v32  }
 0x103 PF: > { %s13_s14 = sadd.s32 1, %s711_s14   ;;  %s810_s12 = smov %s707_s13 }
 0x104   : > { %p10_p5 = scmp.ge.s32.totalorder %s13_s14, 4   ;;  %s811_s13 = smov %s813_s15 }
 0x106   :  { %12 = sbr.rel (!%p10_p5) target bundleno = 2 (0x2), region = 68 }

// kernel: _lambda_.22
= control target key start
LH: loop header
LB: loop body
LE: loop exit
PB: predicated region body
PF: predicated region fallthrough
CT: control target
= control target key end

     0   :  { %s882_s15 = smov 0   ;;  %s884_s16 = smov 0   ;;  %s958_s0 = inlined_call_operand.vmem [shape: bf16[128,128], index: 0, kind: input, shape index: {}]   ;;  %s959_s1 = inlined_call_operand.vmem [shape: bf16[128,128], index: 1, kind: input, shape index: {}]   ;;  %s960_s2 = inlined_call_operand.vmem [shape: f32[1,128], index: 2, kind: input, shape index: {}]   ;;  %s961_s3 = inlined_call_operand.vmem [shape: bf16[128,128], index: 3, kind: input, shape index: {}]   ;;  %s962_s4 = inlined_call_operand.vmem [shape: bf16[128,128], index: 4, kind: output, shape index: {}]  }
   0x1   :  { %s886_s17 = smov 0  }
   0x2 LB: > { %s26_s18 = sadd.s32 1, %s851_s16  ;;  %p665_p0 = scmp.ge.s32.totalorder %s855_s17, 1  ;;  %s855_s17 = sphi %s886_s17, %s14_s17   ;;  %s851_s16 = sphi %s884_s16, %s964_s16   ;;  %s847_s15 = sphi %s882_s15, %s963_s15  }
   0x3   : > { %p28_p1 = scmp.ge.s32.totalorder %s26_s18, 2  ;;  %p210_p2 = scmp.lt.s32.totalorder %s855_s17, 3 }
   0x5   : > { %s966_s18 = smov (%p28_p1, %s26_s18), 0  ;;  %p211_p3 = pnand %p665_p0, %p210_p2 }
   0x6   : > { %v821_v0 = vld [vmem:[%s959_s1] sm:$0xff] (!%p211_p3)   ;;  %s666_s21 = sshll.u32 (!%p211_p3), %s847_s15, 3  ;;  %v822_v1 = vld [vmem:[%s959_s1 + $0x8] sm:$0xff] (!%p211_p3)   ;;  %v823_v2 = vld [vmem:[%s959_s1 + $0x10] sm:$0xff] (!%p211_p3)  }
   0x7   : > { %214 = sbr.rel (%p211_p3) target bundleno = 266 (0x10a), region = 36  ;;  %p255_p4 = scmp.lt.s32.totalorder (!%p211_p3), %s666_s21, 15  ;;  %757 = vmatprep.subr.bf16.mxu0 (!%p211_p3), %v821_v0  ;;  %781 = vmatprep.subr.bf16.mxu1 (!%p211_p3), %v821_v0  ;;  %v824_v3 = vld [vmem:[%s959_s1 + $0x18] sm:$0xff] (!%p211_p3)   ;;  %v825_v6 = vld [vmem:[%s959_s1 + $0x20] sm:$0xff] (!%p211_p3)   ;;  %v826_v7 = vld [vmem:[%s959_s1 + $0x28] sm:$0xff] (!%p211_p3)  }
   0x8   : > { %758 = vmatpush3.bf16.msra.mxu0 (!%p211_p3), %v821_v0  ;;  %789 = vmatpush3.bf16.msra.mxu1 (!%p211_p3), %v821_v0  ;;  %v827_v8 = vld [vmem:[%s959_s1 + $0x30] sm:$0xff] (!%p211_p3)   ;;  %v828_v9 = vld [vmem:[%s959_s1 + $0x38] sm:$0xff] (!%p211_p3)   ;;  %v672_v16 = vld [vmem:[%s960_s2] ss:$0 sm:$0xff] (!%p211_p3) }
   0x9   : > { %759 = vmatprep.subr.bf16.mxu0 (!%p211_p3), %v822_v1  ;;  %782 = vmatprep.subr.bf16.mxu1 (!%p211_p3), %v822_v1 }
   0xc   : > { %760 = vmatpush3.bf16.msra.mxu0 (!%p211_p3), %v822_v1  ;;  %790 = vmatpush3.bf16.msra.mxu1 (!%p211_p3), %v822_v1 }
   0xd   : > { %761 = vmatprep.subr.bf16.mxu0 (!%p211_p3), %v823_v2  ;;  %783 = vmatprep.subr.bf16.mxu1 (!%p211_p3), %v823_v2 }
   0xe   : > { %s968_s21 = smov (!%p255_p4, %s666_s21), 15 }
   0xf   : > { %s909_s26 = sshll.u32 %s968_s21, 2 }
  0x10   : > { %s915_s29 = scalar_lea.vmem %s958_s0, %s909_s26  ;;  %762 = vmatpush3.bf16.msra.mxu0 %v823_v2  ;;  %791 = vmatpush3.bf16.msra.mxu1 %v823_v2  ;;  %s274_s19 = scalar_lea.vmem %s961_s3, %s909_s26 }
  0x11   : > { %v829_v4 = vld [vmem:[%s915_s29] sm:$0xff]   ;;  %v830_v5 = vld [vmem:[%s915_s29 + $0x10] sm:$0xff]   ;;  %763 = vmatprep.subr.bf16.mxu0 %v824_v3  ;;  %784 = vmatprep.subr.bf16.mxu1 %v824_v3  ;;  %v831_v10 = vld [vmem:[%s915_s29 + $0x8] sm:$0xff]   ;;  %s283_s24 = scalar_lea.vmem %s962_s4, %s909_s26 }
  0x12   : > { %773 = vmatprep.mubr.bf16.mxu0 %v829_v4  ;;  %777 = vmatprep.mubr.bf16.mxu1 %v830_v5  ;;  %v832_v11 = vld [vmem:[%s915_s29 + $0x18] sm:$0xff]   ;;  %v739_v12 = vld [vmem:[%s274_s19 + $0x8] sm:$0xff]   ;;  %v704_v14 = vld [vmem:[%s274_s19] sm:$0xff]  }
  0x13   : > { %v741_v13 = vld [vmem:[%s274_s19 + $0x18] sm:$0xff]   ;;  %v740_v15 = vld [vmem:[%s274_s19 + $0x10] sm:$0xff]   ;;  %v709_v17 = vunpack.c.l.bf16 %v739_v12  ;;  %v705_v21 = vunpack.c.l.bf16 %v704_v14  ;;  %v710_v27 = vunpack.c.h.bf16 %v739_v12  ;;  %v706_v33 = vunpack.c.h.bf16 %v704_v14 }
  0x14   : > { %764 = vmatpush3.bf16.msra.mxu0 %v824_v3  ;;  %792 = vmatpush3.bf16.msra.mxu1 %v824_v3  ;;  %v717_v18 = vunpack.c.l.bf16 %v741_v13  ;;  %v713_v22 = vunpack.c.l.bf16 %v740_v15  ;;  %v718_v28 = vunpack.c.h.bf16 %v741_v13  ;;  %v714_v34 = vunpack.c.h.bf16 %v740_v15 }
  0x15   : > { %765 = vmatprep.subr.bf16.mxu0 %v825_v6  ;;  %785 = vmatprep.subr.bf16.mxu1 %v825_v6 }
  0x18   : > { %766 = vmatpush3.bf16.msra.mxu0 %v825_v6  ;;  %793 = vmatpush3.bf16.msra.mxu1 %v825_v6 }
  0x19   : > { %767 = vmatprep.subr.bf16.mxu0 %v826_v7  ;;  %786 = vmatprep.subr.bf16.mxu1 %v826_v7 }
  0x1c   : > { %768 = vmatpush3.bf16.msra.mxu0 %v826_v7  ;;  %794 = vmatpush3.bf16.msra.mxu1 %v826_v7 }
  0x1d   : > { %769 = vmatprep.subr.bf16.mxu0 %v827_v8  ;;  %787 = vmatprep.subr.bf16.mxu1 %v827_v8 }
  0x20   : > { %770 = vmatpush3.bf16.msra.mxu0 %v827_v8  ;;  %795 = vmatpush3.bf16.msra.mxu1 %v827_v8 }
  0x21   : > { %771 = vmatprep.subr.bf16.mxu0 %v828_v9  ;;  %788 = vmatprep.subr.bf16.mxu1 %v828_v9 }
  0x24   : > { %772 = vmatpush3.bf16.msra.mxu0 %v828_v9  ;;  %796 = vmatpush3.bf16.msra.mxu1 %v828_v9 }
  0x27   : > { %774 = vmatmul.mubr.bf16.vlgmr.msra.gmra.mrb[0].mxu0 %v831_v10  ;;  %778 = vmatmul.mubr.bf16.vlgmr.msra.gmra.mrb[0].mxu1 %v832_v11 }
  0xfa   : > { %v775_v19 = vpop.f32.mrb[0].mxu0  ;;  %v779_v20 = vpop.f32.mrb[0].mxu1 }
  0xfb   : > { %v432_v23 = vadd.f32 %v775_v19, %v672_v16  ;;  %v448_v24 = vadd.f32 %v779_v20, %v672_v16  ;;  %v423_v25 = vpop.f32.mrb[1].mxu0  ;;  %v439_v26 = vpop.f32.mrb[1].mxu1 }
  0xfc   : > { %v424_v29 = vadd.f32 %v672_v16, %v423_v25  ;;  %v440_v30 = vadd.f32 %v672_v16, %v439_v26  ;;  %v776_v31 = vpop.f32.mrb[2].mxu0  ;;  %v780_v32 = vpop.f32.mrb[2].mxu1 }
  0xfd   : > { %v472_v35 = vadd.f32 %v709_v17, %v432_v23  ;;  %v476_v36 = vadd.f32 %v717_v18, %v448_v24  ;;  %v435_v37 = vadd.f32 %v776_v31, %v672_v16  ;;  %v451_v38 = vadd.f32 %v780_v32, %v672_v16  ;;  %v426_v39 = vpop.f32.mrb[3].mxu0  ;;  %v442_v40 = vpop.f32.mrb[3].mxu1 }
  0xfe   : > { %v470_v41 = vadd.f32 %v705_v21, %v424_v29  ;;  %v474_v42 = vadd.f32 %v713_v22, %v440_v30  ;;  %v427_v43 = vadd.f32 %v672_v16, %v426_v39  ;;  %v443_v44 = vadd.f32 %v672_v16, %v442_v40 }
  0xff   : > { %vm480_vm0 = vcmp.ge.f32.partialorder %v472_v35, 0.0  ;;  %v488_v45 = vmul.f32 0.25, %v472_v35  ;;  %vm484_vm1 = vcmp.ge.f32.partialorder %v476_v36, 0.0  ;;  %v492_v46 = vmul.f32 0.25, %v476_v36 }
 0x100   : > { %vm478_vm2 = vcmp.ge.f32.partialorder %v470_v41, 0.0  ;;  %v486_v47 = vmul.f32 0.25, %v470_v41  ;;  %vm482_vm3 = vcmp.ge.f32.partialorder %v474_v42, 0.0  ;;  %v490_v48 = vmul.f32 0.25, %v474_v42 }
 0x101   : > { %v473_v49 = vadd.f32 %v710_v27, %v435_v37  ;;  %v477_v50 = vadd.f32 %v718_v28, %v451_v38  ;;  %v496_v51 = vsel %vm480_vm0, %v472_v35, %v488_v45  ;;  %v500_v52 = vsel %vm484_vm1, %v476_v36, %v492_v46 }
 0x102   : > { %v471_v53 = vadd.f32 %v706_v33, %v427_v43  ;;  %v475_v54 = vadd.f32 %v714_v34, %v443_v44  ;;  %v494_v59 = vsel %vm478_vm2, %v470_v41, %v486_v47  ;;  %v498_v60 = vsel %vm482_vm3, %v474_v42, %v490_v48 }
 0x103   : > { %vm481_vm4 = vcmp.ge.f32.partialorder %v473_v49, 0.0  ;;  %v489_v55 = vmul.f32 0.25, %v473_v49  ;;  %vm485_vm5 = vcmp.ge.f32.partialorder %v477_v50, 0.0  ;;  %v493_v56 = vmul.f32 0.25, %v477_v50 }
 0x104   : > { %vm479_vm6 = vcmp.ge.f32.partialorder %v471_v53, 0.0  ;;  %v487_v57 = vmul.f32 0.25, %v471_v53  ;;  %vm483_vm7 = vcmp.ge.f32.partialorder %v475_v54, 0.0  ;;  %v491_v58 = vmul.f32 0.25, %v475_v54 }
 0x105   : > { %v497_v61 = vsel %vm481_vm4, %v473_v49, %v489_v55  ;;  %v501_v62 = vsel %vm485_vm5, %v477_v50, %v493_v56 }
 0x106   : > { %v727_v63 = vpack.c.bf16 %v497_v61, %v496_v51  ;;  %v737_v0 = vpack.c.bf16 %v501_v62, %v500_v52  ;;  %v495_v1 = vsel %vm479_vm6, %v471_v53, %v487_v57  ;;  %v499_v2 = vsel %vm483_vm7, %v475_v54, %v491_v58 }
 0x107   : > { %v722_v3 = vpack.c.bf16 %v495_v1, %v494_v59  ;;  %v732_v4 = vpack.c.bf16 %v499_v2, %v498_v60 }
 0x108   : > { %742 = vst [vmem:[%s283_s24 + $0x8] sm:$0xff] %v727_v63   ;;  %744 = vst [vmem:[%s283_s24 + $0x18] sm:$0xff] %v737_v0  }
 0x109   : > { %723 = vst [vmem:[%s283_s24] sm:$0xff] %v722_v3   ;;  %743 = vst [vmem:[%s283_s24 + $0x10] sm:$0xff] %v732_v4  }
 0x10a PF: > { %s14_s17 = sadd.s32 1, %s855_s17   ;;  %s963_s15 = smov %s851_s16 }
 0x10b   : > { %p11_p5 = scmp.ge.s32.totalorder %s14_s17, 4   ;;  %s964_s16 = smov %s966_s18 }
 0x10d   :  { %13 = sbr.rel (!%p11_p5) target bundleno = 2 (0x2), region = 75 }

// kernel: _lambda_.20
= control target key start
LH: loop header
LB: loop body
LE: loop exit
PB: predicated region body
PF: predicated region fallthrough
CT: control target
= control target key end

     0   :  { %s3039_s12 = smov 0   ;;  %s3041_s13 = smov 0   ;;  %s3662_s0 = inlined_call_operand.vmem [shape: bf16[2,110,128], index: 0, kind: input, shape index: {}]   ;;  %s3663_s1 = inlined_call_operand.vmem [shape: bf16[9,128,128], index: 1, kind: input, shape index: {}]   ;;  %s3664_s2 = inlined_call_operand.vmem [shape: f32[1,128], index: 2, kind: input, shape index: {}]   ;;  %s3665_s3 = inlined_call_operand.vmem [shape: bf16[2,80,128], index: 3, kind: output, shape index: {}]  }
   0x1   :  { %s3043_s14 = smov 0  }
   0x2 LB: > { %s25_s15 = sadd.s32 1, %s3011_s13  ;;  %p2135_p0 = scmp.ge.s32.totalorder %s3015_s14, 1  ;;  %s3015_s14 = sphi %s3043_s14, %s13_s14   ;;  %s3011_s13 = sphi %s3041_s13, %s3667_s13   ;;  %s3007_s12 = sphi %s3039_s12, %s3666_s12  }
   0x3   : > { %p27_p1 = scmp.ge.s32.totalorder %s25_s15, 2  ;;  %p168_p2 = scmp.lt.s32.totalorder %s3015_s14, 3 }
   0x5   : > { %s3669_s15 = smov (%p27_p1, %s25_s15), 0  ;;  %p169_p3 = pnand %p2135_p0, %p168_p2 }
   0x6   : > { %v2898_v0 = vld [vmem:[%s3663_s1 + $0x40] sm:$0xff] (!%p169_p3)   ;;  %v3017_v1 = vmov (!%p169_p3), 0.0   ;;  %v2900_v3 = vld [vmem:[%s3663_s1 + $0x48] sm:$0xff] (!%p169_p3)   ;;  %vm3018_vm0 = vmmov (!%p169_p3), 0   ;;  %p202_p4 = scmp.lt.s32.totalorder (!%p169_p3), %s3007_s12, 1  ;;  %v2902_v5 = vld [vmem:[%s3663_s1 + $0x50] sm:$0xff] (!%p169_p3)  }
   0x7   : > { %172 = sbr.rel (%p169_p3) target bundleno = 439 (0x1b7), region = 32  ;;  %2530 = vmatprep.subr.bf16.mxu0 (!%p169_p3), %v3017_v1  ;;  %2566 = vmatprep.subr.bf16.mxu1 (!%p169_p3), %v3017_v1  ;;  %v2899_v2 = vld [vmem:[%s3663_s1] sm:$0xff] (!%p169_p3)   ;;  %v2901_v4 = vld [vmem:[%s3663_s1 + $0x8] sm:$0xff] (!%p169_p3)   ;;  %v2903_v6 = vld [vmem:[%s3663_s1 + $0x10] sm:$0xff] (!%p169_p3)   ;;  %vm295_vm1 = vsmask.f32 (!%p169_p3), 7424 }
   0x8   : > { %2531 = vmatpush3.bf16.msra.mxu0 (!%p169_p3), %v2898_v0  ;;  %2546 = vmatprep.mubr.msk.bf16.mxu0 (!%p169_p3), %vm3018_vm0, %v3017_v1  ;;  %v2904_v7 = vld [vmem:[%s3663_s1 + $0x58] sm:$0xff] (!%p169_p3)   ;;  %v2906_v9 = vld [vmem:[%s3663_s1 + $0x60] sm:$0xff] (!%p169_p3)   ;;  %v2908_v13 = vld [vmem:[%s3663_s1 + $0x68] sm:$0xff] (!%p169_p3)   ;;  %vm613_vm2 = vcmask (!%p169_p3), 1046528   ;;  %vm985_vm3 = vsmask.f32 (!%p169_p3), 6400 }
   0x9   : > { %2567 = vmatpush3.bf16.msra.mxu1 (!%p169_p3), %v2899_v2  ;;  %2532 = vmatprep.subr.bf16.mxu0 (!%p169_p3), %v3017_v1  ;;  %v2905_v8 = vld [vmem:[%s3663_s1 + $0x18] sm:$0xff] (!%p169_p3)   ;;  %v2907_v10 = vld [vmem:[%s3663_s1 + $0x20] sm:$0xff] (!%p169_p3)   ;;  %v2909_v16 = vld [vmem:[%s3663_s1 + $0x28] sm:$0xff] (!%p169_p3)   ;;  %vm1196_vm4 = vcmask (!%p169_p3), 1045504   ;;  %vm1568_vm5 = vsmask.f32 (!%p169_p3), 5376 }
   0xa   : > { %2568 = vmatprep.subr.bf16.mxu1 (!%p169_p3), %v3017_v1  ;;  %2582 = vmatprep.mubr.msk.bf16.mxu1 (!%p169_p3), %vm3018_vm0, %v3017_v1  ;;  %v2910_v18 = vld [vmem:[%s3663_s1 + $0x70] sm:$0xff] (!%p169_p3)   ;;  %v2912_v23 = vld [vmem:[%s3663_s1 + $0x78] sm:$0xff] (!%p169_p3)   ;;  %v2916_v28 = vld [vmem:[%s3663_s1 + $0x80] sm:$0xff] (!%p169_p3)   ;;  %vm1779_vm6 = vcmask (!%p169_p3), 1044480  }
   0xb   : > { %v2911_v22 = vld [vmem:[%s3663_s1 + $0x30] sm:$0xff] (!%p169_p3)   ;;  %v2913_v24 = vld [vmem:[%s3663_s1 + $0x38] sm:$0xff] (!%p169_p3)   ;;  %v2919_v32 = vld [vmem:[%s3663_s1 + $0xc0] sm:$0xff] (!%p169_p3)  }
   0xc   : > { %2533 = vmatpush3.bf16.msra.mxu0 (!%p169_p3), %v2900_v3  ;;  %v2917_v34 = vld [vmem:[%s3663_s1 + $0x88] sm:$0xff] (!%p169_p3)   ;;  %v2920_v40 = vld [vmem:[%s3663_s1 + $0x90] sm:$0xff] (!%p169_p3)   ;;  %v2923_v44 = vld [vmem:[%s3663_s1 + $0x98] sm:$0xff] (!%p169_p3)  }
   0xd   : > { %2569 = vmatpush3.bf16.msra.mxu1 (!%p169_p3), %v2901_v4  ;;  %2534 = vmatprep.subr.bf16.mxu0 (!%p169_p3), %v3017_v1  ;;  %v2921_v37 = vld [vmem:[%s3663_s1 + $0xc8] sm:$0xff] (!%p169_p3)   ;;  %v2924_v42 = vld [vmem:[%s3663_s1 + $0xd0] sm:$0xff] (!%p169_p3)   ;;  %v2926_v47 = vld [vmem:[%s3663_s1 + $0xd8] sm:$0xff] (!%p169_p3)  }
   0xe   : > { %s3671_s12 = smov (!%p202_p4, %s3007_s12), 1  ;;  %2570 = vmatprep.subr.bf16.mxu1 %v3017_v1  ;;  %v2925_v48 = vld [vmem:[%s3663_s1 + $0xa0] sm:$0xff]   ;;  %v2929_v56 = vld [vmem:[%s3663_s1 + $0xa8] sm:$0xff]   ;;  %v2931_v61 = vld [vmem:[%s3663_s1 + $0xb0] sm:$0xff]  }
   0xf   : > { %s2870_s28 = smul.u32 56, %s3671_s12  ;;  %v2928_v52 = vld [vmem:[%s3663_s1 + $0xe0] sm:$0xff]   ;;  %v2930_v57 = vld [vmem:[%s3663_s1 + $0xe8] sm:$0xff]   ;;  %v2933_v62 = vld [vmem:[%s3663_s1 + $0xf0] sm:$0xff]  }
  0x10   : > { %2535 = vmatpush3.bf16.msra.mxu0 %v2902_v5  ;;  %v2934_v63 = vld [vmem:[%s3663_s1 + $0xb8] sm:$0xff]   ;;  %s2871_s5 = smul.u32 40, %s3671_s12 }
  0x11   : > { %2571 = vmatpush3.bf16.msra.mxu1 %v2903_v6  ;;  %2536 = vmatprep.subr.bf16.mxu0 %v3017_v1  ;;  %s3099_s8 = scalar_lea.vmem %s3662_s0, %s2870_s28  ;;  %v2935_v3 = vld [vmem:[%s3663_s1 + $0xf8] sm:$0xff]  }
  0x12   : > { %2572 = vmatprep.subr.bf16.mxu1 %v3017_v1  ;;  %v223_v11 = vld [vmem:[%s3099_s8] sm:$0xf]  ;;  %v3111_v12 = vld [vmem:[%s3099_s8 + $0x4] sm:$0xf]  ;;  %v3118_v15 = vld [vmem:[%s3099_s8 + $0x8] sm:$0xff]   ;;  %s3636_s9 = scalar_lea.vmem %s3665_s3, %s2871_s5 }
  0x13   : > { %v2154_v14 = vcombine.low %v223_v11, %v3111_v12  ;;  %v304_v21 = vshll.u32 %v3118_v15, 16  ;;  %v3141_v27 = vld [vmem:[%s3099_s8 + $0x10] sm:$0xff]   ;;  %v308_v30 = vshrl.u32 %v3118_v15, 16  ;;  %v3157_v33 = vld [vmem:[%s3099_s8 + $0x18] sm:$0xff]   ;;  %v3186_v45 = vld [vmem:[%s3099_s8 + $0x20] sm:$0xff]  }
  0x14   : > { %2537 = vmatpush3.bf16.msra.mxu0 %v2904_v7  ;;  %v312_v31 = vshll.u32 %v3141_v27, 16  ;;  %v320_v38 = vshll.u32 %v3157_v33, 16  ;;  %v316_v41 = vshrl.u32 %v3141_v27, 16  ;;  %v324_v50 = vshrl.u32 %v3157_v33, 16  ;;  %v592_v4 = vld [vmem:[%s3099_s8] sm:$0xe] }
  0x15   : > { %2573 = vmatpush3.bf16.msra.mxu1 %v2905_v8  ;;  %2538 = vmatprep.subr.bf16.mxu0 %v3017_v1  ;;  %v299_v17 = vshll.u32 %v2154_v14, 16  ;;  %v297_v19 = vshrl.u32 %v2154_v14, 16  ;;  %v306_v26 = vrot.slane %v304_v21, 1  ;;  %v328_v51 = vshll.u32 %v3186_v45, 16  ;;  %v761_v5 = vld [vmem:[%s3099_s8 + $0x4] sm:$0xe] }
  0x16   : > { %2574 = vmatprep.subr.bf16.mxu1 %v3017_v1  ;;  %v314_v36 = vrot.slane %v312_v31, 1  ;;  %v322_v43 = vrot.slane %v320_v38, 1  ;;  %v3209_v53 = vld [vmem:[%s3099_s8 + $0x28] ss:$0 sps:$4 sm:$0x11]   ;;  %v332_v59 = vshrl.u32 %v3186_v45, 16  ;;  %v2192_v8 = vcombine.low %v592_v4, %v3111_v12 }
  0x17   : > { %v301_v20 = vrot.slane %v299_v17, 1  ;;  %v310_v35 = vor.u32 %v308_v30, %v306_v26  ;;  %v330_v55 = vrot.slane %v328_v51, 1  ;;  %v336_v60 = vshll.u32 %v3209_v53, 16  ;;  %v3251_v6 = vld [vmem:[%s3099_s8 + $0x8] sm:$0xf]  ;;  %v2939_v17 = vld [vmem:[%s3663_s1 + $0x100] sm:$0xff]  }
  0x18   : > { %2539 = vmatpush3.bf16.msra.mxu0 %v2906_v9  ;;  %v318_v46 = vor.u32 %v316_v41, %v314_v36  ;;  %v326_v54 = vor.u32 %v324_v50, %v322_v43  ;;  %v3257_v9 = vcombine.low %v761_v5, %v3251_v6  ;;  %v614_v11 = vrot.slane %v2192_v8, 1  ;;  %v2946_v30 = vld [vmem:[%s3663_s1 + $0x118] sm:$0xff]   ;;  %v2953_v41 = vld [vmem:[%s3663_s1 + $0x168] sm:$0xff]  }
  0x19   : > { %2575 = vmatpush3.bf16.msra.mxu1 %v2907_v10  ;;  %2540 = vmatprep.subr.bf16.mxu0 %v3017_v1  ;;  %v302_v25 = vor.u32 %v301_v20, %v297_v19  ;;  %v315_v39 = vsel %vm295_vm1, %v310_v35, %v314_v36  ;;  %v334_v0 = vor.u32 %v332_v59, %v330_v55  ;;  %v338_v2 = vrot.slane %v336_v60, 1  ;;  %v3260_v10 = vld [vmem:[%s3099_s8 + $0xc] sm:$0xff]   ;;  %v3278_v19 = vld [vmem:[%s3099_s8 + $0x14] sm:$0xff]   ;;  %v3331_v36 = vld [vmem:[%s3099_s8 + $0x24] sm:$0xff]  }
  0x1a   : > { %2576 = vmatprep.subr.bf16.mxu1 %v3017_v1  ;;  %v323_v49 = vsel %vm295_vm1, %v318_v46, %v322_v43  ;;  %v331_v58 = vsel %vm295_vm1, %v326_v54, %v330_v55  ;;  %v615_v12 = vrot.slane %v3118_v15, 1  ;;  %v2940_v20 = vld [vmem:[%s3663_s1 + $0x108] sm:$0xff]   ;;  %v617_v21 = vrot.slane %v3141_v27, 1  ;;  %v2956_v46 = vld [vmem:[%s3663_s1 + $0x170] sm:$0xff]   ;;  %v2958_v54 = vld [vmem:[%s3663_s1 + $0x178] sm:$0xff]  }
  0x1b   : > { %v307_v29 = vsel %vm295_vm1, %v302_v25, %v306_v26  ;;  %v339_v7 = vsel %vm295_vm1, %v334_v0, %v338_v2  ;;  %v2943_v25 = vld [vmem:[%s3663_s1 + $0x110] sm:$0xff]   ;;  %v621_v38 = vrot.slane %v3186_v45, 1  ;;  %v2955_v43 = vld [vmem:[%s3099_s8 + $0x2c] ss:$0 sps:$4 sm:$0x11]   ;;  %v995_v50 = vshrl.u32 %v3260_v10, 16 }
  0x1c   : > { %2541 = vmatpush3.bf16.msra.mxu0 %v2908_v13  ;;  %v817_v13 = vrot.slane %v3257_v9, 1  ;;  %v998_v51 = vshll.u32 %v3260_v10, 16  ;;  %v1175_v55 = vld [vmem:[%s3099_s8 + $0x4] sm:$0xc]  ;;  %v1004_v2 = vshrl.u32 %v3278_v19, 16  ;;  %v1198_v5 = vrot.slane %v3260_v10, 2 }
  0x1d   : > { %2577 = vmatpush3.bf16.msra.mxu1 %v2909_v16  ;;  %2542 = vmatprep.subr.bf16.mxu0 %v3017_v1  ;;  %v616_v16 = vsel %vm613_vm2, %v614_v11, %v615_v12  ;;  %v997_v59 = vrot.slane %v995_v50, 1 }
  0x1e   : > { %2578 = vmatprep.subr.bf16.mxu1 %v3017_v1  ;;  %v1000_v60 = vrot.slane %v998_v51, 2  ;;  %v1006_v8 = vrot.slane %v1004_v2, 1  ;;  %v3476_v51 = vld [vmem:[%s3099_s8 + $0x10] sm:$0xff]  }
  0x20   : > { %2543 = vmatpush3.bf16.msra.mxu0 %v2910_v18  ;;  %v1001_v0 = vor.u32 %v1000_v60, %v997_v59  ;;  %v1581_v59 = vshll.u32 %v3476_v51, 16  ;;  %v2976_v60 = vld [vmem:[%s3663_s1 + $0x1f8] sm:$0xff]  }
  0x21   : > { %2579 = vmatpush3.bf16.msra.mxu1 %v2911_v22  ;;  %2544 = vmatprep.subr.bf16.mxu0 %v3017_v1  ;;  %v820_v22 = vrot.slane %v3278_v19, 1 }
  0x22   : > { %2580 = vmatprep.subr.bf16.mxu1 %v3017_v1 }
  0x24   : > { %2545 = vmatpush3.bf16.msra.mxu0 %v2912_v23  ;;  %v2944_v23 = vld [vmem:[%s3663_s1 + $0x148] sm:$0xff]  }
  0x25   : > { %2581 = vmatpush3.bf16.msra.mxu1 %v2913_v24  ;;  %2602 = vmatprep.subr.bf16.mxu0 %v3017_v1  ;;  %v618_v24 = vsel %vm613_vm2, %v615_v12, %v617_v21  ;;  %v2962_v12 = vld [vmem:[%s3663_s1 + $0x1c0] sm:$0xff]  }
  0x26   : > { %2638 = vmatprep.subr.bf16.mxu1 %v3017_v1 }
  0x27   : > { %2547 = vmatmul.mubr.bf16.vlgmr.msra.gmra.mrb[0].mxu0 %v307_v29  ;;  %v619_v29 = vrot.slane %v3157_v33, 1 }
  0x28   : > { %2583 = vmatmul.mubr.bf16.vlgmr.msra.gmra.mrb[0].mxu1 %v2154_v14  ;;  %2603 = vmatpush3.bf16.msra.mxu0 %v2916_v28  ;;  %v818_v14 = vrot.slane %v3260_v10, 1  ;;  %v2947_v28 = vld [vmem:[%s3663_s1 + $0x150] sm:$0xff]   ;;  %v2961_v10 = vld [vmem:[%s3663_s1 + $0x188] sm:$0xff]  }
  0x29   : > { %2604 = vmatprep.subr.bf16.mxu0 %v3017_v1  ;;  %2550 = vmatprep.mubr.msk.bf16.mxu0 %vm3018_vm0, %v3017_v1 }
  0x2a   : > { %2586 = vmatprep.mubr.msk.bf16.mxu1 %vm3018_vm0, %v3017_v1  ;;  %2639 = vmatpush3.bf16.msra.mxu1 %v2919_v32  ;;  %v819_v18 = vsel %vm613_vm2, %v817_v13, %v818_v14  ;;  %v821_v26 = vsel %vm613_vm2, %v818_v14, %v820_v22  ;;  %v2949_v32 = vld [vmem:[%s3663_s1 + $0x158] sm:$0xff]  }
  0x2b   : > { %2640 = vmatprep.subr.bf16.mxu1 %v3017_v1 }
  0x2c   : > { %2605 = vmatpush3.bf16.msra.mxu0 %v2917_v34  ;;  %v2948_v34 = vld [vmem:[%s3663_s1 + $0x120] sm:$0xff]  }
  0x2d   : > { %2606 = vmatprep.subr.bf16.mxu0 %v3017_v1 }
  0x2e   : > { %2641 = vmatpush3.bf16.msra.mxu1 %v2921_v37  ;;  %v2951_v37 = vld [vmem:[%s3663_s1 + $0x160] sm:$0xff]  }
  0x2f   : > { %2551 = vmatmul.mubr.bf16.gmra.mrb[4].mxu0 %v315_v39  ;;  %2642 = vmatprep.subr.bf16.mxu1 %v3017_v1  ;;  %v2952_v39 = vld [vmem:[%s3663_s1 + $0x128] sm:$0xff]  }
  0x30   : > { %2587 = vmatmul.mubr.bf16.gmra.mrb[4].mxu1 %v3118_v15  ;;  %2607 = vmatpush3.bf16.msra.mxu0 %v2920_v40  ;;  %v2942_v15 = vld [vmem:[%s3663_s1 + $0x140] sm:$0xff]   ;;  %v824_v40 = vrot.slane %v3331_v36, 1 }
  0x31   : > { %2554 = vmatprep.mubr.msk.bf16.mxu0 %vm3018_vm0, %v3017_v1  ;;  %2590 = vmatprep.mubr.msk.bf16.mxu1 %vm3018_vm0, %v3017_v1 }
  0x32   : > { %2608 = vmatprep.subr.bf16.mxu0 %v3017_v1  ;;  %2643 = vmatpush3.bf16.msra.mxu1 %v2924_v42  ;;  %v622_v42 = vsel %vm613_vm2, %v619_v29, %v621_v38 }
  0x33   : > { %2644 = vmatprep.subr.bf16.mxu1 %v3017_v1 }
  0x34   : > { %2609 = vmatpush3.bf16.msra.mxu0 %v2923_v44 }
  0x35   : > { %2610 = vmatprep.subr.bf16.mxu0 %v3017_v1 }
  0x36   : > { %2645 = vmatpush3.bf16.msra.mxu1 %v2926_v47  ;;  %v623_v47 = vrot.slane %v3209_v53, 1  ;;  %v2957_v53 = vld [vmem:[%s3663_s1 + $0x138] sm:$0xff]  }
  0x37   : > { %2555 = vmatmul.mubr.bf16.gmra.mrb[8].mxu0 %v323_v49  ;;  %2646 = vmatprep.subr.bf16.mxu1 %v3017_v1  ;;  %v990_v49 = vshll.u32 %v3257_v9, 16 }
  0x38   : > { %2591 = vmatmul.mubr.bf16.gmra.mrb[8].mxu1 %v3141_v27  ;;  %2611 = vmatpush3.bf16.msra.mxu0 %v2925_v48  ;;  %v3304_v27 = vld [vmem:[%s3099_s8 + $0x1c] sm:$0xff]   ;;  %v987_v48 = vshrl.u32 %v3257_v9, 16 }
  0x39   : > { %2558 = vmatprep.mubr.msk.bf16.mxu0 %vm3018_vm0, %v3017_v1  ;;  %2594 = vmatprep.mubr.msk.bf16.mxu1 %vm3018_vm0, %v3017_v1  ;;  %v822_v31 = vrot.slane %v3304_v27, 1  ;;  %v1013_v14 = vshrl.u32 %v3304_v27, 16 }
  0x3a   : > { %2612 = vmatprep.subr.bf16.mxu0 %v3017_v1  ;;  %2647 = vmatpush3.bf16.msra.mxu1 %v2928_v52  ;;  %v826_v52 = vrot.slane %v2955_v43, 1  ;;  %v2971_v43 = vld [vmem:[%s3663_s1 + $0x1e8] sm:$0xff]  }
  0x3b   : > { %2648 = vmatprep.subr.bf16.mxu1 %v3017_v1  ;;  %v823_v35 = vsel %vm613_vm2, %v820_v22, %v822_v31  ;;  %v825_v44 = vsel %vm613_vm2, %v822_v31, %v824_v40 }
  0x3c   : > { %2613 = vmatpush3.bf16.msra.mxu0 %v2929_v56  ;;  %v624_v56 = vsel %vm613_vm2, %v621_v38, %v623_v47 }
  0x3d   : > { %2614 = vmatprep.subr.bf16.mxu0 %v3017_v1 }
  0x3e   : > { %2649 = vmatpush3.bf16.msra.mxu1 %v2930_v57  ;;  %v989_v57 = vrot.slane %v987_v48, 1 }
  0x3f   : > { %2559 = vmatmul.mubr.bf16.gmra.mrb[12].mxu0 %v331_v58  ;;  %2650 = vmatprep.subr.bf16.mxu1 %v3017_v1  ;;  %v992_v58 = vrot.slane %v990_v49, 2 }
  0x40   : > { %2595 = vmatmul.mubr.bf16.gmra.mrb[12].mxu1 %v3157_v33  ;;  %2562 = vmatprep.mubr.msk.bf16.mxu0 %vm3018_vm0, %v3017_v1  ;;  %v620_v33 = vsel %vm613_vm2, %v617_v21, %v619_v29  ;;  %v1015_v21 = vrot.slane %v1013_v14, 1  ;;  %v1202_v29 = vrot.slane %v3304_v27, 2 }
  0x41   : > { %2598 = vmatprep.mubr.msk.bf16.mxu1 %vm3018_vm0, %v3017_v1  ;;  %2615 = vmatpush3.bf16.msra.mxu0 %v2931_v61  ;;  %v827_v61 = vsel %vm613_vm2, %v824_v40, %v826_v52  ;;  %v2974_v52 = vld [vmem:[%s3663_s1 + $0x1f0] sm:$0xff]  }
  0x42   : > { %2651 = vmatpush3.bf16.msra.mxu1 %v2933_v62  ;;  %2616 = vmatprep.subr.bf16.mxu0 %v3017_v1  ;;  %v2272_v62 = vcombine.low %v1175_v55, %v3251_v6  ;;  %v2975_v55 = vld [vmem:[%s3663_s1 + $0x1b8] sm:$0xff]  }
  0x43   : > { %2652 = vmatprep.subr.bf16.mxu1 %v3017_v1 }
  0x44   : > { %v1197_v4 = vrot.slane %v2272_v62, 2 }
  0x45   : > { %2617 = vmatpush3.bf16.msra.mxu0 %v2934_v63  ;;  %v993_v63 = vor.u32 %v992_v58, %v989_v57  ;;  %v1578_v58 = vshrl.u32 %v3476_v51, 16 }
  0x46   : > { %2653 = vmatpush3.bf16.msra.mxu1 %v2935_v3  ;;  %2674 = vmatprep.subr.bf16.mxu0 %v3017_v1  ;;  %v1007_v3 = vshll.u32 %v3278_v19, 16  ;;  %v1199_v11 = vsel %vm1196_vm4, %v1197_v4, %v1198_v5  ;;  %v3499_v4 = vld [vmem:[%s3099_s8 + $0x18] sm:$0xff]  }
  0x47   : > { %2563 = vmatmul.mubr.bf16.gmra.mrb[16].mxu0 %v339_v7  ;;  %2710 = vmatprep.subr.bf16.mxu1 %v3017_v1  ;;  %v1002_v6 = vsel %vm985_vm3, %v993_v63, %v1001_v0  ;;  %v2960_v7 = vld [vmem:[%s3663_s1 + $0x180] sm:$0xff]   ;;  %v1580_v2 = vrot.slane %v1578_v58, 2 }
  0x48   : > { %2599 = vmatmul.mubr.bf16.gmra.mrb[16].mxu1 %v3186_v45  ;;  %2618 = vmatprep.mubr.msk.bf16.mxu0 %vm3018_vm0, %v3017_v1  ;;  %v2954_v45 = vld [vmem:[%s3663_s1 + $0x130] sm:$0xff]   ;;  %v1009_v9 = vrot.slane %v1007_v3, 2  ;;  %v1583_v3 = vrot.slane %v1581_v59, 3 }
  0x49   : > { %2654 = vmatprep.mubr.msk.bf16.mxu1 %vm3018_vm0, %v3017_v1 }
  0x4a   : > { %v1010_v13 = vor.u32 %v1009_v9, %v1006_v8  ;;  %v1584_v8 = vor.u32 %v1583_v3, %v1580_v2  ;;  %v1587_v9 = vshrl.u32 %v3499_v4, 16 }
  0x4c   : > { %v1589_v14 = vrot.slane %v1587_v9, 2 }
  0x4f   : > { %2619 = vmatmul.mubr.bf16.vlgmr.msra.gmra.mrb[20].mxu0 %v616_v16  ;;  %v1016_v16 = vshll.u32 %v3304_v27, 16 }
  0x50   : > { %2655 = vmatmul.mubr.bf16.vlgmr.msra.gmra.mrb[20].mxu1 %v819_v18  ;;  %2675 = vmatpush3.bf16.msra.mxu0 %v2939_v17  ;;  %v1200_v17 = vrot.slane %v3278_v19, 2  ;;  %v2964_v18 = vld [vmem:[%s3663_s1 + $0x1c8] sm:$0xff]  }
  0x51   : > { %2676 = vmatprep.subr.bf16.mxu0 %v3017_v1  ;;  %2622 = vmatprep.mubr.msk.bf16.mxu0 %vm3018_vm0, %v3017_v1  ;;  %v1018_v22 = vrot.slane %v1016_v16, 2 }
  0x52   : > { %2658 = vmatprep.mubr.msk.bf16.mxu1 %vm3018_vm0, %v3017_v1  ;;  %2711 = vmatpush3.bf16.msra.mxu1 %v2942_v15  ;;  %v1011_v15 = vsel %vm985_vm3, %v1001_v0, %v1010_v13  ;;  %v1201_v19 = vsel %vm1196_vm4, %v1198_v5, %v1200_v17  ;;  %v1203_v27 = vsel %vm1196_vm4, %v1200_v17, %v1202_v29  ;;  %v3516_v17 = vld [vmem:[%s3099_s8 + $0x20] sm:$0xff]  }
  0x53   : > { %2712 = vmatprep.subr.bf16.mxu1 %v3017_v1 }
  0x54   : > { %2677 = vmatpush3.bf16.msra.mxu0 %v2940_v20  ;;  %v2963_v20 = vld [vmem:[%s3663_s1 + $0x190] sm:$0xff]  }
  0x55   : > { %2678 = vmatprep.subr.bf16.mxu0 %v3017_v1 }
  0x56   : > { %2713 = vmatpush3.bf16.msra.mxu1 %v2944_v23  ;;  %v2966_v23 = vld [vmem:[%s3663_s1 + $0x1d0] sm:$0xff]  }
  0x57   : > { %2623 = vmatmul.mubr.bf16.gmra.mrb[24].mxu0 %v618_v24  ;;  %2714 = vmatprep.subr.bf16.mxu1 %v3017_v1  ;;  %v1019_v24 = vor.u32 %v1018_v22, %v1015_v21  ;;  %v1596_v21 = vshrl.u32 %v3516_v17, 16  ;;  %v1599_v22 = vshll.u32 %v3516_v17, 16 }
  0x58   : > { %2659 = vmatmul.mubr.bf16.gmra.mrb[24].mxu1 %v821_v26  ;;  %2679 = vmatpush3.bf16.msra.mxu0 %v2943_v25  ;;  %v2965_v25 = vld [vmem:[%s3663_s1 + $0x198] sm:$0xff]   ;;  %v1022_v26 = vshrl.u32 %v3331_v36, 16 }
  0x59   : > { %2626 = vmatprep.mubr.msk.bf16.mxu0 %vm3018_vm0, %v3017_v1  ;;  %2662 = vmatprep.mubr.msk.bf16.mxu1 %vm3018_vm0, %v3017_v1  ;;  %v1020_v31 = vsel %vm985_vm3, %v1010_v13, %v1019_v24 }
  0x5a   : > { %2680 = vmatprep.subr.bf16.mxu0 %v3017_v1  ;;  %2715 = vmatpush3.bf16.msra.mxu1 %v2947_v28  ;;  %v1025_v28 = vshll.u32 %v3331_v36, 16 }
  0x5b   : > { %2716 = vmatprep.subr.bf16.mxu1 %v3017_v1 }
  0x5c   : > { %2681 = vmatpush3.bf16.msra.mxu0 %v2946_v30  ;;  %v2968_v30 = vld [vmem:[%s3663_s1 + $0x1d8] sm:$0xff]  }
  0x5d   : > { %2682 = vmatprep.subr.bf16.mxu0 %v3017_v1 }
  0x5e   : > { %2717 = vmatpush3.bf16.msra.mxu1 %v2949_v32  ;;  %v2967_v32 = vld [vmem:[%s3663_s1 + $0x1a0] sm:$0xff]  }
  0x5f   : > { %2627 = vmatmul.mubr.bf16.gmra.mrb[28].mxu0 %v620_v33  ;;  %2718 = vmatprep.subr.bf16.mxu1 %v3017_v1  ;;  %v1024_v33 = vrot.slane %v1022_v26, 1  ;;  %v1601_v26 = vrot.slane %v1599_v22, 3 }
  0x60   : > { %2663 = vmatmul.mubr.bf16.gmra.mrb[28].mxu1 %v823_v35  ;;  %2683 = vmatpush3.bf16.msra.mxu0 %v2948_v34  ;;  %v1027_v34 = vrot.slane %v1025_v28, 2  ;;  %v2973_v35 = vld [vmem:[%s3099_s8 + $0x2c] ss:$0 sps:$4 sm:$0x33]  }
  0x61   : > { %2630 = vmatprep.mubr.msk.bf16.mxu0 %vm3018_vm0, %v3017_v1  ;;  %2666 = vmatprep.mubr.msk.bf16.mxu1 %vm3018_vm0, %v3017_v1  ;;  %v1031_v40 = vshrl.u32 %v2973_v35, 16  ;;  %v3537_v28 = vld [vmem:[%s3099_s8 + $0x28] sm:$0xff]  }
  0x62   : > { %2684 = vmatprep.subr.bf16.mxu0 %v3017_v1  ;;  %2719 = vmatpush3.bf16.msra.mxu1 %v2951_v37  ;;  %v2969_v37 = vld [vmem:[%s3663_s1 + $0x1e0] sm:$0xff]   ;;  %v1028_v38 = vor.u32 %v1027_v34, %v1024_v33  ;;  %v1608_v33 = vshll.u32 %v3537_v28, 16 }
  0x63   : > { %2720 = vmatprep.subr.bf16.mxu1 %v3017_v1  ;;  %v1033_v47 = vrot.slane %v1031_v40, 1  ;;  %v1407_v40 = vrot.slane %v3537_v28, 2 }
  0x64   : > { %2685 = vmatpush3.bf16.msra.mxu0 %v2952_v39  ;;  %v2970_v39 = vld [vmem:[%s3663_s1 + $0x1a8] sm:$0xff]  }
  0x65   : > { %2686 = vmatprep.subr.bf16.mxu0 %v3017_v1 }
  0x66   : > { %2721 = vmatpush3.bf16.msra.mxu1 %v2953_v41  ;;  %v1034_v41 = vshll.u32 %v2973_v35, 16 }
  0x67   : > { %2631 = vmatmul.mubr.bf16.gmra.mrb[32].mxu0 %v622_v42  ;;  %2722 = vmatprep.subr.bf16.mxu1 %v3017_v1  ;;  %v1204_v42 = vrot.slane %v3331_v36, 2  ;;  %v2972_v36 = vld [vmem:[%s3663_s1 + $0x1b0] sm:$0xff]  }
  0x68   : > { %2667 = vmatmul.mubr.bf16.gmra.mrb[32].mxu1 %v825_v44  ;;  %2634 = vmatprep.mubr.msk.bf16.mxu0 %vm3018_vm0, %v3017_v1  ;;  %v1344_v44 = vld [vmem:[%s3099_s8 + $0x8] sm:$0xc]  ;;  %v1036_v48 = vrot.slane %v1034_v41, 2 }
  0x69   : > { %2670 = vmatprep.mubr.msk.bf16.mxu1 %vm3018_vm0, %v3017_v1  ;;  %2687 = vmatpush3.bf16.msra.mxu0 %v2954_v45  ;;  %v3465_v45 = vld [vmem:[%s3099_s8 + $0xc] sm:$0xf]  ;;  %v1205_v49 = vsel %vm1196_vm4, %v1202_v29, %v1204_v42  ;;  %v1405_v29 = vrot.slane %v3516_v17, 2 }
  0x6a   : > { %2723 = vmatpush3.bf16.msra.mxu1 %v2956_v46  ;;  %2688 = vmatprep.subr.bf16.mxu0 %v3017_v1  ;;  %v1029_v46 = vsel %vm985_vm3, %v1019_v24, %v1028_v38  ;;  %v2297_v50 = vcombine.low %v1344_v44, %v3465_v45  ;;  %v2987_v41 = vld [vmem:[%s3663_s1 + $0x228] sm:$0xff]  }
  0x6b   : > { %2724 = vmatprep.subr.bf16.mxu1 %v3017_v1 }
  0x6c   : > { %v1573_v57 = vshll.u32 %v2297_v50, 16  ;;  %v1400_v5 = vrot.slane %v2297_v50, 2 }
  0x6d   : > { %2689 = vmatpush3.bf16.msra.mxu0 %v2957_v53  ;;  %v1037_v53 = vor.u32 %v1036_v48, %v1033_v47  ;;  %v2989_v47 = vld [vmem:[%s3099_s8 + $0x30] ss:$0 sps:$4 sm:$0x33]  }
  0x6e   : > { %2725 = vmatpush3.bf16.msra.mxu1 %v2958_v54  ;;  %2746 = vmatprep.subr.bf16.mxu0 %v3017_v1  ;;  %v1206_v54 = vrot.slane %v2973_v35, 2  ;;  %v1575_v0 = vrot.slane %v1573_v57, 3  ;;  %v2985_v35 = vld [vmem:[%s3663_s1 + $0x220] sm:$0xff]  }
  0x6f   : > { %2635 = vmatmul.mubr.bf16.gmra.mrb[36].mxu0 %v624_v56  ;;  %2782 = vmatprep.subr.bf16.mxu1 %v3017_v1  ;;  %v1570_v56 = vshrl.u32 %v2297_v50, 16 }
  0x70   : > { %2671 = vmatmul.mubr.bf16.gmra.mrb[36].mxu1 %v827_v61  ;;  %2690 = vmatprep.mubr.msk.bf16.mxu0 %vm3018_vm0, %v3017_v1  ;;  %v1038_v61 = vsel %vm985_vm3, %v1028_v38, %v1037_v53  ;;  %v1207_v62 = vsel %vm1196_vm4, %v1204_v42, %v1206_v54  ;;  %v1610_v38 = vrot.slane %v1608_v33, 3  ;;  %v2991_v54 = vld [vmem:[%s3663_s1 + $0x238] sm:$0xff]  }
  0x71   : > { %2726 = vmatprep.mubr.msk.bf16.mxu1 %vm3018_vm0, %v3017_v1  ;;  %v1572_v63 = vrot.slane %v1570_v56, 2 }
  0x77   : > { %2691 = vmatmul.mubr.bf16.vlgmr.msra.gmra.mrb[40].mxu0 %v1002_v6  ;;  %v1401_v6 = vrot.slane %v3476_v51, 2 }
  0x78   : > { %2727 = vmatmul.mubr.bf16.vlgmr.msra.gmra.mrb[40].mxu1 %v1199_v11  ;;  %2747 = vmatpush3.bf16.msra.mxu0 %v2960_v7  ;;  %v1576_v7 = vor.u32 %v1575_v0, %v1572_v63  ;;  %v1590_v11 = vshll.u32 %v3499_v4, 16  ;;  %v1783_v0 = vrot.slane %v3499_v4, 3 }
  0x79   : > { %2748 = vmatprep.subr.bf16.mxu0 %v3017_v1  ;;  %2694 = vmatprep.mubr.msk.bf16.mxu0 %vm3018_vm0, %v3017_v1 }
  0x7a   : > { %2730 = vmatprep.mubr.msk.bf16.mxu1 %vm3018_vm0, %v3017_v1  ;;  %2783 = vmatpush3.bf16.msra.mxu1 %v2962_v12  ;;  %v1402_v12 = vsel %vm1196_vm4, %v1400_v5, %v1401_v6  ;;  %v1585_v13 = vsel %vm1568_vm5, %v1576_v7, %v1584_v8  ;;  %v1592_v16 = vrot.slane %v1590_v11, 3 }
  0x7b   : > { %2784 = vmatprep.subr.bf16.mxu1 %v3017_v1 }
  0x7c   : > { %2749 = vmatpush3.bf16.msra.mxu0 %v2961_v10  ;;  %v2979_v10 = vld [vmem:[%s3663_s1 + $0x200] sm:$0xff]  }
  0x7d   : > { %2750 = vmatprep.subr.bf16.mxu0 %v3017_v1 }
  0x7e   : > { %2785 = vmatpush3.bf16.msra.mxu1 %v2964_v18  ;;  %v2980_v18 = vld [vmem:[%s3663_s1 + $0x208] sm:$0xff]  }
  0x7f   : > { %2695 = vmatmul.mubr.bf16.gmra.mrb[44].mxu0 %v1011_v15  ;;  %2786 = vmatprep.subr.bf16.mxu1 %v3017_v1  ;;  %v1403_v15 = vrot.slane %v3499_v4, 2 }
  0x80   : > { %2731 = vmatmul.mubr.bf16.gmra.mrb[44].mxu1 %v1201_v19  ;;  %2751 = vmatpush3.bf16.msra.mxu0 %v2963_v20  ;;  %v1593_v20 = vor.u32 %v1592_v16, %v1589_v14 }
  0x81   : > { %2698 = vmatprep.mubr.msk.bf16.mxu0 %vm3018_vm0, %v3017_v1  ;;  %2734 = vmatprep.mubr.msk.bf16.mxu1 %vm3018_vm0, %v3017_v1  ;;  %v1404_v19 = vsel %vm1196_vm4, %v1401_v6, %v1403_v15  ;;  %v1406_v34 = vsel %vm1196_vm4, %v1403_v15, %v1405_v29 }
  0x82   : > { %2752 = vmatprep.subr.bf16.mxu0 %v3017_v1  ;;  %2787 = vmatpush3.bf16.msra.mxu1 %v2966_v23  ;;  %v2982_v23 = vld [vmem:[%s3663_s1 + $0x210] sm:$0xff]   ;;  %v1594_v24 = vsel %vm1568_vm5, %v1584_v8, %v1593_v20 }
  0x83   : > { %2788 = vmatprep.subr.bf16.mxu1 %v3017_v1 }
  0x84   : > { %2753 = vmatpush3.bf16.msra.mxu0 %v2965_v25  ;;  %v1598_v25 = vrot.slane %v1596_v21, 2 }
  0x85   : > { %2754 = vmatprep.subr.bf16.mxu0 %v3017_v1 }
  0x86   : > { %2789 = vmatpush3.bf16.msra.mxu1 %v2968_v30  ;;  %v2984_v30 = vld [vmem:[%s3663_s1 + $0x218] sm:$0xff]  }
  0x87   : > { %2699 = vmatmul.mubr.bf16.gmra.mrb[48].mxu0 %v1020_v31  ;;  %2790 = vmatprep.subr.bf16.mxu1 %v3017_v1  ;;  %v1602_v31 = vor.u32 %v1601_v26, %v1598_v25 }
  0x88   : > { %2735 = vmatmul.mubr.bf16.gmra.mrb[48].mxu1 %v1203_v27  ;;  %2755 = vmatpush3.bf16.msra.mxu0 %v2967_v32  ;;  %v1605_v32 = vshrl.u32 %v3537_v28, 16 }
  0x89   : > { %2702 = vmatprep.mubr.msk.bf16.mxu0 %vm3018_vm0, %v3017_v1  ;;  %2738 = vmatprep.mubr.msk.bf16.mxu1 %vm3018_vm0, %v3017_v1  ;;  %v1603_v27 = vsel %vm1568_vm5, %v1593_v20, %v1602_v31 }
  0x8a   : > { %2756 = vmatprep.subr.bf16.mxu0 %v3017_v1  ;;  %2791 = vmatpush3.bf16.msra.mxu1 %v2969_v37  ;;  %v1607_v37 = vrot.slane %v1605_v32, 2 }
  0x8b   : > { %2792 = vmatprep.subr.bf16.mxu1 %v3017_v1 }
  0x8c   : > { %2757 = vmatpush3.bf16.msra.mxu0 %v2970_v39  ;;  %v3559_v39 = vld [vmem:[%s3099_s8 + $0x30] ss:$0 sps:$4 sm:$0x77]   ;;  %v1611_v42 = vor.u32 %v1610_v38, %v1607_v37 }
  0x8d   : > { %2758 = vmatprep.subr.bf16.mxu0 %v3017_v1  ;;  %v1617_v44 = vshll.u32 %v3559_v39, 16 }
  0x8e   : > { %2793 = vmatpush3.bf16.msra.mxu1 %v2971_v43  ;;  %v1614_v43 = vshrl.u32 %v3559_v39, 16  ;;  %v1612_v48 = vsel %vm1568_vm5, %v1602_v31, %v1611_v42 }
  0x8f   : > { %2703 = vmatmul.mubr.bf16.gmra.mrb[52].mxu0 %v1029_v46  ;;  %2794 = vmatprep.subr.bf16.mxu1 %v3017_v1  ;;  %v1408_v46 = vsel %vm1196_vm4, %v1405_v29, %v1407_v40  ;;  %v1619_v50 = vrot.slane %v1617_v44, 3 }
  0x90   : > { %2739 = vmatmul.mubr.bf16.gmra.mrb[52].mxu1 %v1205_v49  ;;  %2706 = vmatprep.mubr.msk.bf16.mxu0 %vm3018_vm0, %v3017_v1  ;;  %v2988_v49 = vld [vmem:[%s3663_s1 + $0x230] sm:$0xff]  }
  0x91   : > { %2742 = vmatprep.mubr.msk.bf16.mxu1 %vm3018_vm0, %v3017_v1  ;;  %2759 = vmatpush3.bf16.msra.mxu0 %v2972_v36  ;;  %v1616_v36 = vrot.slane %v1614_v43, 2 }
  0x92   : > { %2795 = vmatpush3.bf16.msra.mxu1 %v2974_v52  ;;  %2760 = vmatprep.subr.bf16.mxu0 %v3017_v1  ;;  %v1409_v52 = vrot.slane %v2989_v47, 2 }
  0x93   : > { %2796 = vmatprep.subr.bf16.mxu1 %v3017_v1  ;;  %v1620_v53 = vor.u32 %v1619_v50, %v1616_v36 }
  0x94   : > { %v1410_v56 = vsel %vm1196_vm4, %v1407_v40, %v1409_v52 }
  0x95   : > { %2761 = vmatpush3.bf16.msra.mxu0 %v2975_v55  ;;  %v1758_v55 = vld [vmem:[%s3099_s8 + $0x8] sm:$0x8]  ;;  %v1621_v58 = vsel %vm1568_vm5, %v1611_v42, %v1620_v53 }
  0x96   : > { %2797 = vmatpush3.bf16.msra.mxu1 %v2976_v60  ;;  %2818 = vmatprep.subr.bf16.mxu0 %v3017_v1  ;;  %v2352_v57 = vcombine.low %v1758_v55, %v3465_v45  ;;  %v1781_v60 = vrot.slane %v3476_v51, 3  ;;  %v1787_v45 = vrot.slane %v3537_v28, 3  ;;  %v1789_v51 = vrot.slane %v3559_v39, 3 }
  0x97   : > { %2707 = vmatmul.mubr.bf16.gmra.mrb[56].mxu0 %v1038_v61  ;;  %2854 = vmatprep.subr.bf16.mxu1 %v3017_v1  ;;  %v1785_v61 = vrot.slane %v3516_v17, 3 }
  0x98   : > { %2743 = vmatmul.mubr.bf16.gmra.mrb[56].mxu1 %v1207_v62  ;;  %2762 = vmatprep.mubr.msk.bf16.mxu0 %vm3018_vm0, %v3017_v1  ;;  %v1780_v59 = vrot.slane %v2352_v57, 3  ;;  %v1784_v2 = vsel %vm1779_vm6, %v1781_v60, %v1783_v0  ;;  %v1790_v3 = vsel %vm1779_vm6, %v1787_v45, %v1789_v51 }
  0x99   : > { %2798 = vmatprep.mubr.msk.bf16.mxu1 %vm3018_vm0, %v3017_v1  ;;  %v1788_v63 = vsel %vm1779_vm6, %v1785_v61, %v1787_v45  ;;  %v1786_v5 = vsel %vm1779_vm6, %v1783_v0, %v1785_v61 }
  0x9a   : > { %v1782_v62 = vsel %vm1779_vm6, %v1780_v59, %v1781_v60 }
  0x9f   : > { %2763 = vmatmul.mubr.bf16.vlgmr.msra.gmra.mrb[60].mxu0 %v1402_v12 }
  0xa0   : > { %2799 = vmatmul.mubr.bf16.vlgmr.msra.gmra.mrb[60].mxu1 %v1585_v13  ;;  %2819 = vmatpush3.bf16.msra.mxu0 %v2979_v10 }
  0xa1   : > { %2820 = vmatprep.subr.bf16.mxu0 %v3017_v1  ;;  %2766 = vmatprep.mubr.msk.bf16.mxu0 %vm3018_vm0, %v3017_v1 }
  0xa2   : > { %2802 = vmatprep.mubr.msk.bf16.mxu1 %vm3018_vm0, %v3017_v1  ;;  %2862 = vmatpush3.bf16.msra.mxu1 %v2979_v10 }
  0xa3   : > { %2855 = vmatprep.subr.bf16.mxu1 %v3017_v1 }
  0xa4   : > { %2821 = vmatpush3.bf16.msra.mxu0 %v2980_v18 }
  0xa5   : > { %2822 = vmatprep.subr.bf16.mxu0 %v3017_v1 }
  0xa6   : > { %2863 = vmatpush3.bf16.msra.mxu1 %v2980_v18 }
  0xa7   : > { %2767 = vmatmul.mubr.bf16.gmra.mrb[64].mxu0 %v1404_v19  ;;  %2856 = vmatprep.subr.bf16.mxu1 %v3017_v1 }
  0xa8   : > { %2803 = vmatmul.mubr.bf16.gmra.mrb[64].mxu1 %v1594_v24  ;;  %2823 = vmatpush3.bf16.msra.mxu0 %v2982_v23 }
  0xa9   : > { %2770 = vmatprep.mubr.msk.bf16.mxu0 %vm3018_vm0, %v3017_v1  ;;  %2806 = vmatprep.mubr.msk.bf16.mxu1 %vm3018_vm0, %v3017_v1 }
  0xaa   : > { %2824 = vmatprep.subr.bf16.mxu0 %v3017_v1  ;;  %2864 = vmatpush3.bf16.msra.mxu1 %v2982_v23 }
  0xab   : > { %2857 = vmatprep.subr.bf16.mxu1 %v3017_v1 }
  0xac   : > { %2825 = vmatpush3.bf16.msra.mxu0 %v2984_v30 }
  0xad   : > { %2826 = vmatprep.subr.bf16.mxu0 %v3017_v1 }
  0xae   : > { %2865 = vmatpush3.bf16.msra.mxu1 %v2984_v30 }
  0xaf   : > { %2771 = vmatmul.mubr.bf16.gmra.mrb[68].mxu0 %v1406_v34  ;;  %2858 = vmatprep.subr.bf16.mxu1 %v3017_v1 }
  0xb0   : > { %2807 = vmatmul.mubr.bf16.gmra.mrb[68].mxu1 %v1603_v27  ;;  %2827 = vmatpush3.bf16.msra.mxu0 %v2985_v35 }
  0xb1   : > { %2774 = vmatprep.mubr.msk.bf16.mxu0 %vm3018_vm0, %v3017_v1  ;;  %2810 = vmatprep.mubr.msk.bf16.mxu1 %vm3018_vm0, %v3017_v1 }
  0xb2   : > { %2866 = vmatpush3.bf16.msra.mxu1 %v2985_v35  ;;  %2828 = vmatprep.subr.bf16.mxu0 %v3017_v1 }
  0xb3   : > { %2859 = vmatprep.subr.bf16.mxu1 %v3017_v1 }
  0xb4   : > { %2829 = vmatpush3.bf16.msra.mxu0 %v2987_v41 }
  0xb5   : > { %2830 = vmatprep.subr.bf16.mxu0 %v3017_v1 }
  0xb6   : > { %2867 = vmatpush3.bf16.msra.mxu1 %v2987_v41 }
  0xb7   : > { %2775 = vmatmul.mubr.bf16.gmra.mrb[72].mxu0 %v1408_v46  ;;  %2860 = vmatprep.subr.bf16.mxu1 %v3017_v1 }
  0xb8   : > { %2811 = vmatmul.mubr.bf16.gmra.mrb[72].mxu1 %v1612_v48  ;;  %2778 = vmatprep.mubr.msk.bf16.mxu0 %vm3018_vm0, %v3017_v1 }
  0xb9   : > { %2814 = vmatprep.mubr.msk.bf16.mxu1 %vm3018_vm0, %v3017_v1  ;;  %2831 = vmatpush3.bf16.msra.mxu0 %v2988_v49 }
  0xba   : > { %2868 = vmatpush3.bf16.msra.mxu1 %v2988_v49  ;;  %2832 = vmatprep.subr.bf16.mxu0 %v3017_v1 }
  0xbb   : > { %2861 = vmatprep.subr.bf16.mxu1 %v3017_v1 }
  0xbd   : > { %2833 = vmatpush3.bf16.msra.mxu0 %v2991_v54 }
  0xbe   : > { %2869 = vmatpush3.bf16.msra.mxu1 %v2991_v54 }
  0xbf   : > { %2779 = vmatmul.mubr.bf16.gmra.mrb[76].mxu0 %v1410_v56 }
  0xc0   : > { %2815 = vmatmul.mubr.bf16.gmra.mrb[76].mxu1 %v1621_v58  ;;  %2834 = vmatprep.mubr.msk.bf16.mxu0 %vm3018_vm0, %v3017_v1 }
  0xc1   : > { %2846 = vmatprep.mubr.msk.bf16.mxu1 %vm3018_vm0, %v3017_v1 }
  0xc7   : > { %2835 = vmatmul.mubr.bf16.vlgmr.msra.gmra.mrb[80].mxu0 %v1782_v62 }
  0xc8   : > { %2847 = vmatmul.mubr.bf16.vlgmr.msra.gmra.mrb[80].mxu1 %v1788_v63  ;;  %2838 = vmatprep.mubr.msk.bf16.mxu0 %vm3018_vm0, %v3017_v1 }
  0xc9   : > { %2850 = vmatprep.mubr.msk.bf16.mxu1 %vm3018_vm0, %v3017_v1 }
  0xcf   : > { %2839 = vmatmul.mubr.bf16.gmra.mrb[84].mxu0 %v1784_v2 }
  0xd0   : > { %2851 = vmatmul.mubr.bf16.gmra.mrb[84].mxu1 %v1790_v3  ;;  %2842 = vmatprep.mubr.msk.bf16.mxu0 %vm3018_vm0, %v3017_v1 }
  0xd7   : > { %2843 = vmatmul.mubr.bf16.gmra.mrb[88].mxu0 %v1786_v5 }
  0xfa   : > { %v427_v6 = vpop.f32.mrb[0].mxu0 }
  0xfb   : > { %v553_v7 = vpop.f32.mrb[0].mxu1  ;;  %v2548_v4 = vpop.f32.mrb[1].mxu0 }
  0xfc   : > { %v554_v8 = vadd.f32 %v553_v7, %v427_v6  ;;  %v2584_v9 = vpop.f32.mrb[1].mxu1  ;;  %v430_v11 = vpop.f32.mrb[2].mxu0 }
  0xfd   : > { %v556_v12 = vpop.f32.mrb[2].mxu1  ;;  %v2549_v10 = vpop.f32.mrb[3].mxu0 }
  0xfe   : > { %v557_v13 = vadd.f32 %v556_v12, %v430_v11  ;;  %v2585_v14 = vpop.f32.mrb[3].mxu1 }
 0x102   : > { %v435_v16 = vpop.f32.mrb[4].mxu0 }
 0x103   : > { %v561_v17 = vpop.f32.mrb[4].mxu1  ;;  %v2552_v18 = vpop.f32.mrb[5].mxu0 }
 0x104   : > { %v562_v15 = vadd.f32 %v561_v17, %v435_v16  ;;  %v2588_v20 = vpop.f32.mrb[5].mxu1  ;;  %v438_v21 = vpop.f32.mrb[6].mxu0 }
 0x105   : > { %v564_v1 = vpop.f32.mrb[6].mxu1  ;;  %v2553_v22 = vpop.f32.mrb[7].mxu0 }
 0x106   : > { %v565_v19 = vadd.f32 %v564_v1, %v438_v21  ;;  %v2589_v23 = vpop.f32.mrb[7].mxu1 }
 0x10a   : > { %v443_v24 = vpop.f32.mrb[8].mxu0 }
 0x10b   : > { %v569_v25 = vpop.f32.mrb[8].mxu1  ;;  %v2556_v26 = vpop.f32.mrb[9].mxu0 }
 0x10c   : > { %v570_v28 = vadd.f32 %v569_v25, %v443_v24  ;;  %v2592_v29 = vpop.f32.mrb[9].mxu1  ;;  %v446_v30 = vpop.f32.mrb[10].mxu0 }
 0x10d   : > { %v572_v31 = vpop.f32.mrb[10].mxu1  ;;  %v2557_v32 = vpop.f32.mrb[11].mxu0 }
 0x10e   : > { %v573_v33 = vadd.f32 %v572_v31, %v446_v30  ;;  %v2593_v34 = vpop.f32.mrb[11].mxu1 }
 0x112   : > { %v451_v35 = vpop.f32.mrb[12].mxu0 }
 0x113   : > { %v577_v27 = vpop.f32.mrb[12].mxu1  ;;  %v2560_v37 = vpop.f32.mrb[13].mxu0 }
 0x114   : > { %v578_v38 = vadd.f32 %v577_v27, %v451_v35  ;;  %v2596_v39 = vpop.f32.mrb[13].mxu1  ;;  %v454_v40 = vpop.f32.mrb[14].mxu0 }
 0x115   : > { %v580_v41 = vpop.f32.mrb[14].mxu1  ;;  %v2561_v42 = vpop.f32.mrb[15].mxu0 }
 0x116   : > { %v581_v43 = vadd.f32 %v580_v41, %v454_v40  ;;  %v2597_v44 = vpop.f32.mrb[15].mxu1 }
 0x11a   : > { %v459_v46 = vpop.f32.mrb[16].mxu0 }
 0x11b   : > { %v585_v47 = vpop.f32.mrb[16].mxu1  ;;  %v2564_v48 = vpop.f32.mrb[17].mxu0 }
 0x11c   : > { %v586_v49 = vadd.f32 %v585_v47, %v459_v46  ;;  %v2600_v36 = vpop.f32.mrb[17].mxu1  ;;  %v462_v50 = vpop.f32.mrb[18].mxu0 }
 0x11d   : > { %v588_v52 = vpop.f32.mrb[18].mxu1  ;;  %v2565_v53 = vpop.f32.mrb[19].mxu0 }
 0x11e   : > { %v589_v54 = vadd.f32 %v588_v52, %v462_v50  ;;  %v2601_v55 = vpop.f32.mrb[19].mxu1 }
 0x122   : > { %v712_v56 = vpop.f32.mrb[20].mxu0 }
 0x123   : > { %v751_v57 = vadd.f32 %v712_v56, %v554_v8  ;;  %v2620_v58 = vpop.f32.mrb[21].mxu0  ;;  %v915_v59 = vpop.f32.mrb[20].mxu1 }
 0x124   : > { %v715_v60 = vpop.f32.mrb[22].mxu0  ;;  %v2656_v61 = vpop.f32.mrb[21].mxu1 }
 0x125   : > { %v752_v45 = vadd.f32 %v715_v60, %v557_v13  ;;  %v954_v62 = vadd.f32 %v915_v59, %v751_v57  ;;  %v2621_v63 = vpop.f32.mrb[23].mxu0  ;;  %v918_v0 = vpop.f32.mrb[22].mxu1 }
 0x126   : > { %v2657_v51 = vpop.f32.mrb[23].mxu1 }
 0x127   : > { %v955_v2 = vadd.f32 %v918_v0, %v752_v45 }
 0x12a   : > { %v720_v3 = vpop.f32.mrb[24].mxu0 }
 0x12b   : > { %v753_v5 = vadd.f32 %v720_v3, %v562_v15  ;;  %v2624_v6 = vpop.f32.mrb[25].mxu0  ;;  %v923_v7 = vpop.f32.mrb[24].mxu1 }
 0x12c   : > { %v723_v4 = vpop.f32.mrb[26].mxu0  ;;  %v2660_v9 = vpop.f32.mrb[25].mxu1 }
 0x12d   : > { %v754_v11 = vadd.f32 %v723_v4, %v565_v19  ;;  %v956_v12 = vadd.f32 %v923_v7, %v753_v5  ;;  %v2625_v10 = vpop.f32.mrb[27].mxu0  ;;  %v926_v8 = vpop.f32.mrb[26].mxu1 }
 0x12e   : > { %v2661_v14 = vpop.f32.mrb[27].mxu1 }
 0x12f   : > { %v957_v16 = vadd.f32 %v926_v8, %v754_v11 }
 0x132   : > { %v728_v17 = vpop.f32.mrb[28].mxu0 }
 0x133   : > { %v755_v18 = vadd.f32 %v728_v17, %v570_v28  ;;  %v2628_v13 = vpop.f32.mrb[29].mxu0  ;;  %v931_v20 = vpop.f32.mrb[28].mxu1 }
 0x134   : > { %v731_v21 = vpop.f32.mrb[30].mxu0  ;;  %v2664_v1 = vpop.f32.mrb[29].mxu1 }
 0x135   : > { %v756_v22 = vadd.f32 %v731_v21, %v573_v33  ;;  %v958_v23 = vadd.f32 %v931_v20, %v755_v18  ;;  %v2629_v24 = vpop.f32.mrb[31].mxu0  ;;  %v934_v15 = vpop.f32.mrb[30].mxu1 }
 0x136   : > { %v2665_v25 = vpop.f32.mrb[31].mxu1 }
 0x137   : > { %v959_v26 = vadd.f32 %v934_v15, %v756_v22 }
 0x13a   : > { %v736_v29 = vpop.f32.mrb[32].mxu0 }
 0x13b   : > { %v757_v30 = vadd.f32 %v736_v29, %v578_v38  ;;  %v2632_v19 = vpop.f32.mrb[33].mxu0  ;;  %v939_v31 = vpop.f32.mrb[32].mxu1 }
 0x13c   : > { %v739_v32 = vpop.f32.mrb[34].mxu0  ;;  %v2668_v34 = vpop.f32.mrb[33].mxu1 }
 0x13d   : > { %v758_v35 = vadd.f32 %v739_v32, %v581_v43  ;;  %v960_v27 = vadd.f32 %v939_v31, %v757_v30  ;;  %v2633_v37 = vpop.f32.mrb[35].mxu0  ;;  %v942_v28 = vpop.f32.mrb[34].mxu1 }
 0x13e   : > { %v2669_v39 = vpop.f32.mrb[35].mxu1 }
 0x13f   : > { %v961_v40 = vadd.f32 %v942_v28, %v758_v35 }
 0x142   : > { %v744_v41 = vpop.f32.mrb[36].mxu0 }
 0x143   : > { %v759_v42 = vadd.f32 %v744_v41, %v586_v49  ;;  %v2636_v33 = vpop.f32.mrb[37].mxu0  ;;  %v947_v44 = vpop.f32.mrb[36].mxu1 }
 0x144   : > { %v747_v46 = vpop.f32.mrb[38].mxu0  ;;  %v2672_v47 = vpop.f32.mrb[37].mxu1 }
 0x145   : > { %v760_v48 = vadd.f32 %v747_v46, %v589_v54  ;;  %v962_v36 = vadd.f32 %v947_v44, %v759_v42  ;;  %v2637_v50 = vpop.f32.mrb[39].mxu0  ;;  %v950_v38 = vpop.f32.mrb[38].mxu1 }
 0x146   : > { %v2673_v52 = vpop.f32.mrb[39].mxu1 }
 0x147   : > { %v963_v53 = vadd.f32 %v950_v38, %v760_v48 }
 0x14a   : > { %v1126_v55 = vpop.f32.mrb[40].mxu0 }
 0x14b   : > { %v1165_v56 = vadd.f32 %v1126_v55, %v954_v62  ;;  %v2692_v43 = vpop.f32.mrb[41].mxu0  ;;  %v1295_v57 = vpop.f32.mrb[40].mxu1 }
 0x14c   : > { %v1129_v58 = vpop.f32.mrb[42].mxu0  ;;  %v2728_v59 = vpop.f32.mrb[41].mxu1 }
 0x14d   : > { %v1166_v60 = vadd.f32 %v1129_v58, %v955_v2  ;;  %v1334_v61 = vadd.f32 %v1295_v57, %v1165_v56  ;;  %v2693_v45 = vpop.f32.mrb[43].mxu0  ;;  %v1298_v49 = vpop.f32.mrb[42].mxu1 }
 0x14e   : > { %v2729_v63 = vpop.f32.mrb[43].mxu1 }
 0x14f   : > { %v1335_v0 = vadd.f32 %v1298_v49, %v1166_v60 }
 0x152   : > { %v1134_v51 = vpop.f32.mrb[44].mxu0 }
 0x153   : > { %v1167_v3 = vadd.f32 %v1134_v51, %v956_v12  ;;  %v2696_v54 = vpop.f32.mrb[45].mxu0  ;;  %v1303_v5 = vpop.f32.mrb[44].mxu1 }
 0x154   : > { %v1137_v6 = vpop.f32.mrb[46].mxu0  ;;  %v2732_v7 = vpop.f32.mrb[45].mxu1 }
 0x155   : > { %v1168_v4 = vadd.f32 %v1137_v6, %v957_v16  ;;  %v1336_v9 = vadd.f32 %v1303_v5, %v1167_v3  ;;  %v2697_v11 = vpop.f32.mrb[47].mxu0  ;;  %v1306_v62 = vpop.f32.mrb[46].mxu1 }
 0x156   : > { %v2733_v10 = vpop.f32.mrb[47].mxu1 }
 0x157   : > { %v1337_v8 = vadd.f32 %v1306_v62, %v1168_v4 }
 0x15a   : > { %v1142_v14 = vpop.f32.mrb[48].mxu0 }
 0x15b   : > { %v1169_v17 = vadd.f32 %v1142_v14, %v958_v23  ;;  %v2700_v2 = vpop.f32.mrb[49].mxu0  ;;  %v1311_v18 = vpop.f32.mrb[48].mxu1 }
 0x15c   : > { %v1145_v13 = vpop.f32.mrb[50].mxu0  ;;  %v2736_v20 = vpop.f32.mrb[49].mxu1 }
 0x15d   : > { %v1170_v21 = vadd.f32 %v1145_v13, %v959_v26  ;;  %v1338_v1 = vadd.f32 %v1311_v18, %v1169_v17  ;;  %v2701_v22 = vpop.f32.mrb[51].mxu0  ;;  %v1314_v12 = vpop.f32.mrb[50].mxu1 }
 0x15e   : > { %v2737_v24 = vpop.f32.mrb[51].mxu1 }
 0x15f   : > { %v1339_v15 = vadd.f32 %v1314_v12, %v1170_v21 }
 0x162   : > { %v1150_v25 = vpop.f32.mrb[52].mxu0 }
 0x163   : > { %v1171_v29 = vadd.f32 %v1150_v25, %v960_v27  ;;  %v2704_v16 = vpop.f32.mrb[53].mxu0  ;;  %v1319_v30 = vpop.f32.mrb[52].mxu1 }
 0x164   : > { %v1153_v19 = vpop.f32.mrb[54].mxu0  ;;  %v2740_v31 = vpop.f32.mrb[53].mxu1 }
 0x165   : > { %v1172_v32 = vadd.f32 %v1153_v19, %v961_v40  ;;  %v1340_v34 = vadd.f32 %v1319_v30, %v1171_v29  ;;  %v2705_v35 = vpop.f32.mrb[55].mxu0  ;;  %v1322_v23 = vpop.f32.mrb[54].mxu1 }
 0x166   : > { %v2741_v37 = vpop.f32.mrb[55].mxu1 }
 0x167   : > { %v1341_v28 = vadd.f32 %v1322_v23, %v1172_v32 }
 0x16a   : > { %v1158_v39 = vpop.f32.mrb[56].mxu0 }
 0x16b   : > { %v1173_v41 = vadd.f32 %v1158_v39, %v962_v36  ;;  %v2708_v26 = vpop.f32.mrb[57].mxu0  ;;  %v1327_v42 = vpop.f32.mrb[56].mxu1 }
 0x16c   : > { %v1161_v33 = vpop.f32.mrb[58].mxu0  ;;  %v2744_v44 = vpop.f32.mrb[57].mxu1 }
 0x16d   : > { %v1174_v46 = vadd.f32 %v1161_v33, %v963_v53  ;;  %v1342_v47 = vadd.f32 %v1327_v42, %v1173_v41  ;;  %v2709_v48 = vpop.f32.mrb[59].mxu0  ;;  %v1330_v27 = vpop.f32.mrb[58].mxu1 }
 0x16e   : > { %v2745_v50 = vpop.f32.mrb[59].mxu1 }
 0x16f   : > { %v1343_v38 = vadd.f32 %v1330_v27, %v1174_v46 }
 0x172   : > { %v1498_v52 = vpop.f32.mrb[60].mxu0 }
 0x173   : > { %v1537_v55 = vadd.f32 %v1498_v52, %v1334_v61  ;;  %v2764_v40 = vpop.f32.mrb[61].mxu0  ;;  %v1709_v56 = vpop.f32.mrb[60].mxu1 }
 0x174   : > { %v1501_v43 = vpop.f32.mrb[62].mxu0  ;;  %v2800_v57 = vpop.f32.mrb[61].mxu1 }
 0x175   : > { %v1538_v58 = vadd.f32 %v1501_v43, %v1335_v0  ;;  %v1748_v59 = vadd.f32 %v1709_v56, %v1537_v55  ;;  %v2765_v60 = vpop.f32.mrb[63].mxu0  ;;  %v1712_v36 = vpop.f32.mrb[62].mxu1 }
 0x176   : > { %v2801_v45 = vpop.f32.mrb[63].mxu1 }
 0x177   : > { %v1749_v49 = vadd.f32 %v1712_v36, %v1538_v58 }
 0x17a   : > { %v1506_v63 = vpop.f32.mrb[64].mxu0 }
 0x17b   : > { %v1539_v51 = vadd.f32 %v1506_v63, %v1336_v9  ;;  %v2768_v53 = vpop.f32.mrb[65].mxu0  ;;  %v1717_v3 = vpop.f32.mrb[64].mxu1 }
 0x17c   : > { %v1509_v54 = vpop.f32.mrb[66].mxu0  ;;  %v2804_v5 = vpop.f32.mrb[65].mxu1 }
 0x17d   : > { %v1540_v6 = vadd.f32 %v1509_v54, %v1337_v8  ;;  %v3615_v7 = vadd.f32 %v1717_v3, %v1539_v51  ;;  %v2769_v61 = vpop.f32.mrb[67].mxu0  ;;  %v1720_v4 = vpop.f32.mrb[66].mxu1 }
 0x17e   : > { %v2805_v11 = vpop.f32.mrb[67].mxu1 }
 0x17f   : > { %v3617_v62 = vadd.f32 %v1720_v4, %v1540_v6 }
 0x182   : > { %v1514_v0 = vpop.f32.mrb[68].mxu0 }
 0x183   : > { %v1541_v10 = vadd.f32 %v1514_v0, %v1338_v1  ;;  %v2772_v14 = vpop.f32.mrb[69].mxu0  ;;  %v1725_v17 = vpop.f32.mrb[68].mxu1 }
 0x184   : > { %v1517_v2 = vpop.f32.mrb[70].mxu0  ;;  %v2808_v18 = vpop.f32.mrb[69].mxu1 }
 0x185   : > { %v1542_v13 = vadd.f32 %v1517_v2, %v1339_v15  ;;  %v3619_v9 = vadd.f32 %v1725_v17, %v1541_v10  ;;  %v2773_v20 = vpop.f32.mrb[71].mxu0  ;;  %v1728_v21 = vpop.f32.mrb[70].mxu1 }
 0x186   : > { %v2809_v22 = vpop.f32.mrb[71].mxu1 }
 0x187   : > { %v3621_v8 = vadd.f32 %v1728_v21, %v1542_v13 }
 0x18a   : > { %v1522_v12 = vpop.f32.mrb[72].mxu0 }
 0x18b   : > { %v1543_v24 = vadd.f32 %v1522_v12, %v1340_v34  ;;  %v2776_v25 = vpop.f32.mrb[73].mxu0  ;;  %v1733_v29 = vpop.f32.mrb[72].mxu1 }
 0x18c   : > { %v1525_v16 = vpop.f32.mrb[74].mxu0  ;;  %v2812_v30 = vpop.f32.mrb[73].mxu1 }
 0x18d   : > { %v1544_v19 = vadd.f32 %v1525_v16, %v1341_v28  ;;  %v1754_v1 = vadd.f32 %v1733_v29, %v1543_v24  ;;  %v2777_v31 = vpop.f32.mrb[75].mxu0  ;;  %v1736_v32 = vpop.f32.mrb[74].mxu1  ;;  %v3626_v28 = vld [vmem:[%s3664_s2] ss:$0 sm:$0xff] }
 0x18e   : > { %v2813_v35 = vpop.f32.mrb[75].mxu1 }
 0x18f   : > { %v1755_v23 = vadd.f32 %v1736_v32, %v1544_v19 }
 0x192   : > { %v1530_v15 = vpop.f32.mrb[76].mxu0 }
 0x193   : > { %v1545_v37 = vadd.f32 %v1530_v15, %v1342_v47  ;;  %v2780_v39 = vpop.f32.mrb[77].mxu0  ;;  %v1741_v41 = vpop.f32.mrb[76].mxu1 }
 0x194   : > { %v1533_v26 = vpop.f32.mrb[78].mxu0  ;;  %v2816_v42 = vpop.f32.mrb[77].mxu1 }
 0x195   : > { %v1546_v33 = vadd.f32 %v1533_v26, %v1343_v38  ;;  %v1756_v44 = vadd.f32 %v1741_v41, %v1545_v37  ;;  %v2781_v46 = vpop.f32.mrb[79].mxu0  ;;  %v1744_v34 = vpop.f32.mrb[78].mxu1 }
 0x196   : > { %v2817_v48 = vpop.f32.mrb[79].mxu1 }
 0x197   : > { %v1757_v27 = vadd.f32 %v1744_v34, %v1546_v33 }
 0x19a   : > { %v1878_v50 = vpop.f32.mrb[80].mxu0 }
 0x19b   : > { %v1917_v52 = vadd.f32 %v1878_v50, %v1748_v59  ;;  %v1902_v55 = vpop.f32.mrb[80].mxu1  ;;  %v2836_v47 = vpop.f32.mrb[81].mxu0 }
 0x19c   : > { %v1923_v40 = vadd.f32 %v1902_v55, %v1754_v1  ;;  %v2848_v56 = vpop.f32.mrb[81].mxu1  ;;  %v1881_v43 = vpop.f32.mrb[82].mxu0 }
 0x19d   : > { %v1934_v38 = vadd.f32 %v3626_v28, %v1917_v52  ;;  %v1918_v57 = vadd.f32 %v1881_v43, %v1749_v49  ;;  %v1905_v58 = vpop.f32.mrb[82].mxu1  ;;  %v2837_v60 = vpop.f32.mrb[83].mxu0 }
 0x19e   : > { %v1940_v36 = vadd.f32 %v3626_v28, %v1923_v40  ;;  %v1924_v45 = vadd.f32 %v1905_v58, %v1755_v23  ;;  %v2849_v63 = vpop.f32.mrb[83].mxu1 }
 0x19f   : > { %v1954_v51 = vmul.f32 0.25, %v1934_v38  ;;  %v1935_v53 = vadd.f32 %v3626_v28, %v1918_v57  ;;  %vm1944_vm7 = vcmp.ge.f32.partialorder %v1934_v38, 0.0 }
 0x1a0   : > { %v1960_v59 = vmul.f32 0.25, %v1940_v36  ;;  %v1941_v3 = vadd.f32 %v3626_v28, %v1924_v45  ;;  %vm1950_vm8 = vcmp.ge.f32.partialorder %v1940_v36, 0.0 }
 0x1a1   : > { %vm1945_vm9 = vcmp.ge.f32.partialorder %v1935_v53, 0.0  ;;  %v1955_v54 = vmul.f32 0.25, %v1935_v53  ;;  %v1964_v6 = vsel %vm1944_vm7, %v1934_v38, %v1954_v51 }
 0x1a2   : > { %vm1951_vm10 = vcmp.ge.f32.partialorder %v1941_v3, 0.0  ;;  %v1961_v5 = vmul.f32 0.25, %v1941_v3  ;;  %v1886_v49 = vpop.f32.mrb[84].mxu0  ;;  %v1970_v10 = vsel %vm1950_vm8, %v1940_v36, %v1960_v59 }
 0x1a3   : > { %v1965_v61 = vsel %vm1945_vm9, %v1935_v53, %v1955_v54  ;;  %v1919_v4 = vadd.f32 %v1886_v49, %v3615_v7  ;;  %v1910_v11 = vpop.f32.mrb[84].mxu1  ;;  %v2840_v0 = vpop.f32.mrb[85].mxu0 }
 0x1a4   : > { %v2387_v14 = vpack.c.bf16 %v1965_v61, %v1964_v6  ;;  %v1971_v17 = vsel %vm1951_vm10, %v1941_v3, %v1961_v5  ;;  %v1925_v2 = vadd.f32 %v1910_v11, %v1756_v44  ;;  %v2852_v18 = vpop.f32.mrb[85].mxu1  ;;  %v1889_v13 = vpop.f32.mrb[86].mxu0 }
 0x1a5   : > { %v2402_v20 = vpack.c.bf16 %v1971_v17, %v1970_v10  ;;  %v1936_v21 = vadd.f32 %v3626_v28, %v1919_v4  ;;  %v1920_v22 = vadd.f32 %v1889_v13, %v3617_v62  ;;  %v1913_v12 = vpop.f32.mrb[86].mxu1  ;;  %v2841_v24 = vpop.f32.mrb[87].mxu0 }
 0x1a6   : > { %2388 = vst [vmem:[%s3636_s9] sm:$0xff] %v2387_v14   ;;  %v1942_v25 = vadd.f32 %v3626_v28, %v1925_v2  ;;  %v1926_v7 = vadd.f32 %v1913_v12, %v1757_v27  ;;  %v2853_v29 = vpop.f32.mrb[87].mxu1 }
 0x1a7   : > { %2411 = vst [vmem:[%s3636_s9 + $0x18] sm:$0xff] %v2402_v20   ;;  %v1956_v16 = vmul.f32 0.25, %v1936_v21  ;;  %v1937_v30 = vadd.f32 %v3626_v28, %v1920_v22  ;;  %vm1946_vm11 = vcmp.ge.f32.partialorder %v1936_v21, 0.0 }
 0x1a8   : > { %v1962_v19 = vmul.f32 0.25, %v1942_v25  ;;  %v1943_v1 = vadd.f32 %v3626_v28, %v1926_v7  ;;  %vm1952_vm12 = vcmp.ge.f32.partialorder %v1942_v25, 0.0 }
 0x1a9   : > { %vm1947_vm13 = vcmp.ge.f32.partialorder %v1937_v30, 0.0  ;;  %v1957_v31 = vmul.f32 0.25, %v1937_v30  ;;  %v1966_v35 = vsel %vm1946_vm11, %v1936_v21, %v1956_v16 }
 0x1aa   : > { %vm1953_vm14 = vcmp.ge.f32.partialorder %v1943_v1, 0.0  ;;  %v1963_v62 = vmul.f32 0.25, %v1943_v1  ;;  %v1894_v32 = vpop.f32.mrb[88].mxu0  ;;  %v1972_v39 = vsel %vm1952_vm12, %v1942_v25, %v1962_v19 }
 0x1ab   : > { %v1967_v23 = vsel %vm1947_vm13, %v1937_v30, %v1957_v31  ;;  %v1921_v15 = vadd.f32 %v1894_v32, %v3619_v9  ;;  %v2844_v37 = vpop.f32.mrb[89].mxu0 }
 0x1ac   : > { %v2392_v41 = vpack.c.bf16 %v1967_v23, %v1966_v35  ;;  %v1973_v26 = vsel %vm1953_vm14, %v1943_v1, %v1963_v62  ;;  %v1897_v42 = vpop.f32.mrb[90].mxu0 }
 0x1ad   : > { %v2407_v33 = vpack.c.bf16 %v1973_v26, %v1972_v39  ;;  %v1938_v44 = vadd.f32 %v3626_v28, %v1921_v15  ;;  %v1922_v46 = vadd.f32 %v1897_v42, %v3621_v8  ;;  %v2845_v34 = vpop.f32.mrb[91].mxu0 }
 0x1ae   : > { %2409 = vst [vmem:[%s3636_s9 + $0x8] sm:$0xff] %v2392_v41  }
 0x1af   : > { %2412 = vst [vmem:[%s3636_s9 + $0x20] sm:$0xff] %v2407_v33   ;;  %v1958_v48 = vmul.f32 0.25, %v1938_v44  ;;  %v1939_v27 = vadd.f32 %v3626_v28, %v1922_v46  ;;  %vm1948_vm15 = vcmp.ge.f32.partialorder %v1938_v44, 0.0 }
 0x1b1   : > { %vm1949_vm0 = vcmp.ge.f32.partialorder %v1939_v27, 0.0  ;;  %v1959_v9 = vmul.f32 0.25, %v1939_v27  ;;  %v1968_v50 = vsel %vm1948_vm15, %v1938_v44, %v1958_v48 }
 0x1b3   : > { %v1969_v52 = vsel %vm1949_vm0, %v1939_v27, %v1959_v9 }
 0x1b4   : > { %v2397_v55 = vpack.c.bf16 %v1969_v52, %v1968_v50 }
 0x1b6   : > { %2410 = vst [vmem:[%s3636_s9 + $0x10] sm:$0xff] %v2397_v55  }
 0x1b7 PF: > { %s13_s14 = sadd.s32 1, %s3015_s14   ;;  %s3666_s12 = smov %s3011_s13 }
 0x1b8   : > { %p10_p5 = scmp.ge.s32.totalorder %s13_s14, 4   ;;  %s3667_s13 = smov %s3669_s15 }
 0x1ba   :  { %12 = sbr.rel (!%p10_p5) target bundleno = 2 (0x2), region = 76 }

// kernel: _lambda_.29
= control target key start
LH: loop header
LB: loop body
LE: loop exit
PB: predicated region body
PF: predicated region fallthrough
CT: control target
= control target key end

     0   :  { %s773_s15 = smov 0   ;;  %s775_s16 = smov 0   ;;  %s868_s0 = inlined_call_operand.vmem [shape: bf16[32,128], index: 0, kind: input, shape index: {}]   ;;  %s869_s1 = inlined_call_operand.vmem [shape: bf16[128,256], index: 1, kind: input, shape index: {}]   ;;  %s870_s2 = inlined_call_operand.vmem [shape: f32[1,256], index: 2, kind: input, shape index: {}]   ;;  %s871_s3 = inlined_call_operand.vmem [shape: bf16[32,256], index: 3, kind: input, shape index: {}]   ;;  %s872_s4 = inlined_call_operand.vmem [shape: bf16[32,256], index: 4, kind: output, shape index: {}]  }
   0x1   :  { %s777_s17 = smov 0  }
   0x2 LB: > { %s26_s18 = sadd.s32 1, %s741_s16  ;;  %p639_p0 = scmp.ge.s32.totalorder %s745_s17, 1  ;;  %s745_s17 = sphi %s777_s17, %s14_s17   ;;  %s741_s16 = sphi %s775_s16, %s874_s16   ;;  %s737_s15 = sphi %s773_s15, %s873_s15  }
   0x3   : > { %p28_p1 = scmp.ge.s32.totalorder %s26_s18, 2  ;;  %p217_p2 = scmp.lt.s32.totalorder %s745_s17, 3 }
   0x5   : > { %s876_s18 = smov (%p28_p1, %s26_s18), 0  ;;  %p218_p3 = pnand %p639_p0, %p217_p2 }
   0x6   : > { %v698_v0 = vld [vmem:[%s869_s1 + $0x4] ss:$8 sps:$4 sm:$0xff] (!%p218_p3)   ;;  %s640_s21 = sshll.u32 (!%p218_p3), %s737_s15, 1  ;;  %v700_v1 = vld [vmem:[%s869_s1] ss:$8 sps:$4 sm:$0xff] (!%p218_p3)   ;;  %v747_v2 = vmov (!%p218_p3), 0   ;;  %v329_v18 = vlaneseq (!%p218_p3) }
   0x7   : > { %221 = sbr.rel (%p218_p3) target bundleno = 264 (0x108), region = 36  ;;  %457 = vmatprep.mubr.bf16.mxu0 (!%p218_p3), %v747_v2  ;;  %p268_p4 = scmp.lt.s32.totalorder (!%p218_p3), %s640_s21, 3  ;;  %425 = vmatprep.subr.bf16.mxu0 (!%p218_p3), %v698_v0  ;;  %v701_v3 = vld [vmem:[%s869_s1 + $0x14] ss:$8 sps:$4 sm:$0xff] (!%p218_p3)   ;;  %v703_v4 = vld [vmem:[%s869_s1 + $0x10] ss:$8 sps:$4 sm:$0xff] (!%p218_p3)  }
   0x8   : > { %426 = vmatpush1.bf16.msra.mxu0 (!%p218_p3), %v700_v1  ;;  %v704_v5 = vld [vmem:[%s869_s1 + $0x24] ss:$8 sps:$4 sm:$0xff] (!%p218_p3)   ;;  %v706_v6 = vld [vmem:[%s869_s1 + $0x20] ss:$8 sps:$4 sm:$0xff] (!%p218_p3)   ;;  %v707_v7 = vld [vmem:[%s869_s1 + $0x34] ss:$8 sps:$4 sm:$0xff] (!%p218_p3)  }
   0x9   : > { %427 = vmatprep.subr.bf16.mxu0 (!%p218_p3), %v701_v3  ;;  %v709_v8 = vld [vmem:[%s869_s1 + $0x30] ss:$8 sps:$4 sm:$0xff] (!%p218_p3)   ;;  %v710_v9 = vld [vmem:[%s869_s1 + $0x44] ss:$8 sps:$4 sm:$0xff] (!%p218_p3)   ;;  %v712_v10 = vld [vmem:[%s869_s1 + $0x40] ss:$8 sps:$4 sm:$0xff] (!%p218_p3)  }
   0xa   : > { %v713_v11 = vld [vmem:[%s869_s1 + $0x54] ss:$8 sps:$4 sm:$0xff] (!%p218_p3)   ;;  %v715_v12 = vld [vmem:[%s869_s1 + $0x50] ss:$8 sps:$4 sm:$0xff] (!%p218_p3)   ;;  %v716_v13 = vld [vmem:[%s869_s1 + $0x64] ss:$8 sps:$4 sm:$0xff] (!%p218_p3)  }
   0xb   : > { %v718_v14 = vld [vmem:[%s869_s1 + $0x60] ss:$8 sps:$4 sm:$0xff] (!%p218_p3)   ;;  %v719_v15 = vld [vmem:[%s869_s1 + $0x74] ss:$8 sps:$4 sm:$0xff] (!%p218_p3)   ;;  %v721_v16 = vld [vmem:[%s869_s1 + $0x70] ss:$8 sps:$4 sm:$0xff] (!%p218_p3)  }
   0xc   : > { %428 = vmatpush1.bf16.msra.mxu0 (!%p218_p3), %v703_v4  ;;  %v330_v19 = vshrl.u32 (!%p218_p3), %v329_v18, 7  ;;  %v327_v21 = vld [vmem:[%s870_s2] sm:$0x3] (!%p218_p3) }
   0xd   : > { %429 = vmatprep.subr.bf16.mxu0 (!%p218_p3), %v704_v5 }
   0xe   : > { %s878_s21 = smov (!%p268_p4, %s640_s21), 3  ;;  %v331_v20 = vsub.s32 0, %v330_v19  ;;  %v335_v22 = vsub.s32 1, %v330_v19 }
   0xf   : > { %s641_s30 = sshll.u32 %s878_s21, 2  ;;  %s669_s8 = sshll.u32 %s878_s21, 3 }
  0x10   : > { %s271_s11 = scalar_lea.vmem %s868_s0, %s641_s30  ;;  %430 = vmatpush1.bf16.msra.mxu0 %v706_v6  ;;  %s293_s12 = scalar_lea.vmem %s871_s3, %s669_s8  ;;  %v332_v24 = vrot.slane %v327_v21, %v331_v20  ;;  %v336_v25 = vrot.slane %v327_v21, %v335_v22 }
  0x11   : > { %431 = vmatprep.subr.bf16.mxu0 %v707_v7  ;;  %v722_v17 = vld [vmem:[%s271_s11] sm:$0xff]   ;;  %v469_v26 = vld [vmem:[%s293_s12 + $0x8] sm:$0xff]  ;;  %s305_s19 = scalar_lea.vmem %s872_s4, %s669_s8 }
  0x12   : > { %v468_v23 = vld [vmem:[%s293_s12] sm:$0xff]  ;;  %v472_v32 = vunpack.c.l.bf16 %v469_v26  ;;  %v473_v35 = vunpack.c.h.bf16 %v469_v26 }
  0x13   : > { %v470_v27 = vunpack.c.l.bf16 %v468_v23  ;;  %v471_v29 = vunpack.c.h.bf16 %v468_v23 }
  0x14   : > { %432 = vmatpush1.bf16.msra.mxu0 %v709_v8 }
  0x15   : > { %433 = vmatprep.subr.bf16.mxu0 %v710_v9 }
  0x18   : > { %434 = vmatpush1.bf16.msra.mxu0 %v712_v10 }
  0x19   : > { %435 = vmatprep.subr.bf16.mxu0 %v713_v11 }
  0x1c   : > { %436 = vmatpush1.bf16.msra.mxu0 %v715_v12 }
  0x1d   : > { %437 = vmatprep.subr.bf16.mxu0 %v716_v13 }
  0x20   : > { %438 = vmatpush1.bf16.msra.mxu0 %v718_v14 }
  0x21   : > { %439 = vmatprep.subr.bf16.mxu0 %v719_v15 }
  0x24   : > { %440 = vmatpush1.bf16.msra.mxu0 %v721_v16 }
  0x27   : > { %458 = vmatmul.mubr.bf16.vlgmr.msra.gmra.mrb[0].mxu0 %v722_v17 }
  0xfa   : > { %v459_v28 = vpop.f32.mrb[0].mxu0 }
  0xfb   : > { %v460_v30 = vadd.f32 %v459_v28, %v332_v24  ;;  %v461_v31 = vpop.f32.mrb[1].mxu0 }
  0xfc   : > { %v462_v33 = vadd.f32 %v461_v31, %v336_v25  ;;  %v463_v34 = vpop.f32.mrb[2].mxu0 }
  0xfd   : > { %v474_v36 = vadd.f32 %v470_v27, %v460_v30  ;;  %v464_v37 = vadd.f32 %v463_v34, %v332_v24  ;;  %v465_v38 = vpop.f32.mrb[3].mxu0 }
  0xfe   : > { %v475_v39 = vadd.f32 %v471_v29, %v462_v33  ;;  %v466_v40 = vadd.f32 %v465_v38, %v336_v25 }
  0xff   : > { %vm478_vm0 = vcmp.ge.f32.partialorder %v474_v36, 0.0  ;;  %v482_v41 = vmul.f32 0.25, %v474_v36  ;;  %v476_v42 = vadd.f32 %v472_v32, %v464_v37 }
 0x100   : > { %vm479_vm1 = vcmp.ge.f32.partialorder %v475_v39, 0.0  ;;  %v483_v43 = vmul.f32 0.25, %v475_v39  ;;  %v477_v44 = vadd.f32 %v473_v35, %v466_v40 }
 0x101   : > { %v486_v45 = vsel %vm478_vm0, %v474_v36, %v482_v41  ;;  %vm480_vm2 = vcmp.ge.f32.partialorder %v476_v42, 0.0  ;;  %v484_v46 = vmul.f32 0.25, %v476_v42 }
 0x102   : > { %v487_v47 = vsel %vm479_vm1, %v475_v39, %v483_v43  ;;  %vm481_vm3 = vcmp.ge.f32.partialorder %v477_v44, 0.0  ;;  %v485_v48 = vmul.f32 0.25, %v477_v44 }
 0x103   : > { %v671_v49 = vpack.c.bf16 %v487_v47, %v486_v45  ;;  %v488_v50 = vsel %vm480_vm2, %v476_v42, %v484_v46 }
 0x104   : > { %v489_v51 = vsel %vm481_vm3, %v477_v44, %v485_v48 }
 0x105   : > { %502 = vst [vmem:[%s305_s19] sm:$0xff] %v671_v49  ;;  %v672_v52 = vpack.c.bf16 %v489_v51, %v488_v50 }
 0x107   : > { %503 = vst [vmem:[%s305_s19 + $0x8] sm:$0xff] %v672_v52 }
 0x108 PF: > { %s14_s17 = sadd.s32 1, %s745_s17   ;;  %s873_s15 = smov %s741_s16 }
 0x109   : > { %p11_p5 = scmp.ge.s32.totalorder %s14_s17, 4   ;;  %s874_s16 = smov %s876_s18 }
 0x10b   :  { %13 = sbr.rel (!%p11_p5) target bundleno = 2 (0x2), region = 75 }

// kernel: _lambda_.28
= control target key start
LH: loop header
LB: loop body
LE: loop exit
PB: predicated region body
PF: predicated region fallthrough
CT: control target
= control target key end

     0   :  { %s656_s12 = smov 0   ;;  %s658_s13 = smov 0   ;;  %s744_s0 = inlined_call_operand.vmem [shape: bf16[32,128], index: 0, kind: input, shape index: {}]   ;;  %s745_s1 = inlined_call_operand.vmem [shape: bf16[128,256], index: 1, kind: input, shape index: {}]   ;;  %s746_s2 = inlined_call_operand.vmem [shape: f32[1,256], index: 2, kind: input, shape index: {}]   ;;  %s747_s3 = inlined_call_operand.vmem [shape: bf16[32,256], index: 3, kind: output, shape index: {}]  }
   0x1   :  { %s660_s14 = smov 0  }
   0x2 LB: > { %s25_s15 = sadd.s32 1, %s629_s13  ;;  %p531_p0 = scmp.ge.s32.totalorder %s633_s14, 1  ;;  %s633_s14 = sphi %s660_s14, %s13_s14   ;;  %s629_s13 = sphi %s658_s13, %s749_s13   ;;  %s625_s12 = sphi %s656_s12, %s748_s12  }
   0x3   : > { %p27_p1 = scmp.ge.s32.totalorder %s25_s15, 2  ;;  %p173_p2 = scmp.lt.s32.totalorder %s633_s14, 3 }
   0x5   : > { %s751_s15 = smov (%p27_p1, %s25_s15), 0  ;;  %p174_p3 = pnand %p531_p0, %p173_p2 }
   0x6   : > { %v586_v0 = vld [vmem:[%s745_s1 + $0x4] ss:$8 sps:$4 sm:$0xff] (!%p174_p3)   ;;  %s532_s18 = sshll.u32 (!%p174_p3), %s625_s12, 1  ;;  %v588_v1 = vld [vmem:[%s745_s1] ss:$8 sps:$4 sm:$0xff] (!%p174_p3)   ;;  %v635_v2 = vmov (!%p174_p3), 0   ;;  %v261_v18 = vlaneseq (!%p174_p3) }
   0x7   : > { %177 = sbr.rel (%p174_p3) target bundleno = 259 (0x103), region = 32  ;;  %389 = vmatprep.mubr.bf16.mxu0 (!%p174_p3), %v635_v2  ;;  %p212_p4 = scmp.lt.s32.totalorder (!%p174_p3), %s532_s18, 3  ;;  %357 = vmatprep.subr.bf16.mxu0 (!%p174_p3), %v586_v0  ;;  %v589_v3 = vld [vmem:[%s745_s1 + $0x14] ss:$8 sps:$4 sm:$0xff] (!%p174_p3)   ;;  %v591_v4 = vld [vmem:[%s745_s1 + $0x10] ss:$8 sps:$4 sm:$0xff] (!%p174_p3)  }
   0x8   : > { %358 = vmatpush1.bf16.msra.mxu0 (!%p174_p3), %v588_v1  ;;  %v592_v5 = vld [vmem:[%s745_s1 + $0x24] ss:$8 sps:$4 sm:$0xff] (!%p174_p3)   ;;  %v594_v6 = vld [vmem:[%s745_s1 + $0x20] ss:$8 sps:$4 sm:$0xff] (!%p174_p3)   ;;  %v595_v7 = vld [vmem:[%s745_s1 + $0x34] ss:$8 sps:$4 sm:$0xff] (!%p174_p3)  }
   0x9   : > { %359 = vmatprep.subr.bf16.mxu0 (!%p174_p3), %v589_v3  ;;  %v597_v8 = vld [vmem:[%s745_s1 + $0x30] ss:$8 sps:$4 sm:$0xff] (!%p174_p3)   ;;  %v598_v9 = vld [vmem:[%s745_s1 + $0x44] ss:$8 sps:$4 sm:$0xff] (!%p174_p3)   ;;  %v600_v10 = vld [vmem:[%s745_s1 + $0x40] ss:$8 sps:$4 sm:$0xff] (!%p174_p3)  }
   0xa   : > { %v601_v11 = vld [vmem:[%s745_s1 + $0x54] ss:$8 sps:$4 sm:$0xff] (!%p174_p3)   ;;  %v603_v12 = vld [vmem:[%s745_s1 + $0x50] ss:$8 sps:$4 sm:$0xff] (!%p174_p3)   ;;  %v604_v13 = vld [vmem:[%s745_s1 + $0x64] ss:$8 sps:$4 sm:$0xff] (!%p174_p3)  }
   0xb   : > { %v606_v14 = vld [vmem:[%s745_s1 + $0x60] ss:$8 sps:$4 sm:$0xff] (!%p174_p3)   ;;  %v607_v15 = vld [vmem:[%s745_s1 + $0x74] ss:$8 sps:$4 sm:$0xff] (!%p174_p3)   ;;  %v609_v16 = vld [vmem:[%s745_s1 + $0x70] ss:$8 sps:$4 sm:$0xff] (!%p174_p3)  }
   0xc   : > { %360 = vmatpush1.bf16.msra.mxu0 (!%p174_p3), %v591_v4  ;;  %v262_v19 = vshrl.u32 (!%p174_p3), %v261_v18, 7  ;;  %v259_v21 = vld [vmem:[%s746_s2] sm:$0x3] (!%p174_p3) }
   0xd   : > { %361 = vmatprep.subr.bf16.mxu0 (!%p174_p3), %v592_v5 }
   0xe   : > { %s753_s18 = smov (!%p212_p4, %s532_s18), 3  ;;  %v263_v20 = vsub.s32 0, %v262_v19  ;;  %v267_v22 = vsub.s32 1, %v262_v19 }
   0xf   : > { %s533_s27 = sshll.u32 %s753_s18, 2  ;;  %s558_s5 = sshll.u32 %s753_s18, 3 }
  0x10   : > { %s215_s7 = scalar_lea.vmem %s744_s0, %s533_s27  ;;  %362 = vmatpush1.bf16.msra.mxu0 %v594_v6  ;;  %v264_v23 = vrot.slane %v259_v21, %v263_v20  ;;  %v268_v24 = vrot.slane %v259_v21, %v267_v22  ;;  %s237_s8 = scalar_lea.vmem %s747_s3, %s558_s5 }
  0x11   : > { %363 = vmatprep.subr.bf16.mxu0 %v595_v7  ;;  %v610_v17 = vld [vmem:[%s215_s7] sm:$0xff]  }
  0x14   : > { %364 = vmatpush1.bf16.msra.mxu0 %v597_v8 }
  0x15   : > { %365 = vmatprep.subr.bf16.mxu0 %v598_v9 }
  0x18   : > { %366 = vmatpush1.bf16.msra.mxu0 %v600_v10 }
  0x19   : > { %367 = vmatprep.subr.bf16.mxu0 %v601_v11 }
  0x1c   : > { %368 = vmatpush1.bf16.msra.mxu0 %v603_v12 }
  0x1d   : > { %369 = vmatprep.subr.bf16.mxu0 %v604_v13 }
  0x20   : > { %370 = vmatpush1.bf16.msra.mxu0 %v606_v14 }
  0x21   : > { %371 = vmatprep.subr.bf16.mxu0 %v607_v15 }
  0x24   : > { %372 = vmatpush1.bf16.msra.mxu0 %v609_v16 }
  0x27   : > { %390 = vmatmul.mubr.bf16.vlgmr.msra.gmra.mrb[0].mxu0 %v610_v17 }
  0xfa   : > { %v391_v25 = vpop.f32.mrb[0].mxu0 }
  0xfb   : > { %v392_v26 = vadd.f32 %v391_v25, %v264_v23  ;;  %v393_v27 = vpop.f32.mrb[1].mxu0 }
  0xfc   : > { %v394_v28 = vadd.f32 %v393_v27, %v268_v24  ;;  %v395_v29 = vpop.f32.mrb[2].mxu0 }
  0xfd   : > { %v396_v30 = vadd.f32 %v395_v29, %v264_v23  ;;  %v397_v31 = vpop.f32.mrb[3].mxu0 }
  0xfe   : > { %v559_v32 = vpack.c.bf16 %v394_v28, %v392_v26  ;;  %v398_v33 = vadd.f32 %v397_v31, %v268_v24 }
 0x100   : > { %412 = vst [vmem:[%s237_s8] sm:$0xff] %v559_v32  ;;  %v560_v34 = vpack.c.bf16 %v398_v33, %v396_v30 }
 0x102   : > { %413 = vst [vmem:[%s237_s8 + $0x8] sm:$0xff] %v560_v34 }
 0x103 PF: > { %s13_s14 = sadd.s32 1, %s633_s14   ;;  %s748_s12 = smov %s629_s13 }
 0x104   : > { %p10_p5 = scmp.ge.s32.totalorder %s13_s14, 4   ;;  %s749_s13 = smov %s751_s15 }
 0x106   :  { %12 = sbr.rel (!%p10_p5) target bundleno = 2 (0x2), region = 68 }

// kernel: _lambda_.27
= control target key start
LH: loop header
LB: loop body
LE: loop exit
PB: predicated region body
PF: predicated region fallthrough
CT: control target
= control target key end

     0   :  { %s1570_s12 = smov 0   ;;  %s1572_s13 = smov 0   ;;  %s1840_s0 = inlined_call_operand.vmem [shape: bf16[32,1152], index: 0, kind: input, shape index: {}]   ;;  %s1841_s1 = inlined_call_operand.vmem [shape: bf16[1152,128], index: 1, kind: input, shape index: {}]   ;;  %s1842_s2 = inlined_call_operand.vmem [shape: f32[1,128], index: 2, kind: input, shape index: {}]   ;;  %s1843_s3 = inlined_call_operand.vmem [shape: bf16[32,128], index: 3, kind: output, shape index: {}]  }
   0x1   :  { %s1574_s14 = smov 0  }
   0x2 LB: > { %s25_s15 = sadd.s32 1, %s1542_s13  ;;  %p1197_p0 = scmp.ge.s32.totalorder %s1546_s14, 1  ;;  %s1546_s14 = sphi %s1574_s14, %s13_s14   ;;  %s1542_s13 = sphi %s1572_s13, %s1845_s13   ;;  %s1538_s12 = sphi %s1570_s12, %s1844_s12  }
   0x3   : > { %p27_p1 = scmp.ge.s32.totalorder %s25_s15, 2  ;;  %p170_p2 = scmp.lt.s32.totalorder %s1546_s14, 3 }
   0x5   : > { %s1847_s15 = smov (%p27_p1, %s25_s15), 0  ;;  %p171_p3 = pnand %p1197_p0, %p170_p2 }
   0x6   : > { %v1439_v0 = vld [vmem:[%s1841_s1 + $0x40] sm:$0xff] (!%p171_p3)   ;;  %v1443_v4 = vld [vmem:[%s1841_s1 + $0x48] sm:$0xff] (!%p171_p3)   ;;  %v1447_v8 = vld [vmem:[%s1841_s1 + $0x50] sm:$0xff] (!%p171_p3)   ;;  %s1198_s21 = sshll.u32 (!%p171_p3), %s1538_s12, 1  ;;  %vm1549_vm0 = vmmov (!%p171_p3), 0  }
   0x7   : > { %174 = sbr.rel (%p171_p3) target bundleno = 325 (0x145), region = 32  ;;  %v1440_v1 = vld [vmem:[%s1841_s1] sm:$0xff] (!%p171_p3)   ;;  %1295 = vmatprep.subr.bf16.mxu0 (!%p171_p3), %v1439_v0  ;;  %v1444_v5 = vld [vmem:[%s1841_s1 + $0x8] sm:$0xff] (!%p171_p3)   ;;  %v1448_v9 = vld [vmem:[%s1841_s1 + $0x10] sm:$0xff] (!%p171_p3)   ;;  %p206_p4 = scmp.lt.s32.totalorder (!%p171_p3), %s1198_s21, 3 }
   0x8   : > { %v1441_v2 = vld [vmem:[%s1841_s1 + $0xc0] sm:$0xff] (!%p171_p3)   ;;  %1296 = vmatpush3.bf16.msra.mxu0 (!%p171_p3), %v1440_v1  ;;  %v1445_v6 = vld [vmem:[%s1841_s1 + $0xc8] sm:$0xff] (!%p171_p3)   ;;  %v1449_v10 = vld [vmem:[%s1841_s1 + $0xd0] sm:$0xff] (!%p171_p3)  }
   0x9   : > { %v1442_v3 = vld [vmem:[%s1841_s1 + $0x80] sm:$0xff] (!%p171_p3)   ;;  %1317 = vmatprep.subr.bf16.mxu1 (!%p171_p3), %v1441_v2  ;;  %1297 = vmatprep.subr.bf16.mxu0 (!%p171_p3), %v1443_v4  ;;  %v1446_v7 = vld [vmem:[%s1841_s1 + $0x88] sm:$0xff] (!%p171_p3)   ;;  %v1450_v11 = vld [vmem:[%s1841_s1 + $0x90] sm:$0xff] (!%p171_p3)  }
   0xa   : > { %1318 = vmatpush3.bf16.msra.mxu1 (!%p171_p3), %v1442_v3  ;;  %v1451_v12 = vld [vmem:[%s1841_s1 + $0x58] sm:$0xff] (!%p171_p3)   ;;  %v1455_v16 = vld [vmem:[%s1841_s1 + $0x60] sm:$0xff] (!%p171_p3)   ;;  %v1459_v20 = vld [vmem:[%s1841_s1 + $0x68] sm:$0xff] (!%p171_p3)  }
   0xb   : > { %1319 = vmatprep.subr.bf16.mxu1 (!%p171_p3), %v1445_v6  ;;  %v1452_v13 = vld [vmem:[%s1841_s1 + $0x18] sm:$0xff] (!%p171_p3)   ;;  %v1456_v17 = vld [vmem:[%s1841_s1 + $0x20] sm:$0xff] (!%p171_p3)   ;;  %v1460_v21 = vld [vmem:[%s1841_s1 + $0x28] sm:$0xff] (!%p171_p3)   ;;  %v1548_v6 = vmov (!%p171_p3), 0.0  }
   0xc   : > { %1298 = vmatpush3.bf16.msra.mxu0 (!%p171_p3), %v1444_v5  ;;  %v1453_v14 = vld [vmem:[%s1841_s1 + $0xd8] sm:$0xff] (!%p171_p3)   ;;  %v1457_v18 = vld [vmem:[%s1841_s1 + $0xe0] sm:$0xff] (!%p171_p3)   ;;  %v1461_v22 = vld [vmem:[%s1841_s1 + $0xe8] sm:$0xff] (!%p171_p3)  }
   0xd   : > { %1299 = vmatprep.subr.bf16.mxu0 (!%p171_p3), %v1447_v8  ;;  %v1454_v15 = vld [vmem:[%s1841_s1 + $0x98] sm:$0xff] (!%p171_p3)   ;;  %v1458_v19 = vld [vmem:[%s1841_s1 + $0xa0] sm:$0xff] (!%p171_p3)   ;;  %v1462_v23 = vld [vmem:[%s1841_s1 + $0xa8] sm:$0xff] (!%p171_p3)  }
   0xe   : > { %1320 = vmatpush3.bf16.msra.mxu1 %v1446_v7  ;;  %s1849_s21 = smov (!%p206_p4, %s1198_s21), 3  ;;  %v1463_v24 = vld [vmem:[%s1841_s1 + $0x70] sm:$0xff]   ;;  %v1467_v28 = vld [vmem:[%s1841_s1 + $0x78] sm:$0xff]   ;;  %v1474_v34 = vld [vmem:[%s1841_s1 + $0x140] sm:$0xff]  }
   0xf   : > { %1321 = vmatprep.subr.bf16.mxu1 %v1449_v10  ;;  %s1412_s20 = smul.u32 36, %s1849_s21  ;;  %v1464_v25 = vld [vmem:[%s1841_s1 + $0x30] sm:$0xff]   ;;  %v1468_v29 = vld [vmem:[%s1841_s1 + $0x38] sm:$0xff]   ;;  %v1478_v37 = vld [vmem:[%s1841_s1 + $0x100] sm:$0xff]  }
  0x10   : > { %1300 = vmatpush3.bf16.msra.mxu0 %v1448_v9  ;;  %v1465_v26 = vld [vmem:[%s1841_s1 + $0xf0] sm:$0xff]   ;;  %v1469_v30 = vld [vmem:[%s1841_s1 + $0xf8] sm:$0xff]   ;;  %v1479_v38 = vld [vmem:[%s1841_s1 + $0x1c0] sm:$0xff]  }
  0x11   : > { %1301 = vmatprep.subr.bf16.mxu0 %v1451_v12  ;;  %v1466_v27 = vld [vmem:[%s1841_s1 + $0xb0] sm:$0xff]   ;;  %s1684_s4 = scalar_lea.vmem %s1840_s0, %s1412_s20  ;;  %v1473_v33 = vld [vmem:[%s1841_s1 + $0xb8] sm:$0xff]   ;;  %v1480_v39 = vld [vmem:[%s1841_s1 + $0x180] sm:$0xff]  }
  0x12   : > { %1322 = vmatpush3.bf16.msra.mxu1 %v1450_v11  ;;  %v1470_v31 = vld [vmem:[%s1684_s4] ss:$36 sps:$4 sm:$0xff]   ;;  %v1475_v35 = vld [vmem:[%s1684_s4 + $0x8] ss:$36 sps:$4 sm:$0xff]   ;;  %v1485_v44 = vld [vmem:[%s1841_s1 + $0x150] sm:$0xff]  }
  0x13   : > { %1323 = vmatprep.subr.bf16.mxu1 %v1453_v14  ;;  %v1472_v32 = vld [vmem:[%s1684_s4 + $0x4] ss:$36 sps:$4 sm:$0xff]   ;;  %v1477_v36 = vld [vmem:[%s1684_s4 + $0xc] ss:$36 sps:$4 sm:$0xff]   ;;  %v1489_v48 = vld [vmem:[%s1841_s1 + $0x158] sm:$0xff]  }
  0x14   : > { %1302 = vmatpush3.bf16.msra.mxu0 %v1452_v13  ;;  %900 = vmatprep.mubr.bf16.mxu0 %v1472_v32  ;;  %v1481_v40 = vld [vmem:[%s1841_s1 + $0x148] sm:$0xff]   ;;  %v1486_v45 = vld [vmem:[%s1841_s1 + $0x110] sm:$0xff]   ;;  %v1490_v49 = vld [vmem:[%s1841_s1 + $0x118] sm:$0xff]  }
  0x15   : > { %1303 = vmatprep.subr.bf16.mxu0 %v1455_v16  ;;  %941 = vmatprep.mubr.bf16.mxu1 %v1477_v36  ;;  %v1482_v41 = vld [vmem:[%s1841_s1 + $0x108] sm:$0xff]   ;;  %v1487_v46 = vld [vmem:[%s1841_s1 + $0x1d0] sm:$0xff]   ;;  %v1491_v50 = vld [vmem:[%s1841_s1 + $0x1d8] sm:$0xff]  }
  0x16   : > { %1324 = vmatpush3.bf16.msra.mxu1 %v1454_v15  ;;  %v1483_v42 = vld [vmem:[%s1841_s1 + $0x1c8] sm:$0xff]   ;;  %v1488_v47 = vld [vmem:[%s1841_s1 + $0x190] sm:$0xff]   ;;  %v1492_v51 = vld [vmem:[%s1841_s1 + $0x198] sm:$0xff]  }
  0x17   : > { %1325 = vmatprep.subr.bf16.mxu1 %v1457_v18  ;;  %v1484_v43 = vld [vmem:[%s1841_s1 + $0x188] sm:$0xff]   ;;  %v1493_v52 = vld [vmem:[%s1841_s1 + $0x160] sm:$0xff]   ;;  %v1501_v60 = vld [vmem:[%s1841_s1 + $0x170] sm:$0xff]  }
  0x18   : > { %1304 = vmatpush3.bf16.msra.mxu0 %v1456_v17  ;;  %v1494_v53 = vld [vmem:[%s1841_s1 + $0x120] sm:$0xff]   ;;  %v1497_v56 = vld [vmem:[%s1841_s1 + $0x168] sm:$0xff]   ;;  %v1502_v61 = vld [vmem:[%s1841_s1 + $0x130] sm:$0xff]  }
  0x19   : > { %1305 = vmatprep.subr.bf16.mxu0 %v1459_v20  ;;  %v1495_v54 = vld [vmem:[%s1841_s1 + $0x1e0] sm:$0xff]   ;;  %v1498_v57 = vld [vmem:[%s1841_s1 + $0x128] sm:$0xff]   ;;  %v1503_v62 = vld [vmem:[%s1841_s1 + $0x1f0] sm:$0xff]  }
  0x1a   : > { %1326 = vmatpush3.bf16.msra.mxu1 %v1458_v19  ;;  %v1496_v55 = vld [vmem:[%s1841_s1 + $0x1a0] sm:$0xff]   ;;  %v1499_v58 = vld [vmem:[%s1841_s1 + $0x1e8] sm:$0xff]   ;;  %v1504_v63 = vld [vmem:[%s1841_s1 + $0x1b0] sm:$0xff]  }
  0x1b   : > { %1327 = vmatprep.subr.bf16.mxu1 %v1461_v22  ;;  %v1500_v59 = vld [vmem:[%s1841_s1 + $0x1a8] sm:$0xff]   ;;  %v1505_v0 = vld [vmem:[%s1841_s1 + $0x178] sm:$0xff]   ;;  %v1508_v3 = vld [vmem:[%s1684_s4 + $0x10] ss:$36 sps:$4 sm:$0xff]  }
  0x1c   : > { %1306 = vmatpush3.bf16.msra.mxu0 %v1460_v21  ;;  %v1506_v1 = vld [vmem:[%s1841_s1 + $0x138] sm:$0xff]   ;;  %v1515_v9 = vld [vmem:[%s1841_s1 + $0x200] sm:$0xff]   ;;  %v1516_v10 = vld [vmem:[%s1841_s1 + $0x208] sm:$0xff]  }
  0x1d   : > { %1307 = vmatprep.subr.bf16.mxu0 %v1463_v24  ;;  %v1507_v2 = vld [vmem:[%s1841_s1 + $0x1f8] sm:$0xff]   ;;  %v1517_v11 = vld [vmem:[%s1841_s1 + $0x210] sm:$0xff]   ;;  %v1519_v13 = vld [vmem:[%s1841_s1 + $0x220] sm:$0xff]  }
  0x1e   : > { %1328 = vmatpush3.bf16.msra.mxu1 %v1462_v23  ;;  %v1510_v4 = vld [vmem:[%s1684_s4 + $0x14] ss:$36 sps:$4 sm:$0xff]   ;;  %v1514_v8 = vld [vmem:[%s1684_s4 + $0x1c] ss:$36 sps:$4 sm:$0xff]   ;;  %v1520_v14 = vld [vmem:[%s1841_s1 + $0x228] sm:$0xff]  }
  0x1f   : > { %1329 = vmatprep.subr.bf16.mxu1 %v1465_v26  ;;  %v1511_v5 = vld [vmem:[%s1841_s1 + $0x1b8] sm:$0xff]   ;;  %v1521_v15 = vld [vmem:[%s1841_s1 + $0x230] sm:$0xff]   ;;  %v1523_v17 = vld [vmem:[%s1684_s4 + $0x20] ss:$36 sps:$4 sm:$0xff]  }
  0x20   : > { %1308 = vmatpush3.bf16.msra.mxu0 %v1464_v25  ;;  %v1512_v7 = vld [vmem:[%s1684_s4 + $0x18] ss:$36 sps:$4 sm:$0xff]   ;;  %v1202_v19 = vld [vmem:[%s1842_s2] ss:$0 sm:$0xff]  ;;  %s1201_s4 = sshll.u32 %s1849_s21, 2 }
  0x21   : > { %1309 = vmatprep.subr.bf16.mxu0 %v1467_v28  ;;  %v1518_v12 = vld [vmem:[%s1841_s1 + $0x218] sm:$0xff]   ;;  %s226_s7 = scalar_lea.vmem %s1843_s3, %s1201_s4 }
  0x22   : > { %1330 = vmatpush3.bf16.msra.mxu1 %v1466_v27  ;;  %v1522_v16 = vld [vmem:[%s1841_s1 + $0x238] sm:$0xff]  }
  0x23   : > { %1331 = vmatprep.subr.bf16.mxu1 %v1469_v30 }
  0x24   : > { %1310 = vmatpush3.bf16.msra.mxu0 %v1468_v29 }
  0x25   : > { %1339 = vmatprep.subr.bf16.mxu0 %v1474_v34 }
  0x26   : > { %1332 = vmatpush3.bf16.msra.mxu1 %v1473_v33 }
  0x27   : > { %901 = vmatmul.mubr.bf16.vlgmr.msra.gmra.mrb[0].mxu0 %v1470_v31  ;;  %1361 = vmatprep.subr.bf16.mxu1 %v1479_v38 }
  0x28   : > { %1340 = vmatpush3.bf16.msra.mxu0 %v1478_v37  ;;  %982 = vmatprep.mubr.bf16.mxu0 %v1510_v4 }
  0x29   : > { %942 = vmatmul.mubr.bf16.vlgmr.msra.gmra.mrb[0].mxu1 %v1475_v35  ;;  %1341 = vmatprep.subr.bf16.mxu0 %v1481_v40 }
  0x2a   : > { %1362 = vmatpush3.bf16.msra.mxu1 %v1480_v39  ;;  %1023 = vmatprep.mubr.bf16.mxu1 %v1514_v8 }
  0x2b   : > { %1363 = vmatprep.subr.bf16.mxu1 %v1483_v42 }
  0x2c   : > { %1342 = vmatpush3.bf16.msra.mxu0 %v1482_v41 }
  0x2d   : > { %1343 = vmatprep.subr.bf16.mxu0 %v1485_v44 }
  0x2e   : > { %1364 = vmatpush3.bf16.msra.mxu1 %v1484_v43 }
  0x2f   : > { %1365 = vmatprep.subr.bf16.mxu1 %v1487_v46 }
  0x30   : > { %1344 = vmatpush3.bf16.msra.mxu0 %v1486_v45 }
  0x31   : > { %1345 = vmatprep.subr.bf16.mxu0 %v1489_v48 }
  0x32   : > { %1366 = vmatpush3.bf16.msra.mxu1 %v1488_v47 }
  0x33   : > { %1367 = vmatprep.subr.bf16.mxu1 %v1491_v50 }
  0x34   : > { %1346 = vmatpush3.bf16.msra.mxu0 %v1490_v49 }
  0x35   : > { %1347 = vmatprep.subr.bf16.mxu0 %v1493_v52 }
  0x36   : > { %1368 = vmatpush3.bf16.msra.mxu1 %v1492_v51 }
  0x37   : > { %1369 = vmatprep.subr.bf16.mxu1 %v1495_v54 }
  0x38   : > { %1348 = vmatpush3.bf16.msra.mxu0 %v1494_v53 }
  0x39   : > { %1349 = vmatprep.subr.bf16.mxu0 %v1497_v56 }
  0x3a   : > { %1370 = vmatpush3.bf16.msra.mxu1 %v1496_v55 }
  0x3b   : > { %1371 = vmatprep.subr.bf16.mxu1 %v1499_v58 }
  0x3c   : > { %1350 = vmatpush3.bf16.msra.mxu0 %v1498_v57 }
  0x3d   : > { %1351 = vmatprep.subr.bf16.mxu0 %v1501_v60 }
  0x3e   : > { %1372 = vmatpush3.bf16.msra.mxu1 %v1500_v59 }
  0x3f   : > { %1373 = vmatprep.subr.bf16.mxu1 %v1503_v62 }
  0x40   : > { %1352 = vmatpush3.bf16.msra.mxu0 %v1502_v61 }
  0x41   : > { %1353 = vmatprep.subr.bf16.mxu0 %v1505_v0 }
  0x42   : > { %1374 = vmatpush3.bf16.msra.mxu1 %v1504_v63 }
  0x43   : > { %1375 = vmatprep.subr.bf16.mxu1 %v1507_v2 }
  0x44   : > { %1354 = vmatpush3.bf16.msra.mxu0 %v1506_v1 }
  0x45   : > { %1392 = vmatprep.subr.bf16.mxu0 %v1548_v6 }
  0x46   : > { %1376 = vmatpush3.bf16.msra.mxu1 %v1511_v5 }
  0x47   : > { %983 = vmatmul.mubr.bf16.vlgmr.msra.gmra.mrb[4].mxu0 %v1508_v3 }
  0x48   : > { %1408 = vmatprep.mubr.msk.bf16.mxu0 %vm1549_vm0, %v1548_v6  ;;  %1393 = vmatpush3.bf16.msra.mxu0 %v1515_v9 }
  0x49   : > { %1024 = vmatmul.mubr.bf16.vlgmr.msra.gmra.mrb[4].mxu1 %v1512_v7  ;;  %1394 = vmatprep.subr.bf16.mxu0 %v1548_v6 }
  0x4c   : > { %1395 = vmatpush3.bf16.msra.mxu0 %v1516_v10 }
  0x4d   : > { %1396 = vmatprep.subr.bf16.mxu0 %v1548_v6 }
  0x50   : > { %1397 = vmatpush3.bf16.msra.mxu0 %v1517_v11 }
  0x51   : > { %1398 = vmatprep.subr.bf16.mxu0 %v1548_v6 }
  0x54   : > { %1399 = vmatpush3.bf16.msra.mxu0 %v1518_v12 }
  0x55   : > { %1400 = vmatprep.subr.bf16.mxu0 %v1548_v6 }
  0x58   : > { %1401 = vmatpush3.bf16.msra.mxu0 %v1519_v13 }
  0x59   : > { %1402 = vmatprep.subr.bf16.mxu0 %v1548_v6 }
  0x5c   : > { %1403 = vmatpush3.bf16.msra.mxu0 %v1520_v14 }
  0x5d   : > { %1404 = vmatprep.subr.bf16.mxu0 %v1548_v6 }
  0x60   : > { %1405 = vmatpush3.bf16.msra.mxu0 %v1521_v15 }
  0x61   : > { %1406 = vmatprep.subr.bf16.mxu0 %v1548_v6 }
  0x64   : > { %1407 = vmatpush3.bf16.msra.mxu0 %v1522_v16 }
  0x67   : > { %1409 = vmatmul.mubr.bf16.vlgmr.msra.gmra.mrb[8].mxu0 %v1523_v17 }
  0xfa   : > { %v1311_v18 = vpop.f32.mrb[0].mxu0 }
  0xfb   : > { %v1312_v20 = vpop.f32.mrb[1].mxu0 }
  0xfc   : > { %v1313_v21 = vadd.f32 %v1312_v20, %v1311_v18  ;;  %v1314_v22 = vpop.f32.mrb[2].mxu0  ;;  %v1333_v23 = vpop.f32.mrb[0].mxu1 }
  0xfd   : > { %v1315_v24 = vpop.f32.mrb[3].mxu0  ;;  %v1334_v27 = vpop.f32.mrb[1].mxu1 }
  0xfe   : > { %v903_v25 = vadd.f32 %v1313_v21, %v1202_v19  ;;  %v1316_v26 = vadd.f32 %v1315_v24, %v1314_v22  ;;  %v1335_v28 = vadd.f32 %v1334_v27, %v1333_v23  ;;  %v1336_v29 = vpop.f32.mrb[2].mxu1 }
  0xff   : > { %v1337_v31 = vpop.f32.mrb[3].mxu1 }
 0x100   : > { %v906_v30 = vadd.f32 %v1316_v26, %v1202_v19  ;;  %v944_v32 = vadd.f32 %v1335_v28, %v903_v25  ;;  %v1338_v33 = vadd.f32 %v1337_v31, %v1336_v29 }
 0x102   : > { %v947_v34 = vadd.f32 %v1338_v33, %v906_v30 }
 0x11a   : > { %v1355_v35 = vpop.f32.mrb[4].mxu0 }
 0x11b   : > { %v1356_v36 = vpop.f32.mrb[5].mxu0 }
 0x11c   : > { %v1357_v37 = vadd.f32 %v1356_v36, %v1355_v35  ;;  %v1358_v38 = vpop.f32.mrb[6].mxu0  ;;  %v1377_v39 = vpop.f32.mrb[4].mxu1 }
 0x11d   : > { %v1359_v40 = vpop.f32.mrb[7].mxu0  ;;  %v1378_v43 = vpop.f32.mrb[5].mxu1 }
 0x11e   : > { %v985_v41 = vadd.f32 %v1357_v37, %v944_v32  ;;  %v1360_v42 = vadd.f32 %v1359_v40, %v1358_v38  ;;  %v1379_v44 = vadd.f32 %v1378_v43, %v1377_v39  ;;  %v1380_v45 = vpop.f32.mrb[6].mxu1 }
 0x11f   : > { %v1381_v47 = vpop.f32.mrb[7].mxu1 }
 0x120   : > { %v988_v46 = vadd.f32 %v1360_v42, %v947_v34  ;;  %v1382_v48 = vadd.f32 %v1381_v47, %v1380_v45  ;;  %v1026_v49 = vadd.f32 %v1379_v44, %v985_v41 }
 0x122   : > { %v1029_v50 = vadd.f32 %v1382_v48, %v988_v46 }
 0x13a   : > { %v1066_v51 = vpop.f32.mrb[8].mxu0 }
 0x13b   : > { %v1067_v52 = vadd.f32 %v1066_v51, %v1026_v49  ;;  %v1410_v53 = vpop.f32.mrb[9].mxu0 }
 0x13c   : > { %v1069_v54 = vpop.f32.mrb[10].mxu0 }
 0x13d   : > { %v1075_v55 = vmul.f32 0.25, %v1067_v52  ;;  %v1070_v56 = vadd.f32 %v1069_v54, %v1029_v50  ;;  %v1411_v57 = vpop.f32.mrb[11].mxu0  ;;  %vm1073_vm1 = vcmp.ge.f32.partialorder %v1067_v52, 0.0 }
 0x13f   : > { %vm1074_vm2 = vcmp.ge.f32.partialorder %v1070_v56, 0.0  ;;  %v1076_v58 = vmul.f32 0.25, %v1070_v56  ;;  %v1077_v59 = vsel %vm1073_vm1, %v1067_v52, %v1075_v55 }
 0x141   : > { %v1078_v60 = vsel %vm1074_vm2, %v1070_v56, %v1076_v58 }
 0x142   : > { %v1293_v61 = vpack.c.bf16 %v1078_v60, %v1077_v59 }
 0x144   : > { %1294 = vst [vmem:[%s226_s7] sm:$0xff] %v1293_v61  }
 0x145 PF: > { %s13_s14 = sadd.s32 1, %s1546_s14   ;;  %s1844_s12 = smov %s1542_s13 }
 0x146   : > { %p10_p5 = scmp.ge.s32.totalorder %s13_s14, 4   ;;  %s1845_s13 = smov %s1847_s15 }
 0x148   :  { %12 = sbr.rel (!%p10_p5) target bundleno = 2 (0x2), region = 68 }

// kernel: _lambda_.30
= control target key start
LH: loop header
LB: loop body
LE: loop exit
PB: predicated region body
PF: predicated region fallthrough
CT: control target
= control target key end

     0   :  { %s687_s12 = smov 0   ;;  %s689_s13 = smov 0   ;;  %s775_s0 = inlined_call_operand.vmem [shape: bf16[32,256], index: 0, kind: input, shape index: {}]   ;;  %s776_s1 = inlined_call_operand.vmem [shape: bf16[256,128], index: 1, kind: input, shape index: {}]   ;;  %s777_s2 = inlined_call_operand.vmem [shape: f32[1,128], index: 2, kind: input, shape index: {}]   ;;  %s778_s3 = inlined_call_operand.vmem [shape: bf16[32,128], index: 3, kind: output, shape index: {}]  }
   0x1   :  { %s691_s14 = smov 0  }
   0x2 LB: > { %s25_s15 = sadd.s32 1, %s661_s13  ;;  %p541_p0 = scmp.ge.s32.totalorder %s665_s14, 1  ;;  %s665_s14 = sphi %s691_s14, %s13_s14   ;;  %s661_s13 = sphi %s689_s13, %s780_s13   ;;  %s657_s12 = sphi %s687_s12, %s779_s12  }
   0x3   : > { %p27_p1 = scmp.ge.s32.totalorder %s25_s15, 2  ;;  %p170_p2 = scmp.lt.s32.totalorder %s665_s14, 3 }
   0x5   : > { %s782_s15 = smov (%p27_p1, %s25_s15), 0  ;;  %p171_p3 = pnand %p541_p0, %p170_p2 }
   0x6   : > { %v624_v0 = vld [vmem:[%s776_s1 + $0x40] sm:$0xff] (!%p171_p3)   ;;  %s542_s18 = sshll.u32 (!%p171_p3), %s657_s12, 1  ;;  %v626_v2 = vld [vmem:[%s776_s1 + $0x48] sm:$0xff] (!%p171_p3)   ;;  %v628_v4 = vld [vmem:[%s776_s1 + $0x50] sm:$0xff] (!%p171_p3)  }
   0x7   : > { %174 = sbr.rel (%p171_p3) target bundleno = 264 (0x108), region = 32  ;;  %v625_v1 = vld [vmem:[%s776_s1] sm:$0xff] (!%p171_p3)   ;;  %578 = vmatprep.subr.bf16.mxu0 (!%p171_p3), %v624_v0  ;;  %v627_v3 = vld [vmem:[%s776_s1 + $0x8] sm:$0xff] (!%p171_p3)   ;;  %p206_p4 = scmp.lt.s32.totalorder (!%p171_p3), %s542_s18, 3  ;;  %v629_v5 = vld [vmem:[%s776_s1 + $0x10] sm:$0xff] (!%p171_p3)  }
   0x8   : > { %579 = vmatpush3.bf16.msra.mxu0 (!%p171_p3), %v625_v1  ;;  %v630_v6 = vld [vmem:[%s776_s1 + $0x58] sm:$0xff] (!%p171_p3)   ;;  %v632_v8 = vld [vmem:[%s776_s1 + $0x60] sm:$0xff] (!%p171_p3)   ;;  %v634_v10 = vld [vmem:[%s776_s1 + $0x68] sm:$0xff] (!%p171_p3)  }
   0x9   : > { %580 = vmatprep.subr.bf16.mxu0 (!%p171_p3), %v626_v2  ;;  %v631_v7 = vld [vmem:[%s776_s1 + $0x18] sm:$0xff] (!%p171_p3)   ;;  %v633_v9 = vld [vmem:[%s776_s1 + $0x20] sm:$0xff] (!%p171_p3)   ;;  %v635_v12 = vld [vmem:[%s776_s1 + $0x28] sm:$0xff] (!%p171_p3)  }
   0xa   : > { %v636_v13 = vld [vmem:[%s776_s1 + $0x70] sm:$0xff] (!%p171_p3)   ;;  %v638_v15 = vld [vmem:[%s776_s1 + $0x78] sm:$0xff] (!%p171_p3)   ;;  %v547_v19 = vld [vmem:[%s777_s2] ss:$0 sm:$0xff] (!%p171_p3) }
   0xb   : > { %v637_v14 = vld [vmem:[%s776_s1 + $0x30] sm:$0xff] (!%p171_p3)   ;;  %v639_v16 = vld [vmem:[%s776_s1 + $0x38] sm:$0xff] (!%p171_p3)  }
   0xc   : > { %581 = vmatpush3.bf16.msra.mxu0 (!%p171_p3), %v627_v3 }
   0xd   : > { %582 = vmatprep.subr.bf16.mxu0 (!%p171_p3), %v628_v4 }
   0xe   : > { %s784_s18 = smov (!%p206_p4, %s542_s18), 3 }
   0xf   : > { %s570_s6 = sshll.u32 %s784_s18, 3  ;;  %s546_s5 = sshll.u32 %s784_s18, 2 }
  0x10   : > { %583 = vmatpush3.bf16.msra.mxu0 %v629_v5  ;;  %s210_s11 = scalar_lea.vmem %s775_s0, %s570_s6  ;;  %s226_s8 = scalar_lea.vmem %s778_s3, %s546_s5 }
  0x11   : > { %584 = vmatprep.subr.bf16.mxu0 %v630_v6  ;;  %v642_v11 = vld [vmem:[%s210_s11 + $0x4] ss:$8 sps:$4 sm:$0xff]   ;;  %v640_v17 = vld [vmem:[%s210_s11] ss:$8 sps:$4 sm:$0xff]  }
  0x12   : > { %408 = vmatprep.mubr.bf16.mxu0 %v642_v11 }
  0x14   : > { %585 = vmatpush3.bf16.msra.mxu0 %v631_v7 }
  0x15   : > { %586 = vmatprep.subr.bf16.mxu0 %v632_v8 }
  0x18   : > { %587 = vmatpush3.bf16.msra.mxu0 %v633_v9 }
  0x19   : > { %588 = vmatprep.subr.bf16.mxu0 %v634_v10 }
  0x1c   : > { %589 = vmatpush3.bf16.msra.mxu0 %v635_v12 }
  0x1d   : > { %590 = vmatprep.subr.bf16.mxu0 %v636_v13 }
  0x20   : > { %591 = vmatpush3.bf16.msra.mxu0 %v637_v14 }
  0x21   : > { %592 = vmatprep.subr.bf16.mxu0 %v638_v15 }
  0x24   : > { %593 = vmatpush3.bf16.msra.mxu0 %v639_v16 }
  0x27   : > { %409 = vmatmul.mubr.bf16.vlgmr.msra.gmra.mrb[0].mxu0 %v640_v17 }
  0xfa   : > { %v594_v18 = vpop.f32.mrb[0].mxu0 }
  0xfb   : > { %v595_v20 = vpop.f32.mrb[1].mxu0 }
  0xfc   : > { %v596_v21 = vadd.f32 %v595_v20, %v594_v18  ;;  %v597_v22 = vpop.f32.mrb[2].mxu0 }
  0xfd   : > { %v598_v23 = vpop.f32.mrb[3].mxu0 }
  0xfe   : > { %v411_v24 = vadd.f32 %v596_v21, %v547_v19  ;;  %v599_v25 = vadd.f32 %v598_v23, %v597_v22 }
 0x100   : > { %v419_v26 = vmul.f32 0.25, %v411_v24  ;;  %v414_v27 = vadd.f32 %v599_v25, %v547_v19  ;;  %vm417_vm0 = vcmp.ge.f32.partialorder %v411_v24, 0.0 }
 0x102   : > { %vm418_vm1 = vcmp.ge.f32.partialorder %v414_v27, 0.0  ;;  %v420_v28 = vmul.f32 0.25, %v414_v27  ;;  %v421_v29 = vsel %vm417_vm0, %v411_v24, %v419_v26 }
 0x104   : > { %v422_v30 = vsel %vm418_vm1, %v414_v27, %v420_v28 }
 0x105   : > { %v576_v31 = vpack.c.bf16 %v422_v30, %v421_v29 }
 0x107   : > { %577 = vst [vmem:[%s226_s8] sm:$0xff] %v576_v31  }
 0x108 PF: > { %s13_s14 = sadd.s32 1, %s665_s14   ;;  %s779_s12 = smov %s661_s13 }
 0x109   : > { %p10_p5 = scmp.ge.s32.totalorder %s13_s14, 4   ;;  %s780_s13 = smov %s782_s15 }
 0x10b   :  { %12 = sbr.rel (!%p10_p5) target bundleno = 2 (0x2), region = 68 }

// kernel: _lambda_.33
= control target key start
LH: loop header
LB: loop body
LE: loop exit
PB: predicated region body
PF: predicated region fallthrough
CT: control target
= control target key end

     0   :  { %s339_s1 = inlined_call_operand.vmem [shape: bf16[256,128], index: 1, kind: input, shape index: {}]   ;;  %s340_s0 = inlined_call_operand.vmem [shape: bf16[8,256], index: 0, kind: input, shape index: {}]   ;;  %s341_s2 = inlined_call_operand.vmem [shape: f32[1,128], index: 2, kind: input, shape index: {}]   ;;  %s342_s3 = inlined_call_operand.vmem [shape: f32[8,128], index: 3, kind: output, shape index: {}]  }
   0x1   :  { %v244_v0 = vld [vmem:[%s339_s1 + $0x40] sm:$0xff]   ;;  %v246_v2 = vld [vmem:[%s339_s1 + $0x48] sm:$0xff]   ;;  %v248_v4 = vld [vmem:[%s339_s1 + $0x50] sm:$0xff]  }
   0x2   :  { %v245_v1 = vld [vmem:[%s339_s1] sm:$0xff]   ;;  %222 = vmatprep.subr.bf16.mxu0 %v244_v0  ;;  %v247_v3 = vld [vmem:[%s339_s1 + $0x8] sm:$0xff]   ;;  %v249_v5 = vld [vmem:[%s339_s1 + $0x10] sm:$0xff]  }
   0x3   :  { %223 = vmatpush3.bf16.msra.mxu0 %v245_v1  ;;  %v250_v6 = vld [vmem:[%s339_s1 + $0x58] sm:$0xff]   ;;  %v252_v8 = vld [vmem:[%s339_s1 + $0x60] sm:$0xff]   ;;  %v254_v10 = vld [vmem:[%s339_s1 + $0x68] sm:$0xff]  }
   0x4   :  { %224 = vmatprep.subr.bf16.mxu0 %v246_v2  ;;  %v251_v7 = vld [vmem:[%s339_s1 + $0x18] sm:$0xff]   ;;  %v253_v9 = vld [vmem:[%s339_s1 + $0x20] sm:$0xff]   ;;  %v255_v13 = vld [vmem:[%s339_s1 + $0x28] sm:$0xff]  }
   0x5   :  { %v15_v11 = vld [vmem:[%s340_s0] sm:$0xff]  ;;  %v256_v14 = vld [vmem:[%s339_s1 + $0x70] sm:$0xff]   ;;  %v258_v16 = vld [vmem:[%s339_s1 + $0x78] sm:$0xff]  }
   0x6   :  { %v205_v12 = vcombine.high %v15_v11, %v15_v11  ;;  %v257_v15 = vld [vmem:[%s339_s1 + $0x30] sm:$0xff]   ;;  %v259_v17 = vld [vmem:[%s339_s1 + $0x38] sm:$0xff]   ;;  %v204_v18 = vcombine.low %v15_v11, %v15_v11  ;;  %v203_v20 = vld [vmem:[%s341_s2] ss:$0 sm:$0xff] }
   0x7   :  { %225 = vmatpush3.bf16.msra.mxu0 %v247_v3 }
   0x8   :  { %226 = vmatprep.subr.bf16.mxu0 %v248_v4  ;;  %190 = vmatprep.mubr.bf16.mxu0 %v205_v12 }
   0xb   :  { %227 = vmatpush3.bf16.msra.mxu0 %v249_v5 }
   0xc   :  { %228 = vmatprep.subr.bf16.mxu0 %v250_v6 }
   0xf   :  { %229 = vmatpush3.bf16.msra.mxu0 %v251_v7 }
  0x10   :  { %230 = vmatprep.subr.bf16.mxu0 %v252_v8 }
  0x13   :  { %231 = vmatpush3.bf16.msra.mxu0 %v253_v9 }
  0x14   :  { %232 = vmatprep.subr.bf16.mxu0 %v254_v10 }
  0x17   :  { %233 = vmatpush3.bf16.msra.mxu0 %v255_v13 }
  0x18   :  { %234 = vmatprep.subr.bf16.mxu0 %v256_v14 }
  0x1b   :  { %235 = vmatpush3.bf16.msra.mxu0 %v257_v15 }
  0x1c   :  { %236 = vmatprep.subr.bf16.mxu0 %v258_v16 }
  0x1f   :  { %237 = vmatpush3.bf16.msra.mxu0 %v259_v17 }
  0x22   :  { %191 = vmatmul.mubr.bf16.vlgmr.msra.gmra.mrb[0].mxu0 %v204_v18 }
  0xf5   :  { %v238_v19 = vpop.f32.mrb[0].mxu0 }
  0xf6   :  { %v239_v21 = vpop.f32.mrb[1].mxu0 }
  0xf7   :  { %v240_v22 = vadd.f32 %v239_v21, %v238_v19  ;;  %v241_v23 = vpop.f32.mrb[2].mxu0 }
  0xf8   :  { %v242_v24 = vpop.f32.mrb[3].mxu0 }
  0xf9   :  { %v193_v25 = vadd.f32 %v240_v22, %v203_v20 }
  0xfb   :  { %198 = vst [vmem:[%s342_s3] sm:$0xff] %v193_v25 }

// kernel: _lambda_.31
= control target key start
LH: loop header
LB: loop body
LE: loop exit
PB: predicated region body
PF: predicated region fallthrough
CT: control target
= control target key end

     0   :  { %s2201_s12 = smov 0   ;;  %s2203_s13 = smov 0   ;;  %s2525_s0 = inlined_call_operand.vmem [shape: bf16[2,42,128], index: 0, kind: input, shape index: {}]   ;;  %s2526_s1 = inlined_call_operand.vmem [shape: bf16[9,128,128], index: 1, kind: input, shape index: {}]   ;;  %s2527_s2 = inlined_call_operand.vmem [shape: f32[1,128], index: 2, kind: input, shape index: {}]   ;;  %s2528_s3 = inlined_call_operand.vmem [shape: bf16[2,24,128], index: 3, kind: output, shape index: {}]  }
   0x1   :  { %s2205_s14 = smov 0  }
   0x2 LB: > { %s25_s15 = sadd.s32 1, %s2175_s13  ;;  %p1546_p0 = scmp.ge.s32.totalorder %s2179_s14, 1  ;;  %s2179_s14 = sphi %s2205_s14, %s13_s14   ;;  %s2175_s13 = sphi %s2203_s13, %s2530_s13   ;;  %s2171_s12 = sphi %s2201_s12, %s2529_s12  }
   0x3   : > { %p27_p1 = scmp.ge.s32.totalorder %s25_s15, 2  ;;  %p168_p2 = scmp.lt.s32.totalorder %s2179_s14, 3 }
   0x5   : > { %s2532_s15 = smov (%p27_p1, %s25_s15), 0  ;;  %p169_p3 = pnand %p1546_p0, %p168_p2 }
   0x6   : > { %v2072_v0 = vld [vmem:[%s2526_s1 + $0x40] sm:$0xff] (!%p169_p3)   ;;  %p202_p4 = scmp.lt.s32.totalorder (!%p169_p3), %s2171_s12, 1  ;;  %v2074_v2 = vld [vmem:[%s2526_s1 + $0x48] sm:$0xff] (!%p169_p3)   ;;  %v2076_v4 = vld [vmem:[%s2526_s1 + $0x50] sm:$0xff] (!%p169_p3)   ;;  %vm270_vm0 = vsmask.f32 (!%p169_p3), 7424 }
   0x7   : > { %172 = sbr.rel (%p169_p3) target bundleno = 392 (0x188), region = 32  ;;  %v2073_v1 = vld [vmem:[%s2526_s1] sm:$0xff] (!%p169_p3)   ;;  %1866 = vmatprep.subr.bf16.mxu0 (!%p169_p3), %v2072_v0  ;;  %v2075_v3 = vld [vmem:[%s2526_s1 + $0x8] sm:$0xff] (!%p169_p3)   ;;  %v2077_v5 = vld [vmem:[%s2526_s1 + $0x10] sm:$0xff] (!%p169_p3)   ;;  %vm504_vm1 = vcmask (!%p169_p3), 1046528   ;;  %vm634_vm2 = vcmask (!%p169_p3), 1044480  }
   0x8   : > { %1886 = vmatprep.subr.bf16.mxu1 (!%p169_p3), %v2073_v1  ;;  %1867 = vmatpush3.bf16.msra.mxu0 (!%p169_p3), %v2072_v0  ;;  %v2078_v6 = vld [vmem:[%s2526_s1 + $0x58] sm:$0xff] (!%p169_p3)   ;;  %v2080_v8 = vld [vmem:[%s2526_s1 + $0x60] sm:$0xff] (!%p169_p3)   ;;  %v2082_v10 = vld [vmem:[%s2526_s1 + $0x68] sm:$0xff] (!%p169_p3)   ;;  %vm760_vm3 = vsmask.f32 (!%p169_p3), 4352  ;;  %vm1030_vm4 = vcmask (!%p169_p3), 1045504  }
   0x9   : > { %1887 = vmatpush3.bf16.msra.mxu1 (!%p169_p3), %v2073_v1  ;;  %1868 = vmatprep.subr.bf16.mxu0 (!%p169_p3), %v2074_v2  ;;  %v2079_v7 = vld [vmem:[%s2526_s1 + $0x18] sm:$0xff] (!%p169_p3)   ;;  %v2081_v9 = vld [vmem:[%s2526_s1 + $0x20] sm:$0xff] (!%p169_p3)   ;;  %v2083_v14 = vld [vmem:[%s2526_s1 + $0x28] sm:$0xff] (!%p169_p3)   ;;  %vm1156_vm5 = vsmask.f32 (!%p169_p3), 5376 }
   0xa   : > { %1888 = vmatprep.subr.bf16.mxu1 (!%p169_p3), %v2075_v3  ;;  %v2084_v20 = vld [vmem:[%s2526_s1 + $0x70] sm:$0xff] (!%p169_p3)   ;;  %v2086_v26 = vld [vmem:[%s2526_s1 + $0x78] sm:$0xff] (!%p169_p3)   ;;  %v2091_v30 = vld [vmem:[%s2526_s1 + $0x80] sm:$0xff] (!%p169_p3)  }
   0xb   : > { %v2085_v22 = vld [vmem:[%s2526_s1 + $0x30] sm:$0xff] (!%p169_p3)   ;;  %v2087_v27 = vld [vmem:[%s2526_s1 + $0x38] sm:$0xff] (!%p169_p3)   ;;  %v2092_v31 = vld [vmem:[%s2526_s1 + $0xc0] sm:$0xff] (!%p169_p3)  }
   0xc   : > { %1869 = vmatpush3.bf16.msra.mxu0 (!%p169_p3), %v2074_v2  ;;  %v2093_v34 = vld [vmem:[%s2526_s1 + $0x88] sm:$0xff] (!%p169_p3)   ;;  %v2095_v41 = vld [vmem:[%s2526_s1 + $0x90] sm:$0xff] (!%p169_p3)   ;;  %v2097_v49 = vld [vmem:[%s2526_s1 + $0x98] sm:$0xff] (!%p169_p3)  }
   0xd   : > { %1889 = vmatpush3.bf16.msra.mxu1 (!%p169_p3), %v2075_v3  ;;  %1870 = vmatprep.subr.bf16.mxu0 (!%p169_p3), %v2076_v4  ;;  %v2094_v35 = vld [vmem:[%s2526_s1 + $0xc8] sm:$0xff] (!%p169_p3)   ;;  %v2096_v44 = vld [vmem:[%s2526_s1 + $0xd0] sm:$0xff] (!%p169_p3)   ;;  %v2098_v51 = vld [vmem:[%s2526_s1 + $0xd8] sm:$0xff] (!%p169_p3)  }
   0xe   : > { %s2534_s12 = smov (!%p202_p4, %s2171_s12), 1  ;;  %1890 = vmatprep.subr.bf16.mxu1 %v2077_v5  ;;  %v2099_v52 = vld [vmem:[%s2526_s1 + $0xa0] sm:$0xff]   ;;  %v2101_v54 = vld [vmem:[%s2526_s1 + $0xa8] sm:$0xff]   ;;  %v2103_v56 = vld [vmem:[%s2526_s1 + $0xb0] sm:$0xff]  }
   0xf   : > { %s2046_s5 = smul.u32 24, %s2534_s12  ;;  %v2100_v53 = vld [vmem:[%s2526_s1 + $0xe0] sm:$0xff]   ;;  %v2102_v55 = vld [vmem:[%s2526_s1 + $0xe8] sm:$0xff]   ;;  %v2104_v61 = vld [vmem:[%s2526_s1 + $0xf0] sm:$0xff]  }
  0x10   : > { %1871 = vmatpush3.bf16.msra.mxu0 %v2076_v4  ;;  %v2105_v0 = vld [vmem:[%s2526_s1 + $0xb8] sm:$0xff]   ;;  %s2047_s30 = smul.u32 12, %s2534_s12 }
  0x11   : > { %1891 = vmatpush3.bf16.msra.mxu1 %v2077_v5  ;;  %1872 = vmatprep.subr.bf16.mxu0 %v2078_v6  ;;  %s2255_s16 = scalar_lea.vmem %s2525_s0, %s2046_s5  ;;  %v2106_v1 = vld [vmem:[%s2526_s1 + $0xf8] sm:$0xff]  }
  0x12   : > { %1892 = vmatprep.subr.bf16.mxu1 %v2079_v7  ;;  %v223_v11 = vld [vmem:[%s2255_s16] sm:$0xf]  ;;  %v2262_v12 = vld [vmem:[%s2255_s16 + $0x4] sm:$0xf]  ;;  %v2265_v13 = vld [vmem:[%s2255_s16 + $0x8] sm:$0xf]  ;;  %s221_s6 = scalar_lea.vmem %s2528_s3, %s2047_s30 }
  0x13   : > { %v242_v15 = vld [vmem:[%s2255_s16 + $0xc] sm:$0x1]  ;;  %v1565_v16 = vcombine.low %v223_v11, %v2262_v12  ;;  %v1575_v33 = vcombine.low %v2265_v13, %v2265_v13  ;;  %v483_v36 = vld [vmem:[%s2255_s16] sm:$0xe] }
  0x14   : > { %1873 = vmatpush3.bf16.msra.mxu0 %v2078_v6  ;;  %v2273_v17 = vcombine.low %v2265_v13, %v242_v15  ;;  %v1600_v37 = vcombine.low %v483_v36, %v2262_v12  ;;  %v609_v39 = vld [vmem:[%s2255_s16] sm:$0x8]  ;;  %v610_v40 = vld [vmem:[%s2255_s16 + $0xc] sm:$0x7]  ;;  %v1676_v15 = vcombine.low %v2262_v12, %v2265_v13 }
  0x15   : > { %1893 = vmatpush3.bf16.msra.mxu1 %v2079_v7  ;;  %1874 = vmatprep.subr.bf16.mxu0 %v2080_v8  ;;  %v272_v18 = vshrl.u32 %v1565_v16, 16  ;;  %v274_v19 = vshll.u32 %v1565_v16, 16  ;;  %v1625_v42 = vcombine.low %v609_v39, %v2262_v12  ;;  %v1626_v43 = vcombine.low %v2265_v13, %v610_v40  ;;  %v2346_v57 = vld [vmem:[%s2255_s16 + $0xc] sm:$0xf]  ;;  %v2108_v6 = vld [vmem:[%s2526_s1 + $0x100] sm:$0xff]   ;;  %v2116_v12 = vld [vmem:[%s2526_s1 + $0x118] sm:$0xff]  }
  0x16   : > { %1894 = vmatprep.subr.bf16.mxu1 %v2081_v9  ;;  %1902 = vmatprep.mubr.bf16.mxu1 %v1565_v16  ;;  %v279_v21 = vshll.u32 %v2273_v17, 16  ;;  %v283_v29 = vshrl.u32 %v2273_v17, 16  ;;  %v506_v38 = vrot.slane %v2273_v17, 1  ;;  %v505_v45 = vrot.slane %v1600_v37, 1  ;;  %v2111_v7 = vld [vmem:[%s2526_s1 + $0x140] sm:$0xff]   ;;  %v2113_v11 = vld [vmem:[%s2526_s1 + $0x148] sm:$0xff]  }
  0x17   : > { %v276_v23 = vrot.slane %v274_v19, 1  ;;  %v635_v46 = vrot.slane %v1625_v42, 3  ;;  %v2317_v47 = vrot.slane %v1626_v43, 3  ;;  %v762_v58 = vshrl.u32 %v1625_v42, 16  ;;  %v2114_v16 = vld [vmem:[%s2526_s1 + $0x110] sm:$0xff]   ;;  %v2124_v40 = vld [vmem:[%s2526_s1 + $0x138] sm:$0xff]  }
  0x18   : > { %1875 = vmatpush3.bf16.msra.mxu0 %v2080_v8  ;;  %v281_v24 = vrot.slane %v279_v21, 1  ;;  %v507_v48 = vsel %vm504_vm1, %v505_v45, %v506_v38  ;;  %v765_v59 = vshll.u32 %v1625_v42, 16  ;;  %v1651_v60 = vcombine.low %v2265_v13, %v2346_v57  ;;  %v2115_v17 = vld [vmem:[%s2526_s1 + $0x150] sm:$0xff]   ;;  %v2117_v13 = vld [vmem:[%s2526_s1 + $0x158] sm:$0xff]   ;;  %v2119_v21 = vld [vmem:[%s2526_s1 + $0x160] sm:$0xff]  }
  0x19   : > { %1895 = vmatpush3.bf16.msra.mxu1 %v2081_v9  ;;  %1876 = vmatprep.subr.bf16.mxu0 %v2082_v10  ;;  %v277_v25 = vor.u32 %v276_v23, %v272_v18  ;;  %v637_v50 = vsel %vm634_vm2, %v635_v46, %v2317_v47  ;;  %v764_v2 = vrot.slane %v762_v58, 3  ;;  %v1001_v18 = vld [vmem:[%s2255_s16 + $0xc] sm:$0xf]  ;;  %v1135_v19 = vld [vmem:[%s2255_s16 + $0x10] sm:$0x7] }
  0x1a   : > { %1896 = vmatprep.subr.bf16.mxu1 %v2083_v14  ;;  %v285_v32 = vor.u32 %v283_v29, %v281_v24  ;;  %v770_v62 = vshrl.u32 %v1651_v60, 16  ;;  %v773_v63 = vshll.u32 %v1651_v60, 16  ;;  %v767_v3 = vrot.slane %v765_v59, 4  ;;  %v1000_v23 = vld [vmem:[%s2255_s16 + $0x8] sm:$0xf]  ;;  %v2133_v58 = vld [vmem:[%s2526_s1 + $0x190] sm:$0xff]  }
  0x1b   : > { %v282_v28 = vsel %vm270_vm0, %v277_v25, %v281_v24  ;;  %v1275_v24 = vld [vmem:[%s2255_s16 + $0x4] sm:$0x8]  ;;  %v2121_v29 = vld [vmem:[%s2526_s1 + $0x168] sm:$0xff]   ;;  %v2134_v59 = vld [vmem:[%s2526_s1 + $0x1d0] sm:$0xff]  }
  0x1c   : > { %1877 = vmatpush3.bf16.msra.mxu0 %v2082_v10  ;;  %1882 = vmatprep.mubr.bf16.mxu0 %v282_v28  ;;  %v772_v4 = vrot.slane %v770_v62, 3  ;;  %v775_v5 = vrot.slane %v773_v63, 4  ;;  %v768_v8 = vor.u32 %v767_v3, %v764_v2  ;;  %v2112_v10 = vld [vmem:[%s2526_s1 + $0x108] sm:$0xff]   ;;  %v1753_v25 = vcombine.low %v1275_v24, %v1000_v23  ;;  %v999_v28 = vld [vmem:[%s2255_s16 + $0x4] sm:$0xc]  ;;  %v2135_v60 = vld [vmem:[%s2526_s1 + $0x198] sm:$0xff]  }
  0x1d   : > { %1897 = vmatpush3.bf16.msra.mxu1 %v2083_v14  ;;  %1878 = vmatprep.subr.bf16.mxu0 %v2084_v20  ;;  %v2137_v62 = vld [vmem:[%s2526_s1 + $0x1a0] sm:$0xff]   ;;  %v2141_v2 = vld [vmem:[%s2526_s1 + $0x1b0] sm:$0xff]  }
  0x1e   : > { %1898 = vmatprep.subr.bf16.mxu1 %v2085_v22  ;;  %v2365_v9 = vor.u32 %v775_v5, %v772_v4  ;;  %v2138_v63 = vld [vmem:[%s2526_s1 + $0x1e0] sm:$0xff]   ;;  %v2142_v3 = vld [vmem:[%s2526_s1 + $0x1f0] sm:$0xff]   ;;  %v2143_v4 = vld [vmem:[%s2526_s1 + $0x1b8] sm:$0xff]  }
  0x1f   : > { %v2144_v5 = vld [vmem:[%s2526_s1 + $0x1f8] sm:$0xff]  }
  0x20   : > { %1879 = vmatpush3.bf16.msra.mxu0 %v2084_v20  ;;  %v777_v14 = vsel %vm760_vm3, %v768_v8, %v2365_v9  ;;  %v2118_v20 = vld [vmem:[%s2526_s1 + $0x120] sm:$0xff]   ;;  %v2150_v8 = vld [vmem:[%s2526_s1 + $0x210] sm:$0xff]  }
  0x21   : > { %1899 = vmatpush3.bf16.msra.mxu1 %v2085_v22  ;;  %1880 = vmatprep.subr.bf16.mxu0 %v2086_v26  ;;  %v2399_v22 = vcombine.low %v1001_v18, %v1135_v19 }
  0x22   : > { %1900 = vmatprep.subr.bf16.mxu1 %v2087_v27 }
  0x23   : > { %v1169_v39 = vshll.u32 %v2399_v22, 16 }
  0x24   : > { %1881 = vmatpush3.bf16.msra.mxu0 %v2086_v26  ;;  %v1297_v26 = vrot.slane %v2399_v22, 3 }
  0x25   : > { %1901 = vmatpush3.bf16.msra.mxu1 %v2087_v27  ;;  %1906 = vmatprep.subr.bf16.mxu0 %v2091_v30  ;;  %v2120_v27 = vld [vmem:[%s2526_s1 + $0x128] sm:$0xff]   ;;  %v1171_v46 = vrot.slane %v1169_v39, 3 }
  0x26   : > { %1926 = vmatprep.subr.bf16.mxu1 %v2092_v31 }
  0x27   : > { %1883 = vmatmul.mubr.bf16.vlgmr.msra.gmra.mrb[0].mxu0 %v285_v32 }
  0x28   : > { %1903 = vmatmul.mubr.bf16.vlgmr.msra.gmra.mrb[0].mxu1 %v1575_v33  ;;  %1907 = vmatpush3.bf16.msra.mxu0 %v2091_v30  ;;  %v1296_v30 = vrot.slane %v1753_v25, 3  ;;  %v2122_v33 = vld [vmem:[%s2526_s1 + $0x130] sm:$0xff]  }
  0x29   : > { %1927 = vmatpush3.bf16.msra.mxu1 %v2092_v31  ;;  %1908 = vmatprep.subr.bf16.mxu0 %v2093_v34  ;;  %v1702_v31 = vcombine.low %v999_v28, %v1000_v23 }
  0x2a   : > { %1928 = vmatprep.subr.bf16.mxu1 %v2094_v35  ;;  %1922 = vmatprep.mubr.bf16.mxu0 %v507_v48  ;;  %v2414_v32 = vsel %vm634_vm2, %v1296_v30, %v1297_v26  ;;  %v2130_v48 = vld [vmem:[%s2526_s1 + $0x1c0] sm:$0xff]  }
  0x2b   : > { %1942 = vmatprep.mubr.bf16.mxu1 %v637_v50  ;;  %v1158_v36 = vshrl.u32 %v1702_v31, 16  ;;  %v1161_v37 = vshll.u32 %v1702_v31, 16 }
  0x2c   : > { %1909 = vmatpush3.bf16.msra.mxu0 %v2093_v34  ;;  %v2123_v34 = vld [vmem:[%s2526_s1 + $0x170] sm:$0xff]  }
  0x2d   : > { %1929 = vmatpush3.bf16.msra.mxu1 %v2094_v35  ;;  %1910 = vmatprep.subr.bf16.mxu0 %v2095_v41  ;;  %v1002_v35 = vld [vmem:[%s2255_s16 + $0x10] sm:$0x3]  ;;  %v1160_v43 = vrot.slane %v1158_v36, 2 }
  0x2e   : > { %1930 = vmatprep.subr.bf16.mxu1 %v2096_v44  ;;  %v1703_v42 = vcombine.low %v1001_v18, %v1002_v35 }
  0x30   : > { %1911 = vmatpush3.bf16.msra.mxu0 %v2095_v41  ;;  %v2125_v41 = vld [vmem:[%s2526_s1 + $0x178] sm:$0xff]   ;;  %v1032_v50 = vrot.slane %v1703_v42, 2 }
  0x31   : > { %1931 = vmatpush3.bf16.msra.mxu1 %v2096_v44  ;;  %1912 = vmatprep.subr.bf16.mxu0 %v2097_v49  ;;  %v1163_v44 = vrot.slane %v1161_v37, 3 }
  0x32   : > { %1932 = vmatprep.subr.bf16.mxu1 %v2098_v51 }
  0x34   : > { %1913 = vmatpush3.bf16.msra.mxu0 %v2097_v49  ;;  %v1031_v49 = vrot.slane %v1702_v31, 2 }
  0x35   : > { %1933 = vmatpush3.bf16.msra.mxu1 %v2098_v51  ;;  %1914 = vmatprep.subr.bf16.mxu0 %v2099_v52  ;;  %v1677_v51 = vcombine.low %v2346_v57, %v2346_v57 }
  0x36   : > { %1934 = vmatprep.subr.bf16.mxu1 %v2100_v53 }
  0x38   : > { %1915 = vmatpush3.bf16.msra.mxu0 %v2099_v52  ;;  %v1164_v52 = vor.u32 %v1163_v44, %v1160_v43 }
  0x39   : > { %1935 = vmatpush3.bf16.msra.mxu1 %v2100_v53  ;;  %1916 = vmatprep.subr.bf16.mxu0 %v2101_v54 }
  0x3a   : > { %1936 = vmatprep.subr.bf16.mxu1 %v2102_v55 }
  0x3c   : > { %1917 = vmatpush3.bf16.msra.mxu0 %v2101_v54  ;;  %v2131_v54 = vld [vmem:[%s2526_s1 + $0x188] sm:$0xff]  }
  0x3d   : > { %1937 = vmatpush3.bf16.msra.mxu1 %v2102_v55  ;;  %1918 = vmatprep.subr.bf16.mxu0 %v2103_v56  ;;  %v2132_v55 = vld [vmem:[%s2526_s1 + $0x1c8] sm:$0xff]  }
  0x3e   : > { %1938 = vmatprep.subr.bf16.mxu1 %v2104_v61 }
  0x40   : > { %1919 = vmatpush3.bf16.msra.mxu0 %v2103_v56  ;;  %v1033_v56 = vsel %vm1030_vm4, %v1031_v49, %v1032_v50 }
  0x41   : > { %1939 = vmatpush3.bf16.msra.mxu1 %v2104_v61  ;;  %1920 = vmatprep.subr.bf16.mxu0 %v2105_v0  ;;  %v2136_v61 = vld [vmem:[%s2526_s1 + $0x1d8] sm:$0xff]  }
  0x42   : > { %1940 = vmatprep.subr.bf16.mxu1 %v2106_v1 }
  0x44   : > { %1921 = vmatpush3.bf16.msra.mxu0 %v2105_v0  ;;  %v2139_v0 = vld [vmem:[%s2526_s1 + $0x1a8] sm:$0xff]  }
  0x45   : > { %1941 = vmatpush3.bf16.msra.mxu1 %v2106_v1  ;;  %1946 = vmatprep.subr.bf16.mxu0 %v2108_v6  ;;  %v2140_v1 = vld [vmem:[%s2526_s1 + $0x1e8] sm:$0xff]  }
  0x46   : > { %1966 = vmatprep.subr.bf16.mxu1 %v2111_v7 }
  0x47   : > { %1923 = vmatmul.mubr.bf16.vlgmr.msra.gmra.mrb[4].mxu0 %v506_v38  ;;  %v1166_v38 = vshrl.u32 %v2399_v22, 16 }
  0x48   : > { %1947 = vmatpush3.bf16.msra.mxu0 %v2108_v6  ;;  %1943 = vmatmul.mubr.bf16.vlgmr.msra.gmra.mrb[4].mxu1 %v2317_v47  ;;  %v2127_v47 = vld [vmem:[%s2526_s1 + $0x180] sm:$0xff]  }
  0x49   : > { %1967 = vmatpush3.bf16.msra.mxu1 %v2111_v7  ;;  %1948 = vmatprep.subr.bf16.mxu0 %v2112_v10  ;;  %v1168_v45 = vrot.slane %v1166_v38, 2  ;;  %v2148_v6 = vld [vmem:[%s2526_s1 + $0x200] sm:$0xff]   ;;  %v2149_v7 = vld [vmem:[%s2526_s1 + $0x208] sm:$0xff]  }
  0x4a   : > { %1968 = vmatprep.subr.bf16.mxu1 %v2113_v11  ;;  %1962 = vmatprep.mubr.bf16.mxu0 %v777_v14  ;;  %v2154_v14 = vld [vmem:[%s2526_s1 + $0x230] sm:$0xff]  }
  0x4b   : > { %1982 = vmatprep.mubr.bf16.mxu1 %v1676_v15  ;;  %v1172_v53 = vor.u32 %v1171_v46, %v1168_v45  ;;  %v2155_v15 = vld [vmem:[%s2526_s1 + $0x238] sm:$0xff]  }
  0x4c   : > { %1949 = vmatpush3.bf16.msra.mxu0 %v2112_v10  ;;  %v2152_v10 = vld [vmem:[%s2526_s1 + $0x220] sm:$0xff]  }
  0x4d   : > { %1969 = vmatpush3.bf16.msra.mxu1 %v2113_v11  ;;  %1950 = vmatprep.subr.bf16.mxu0 %v2114_v16  ;;  %v1173_v57 = vsel %vm1156_vm5, %v1164_v52, %v1172_v53  ;;  %v2153_v11 = vld [vmem:[%s2526_s1 + $0x228] sm:$0xff]  }
  0x4e   : > { %1970 = vmatprep.subr.bf16.mxu1 %v2115_v17 }
  0x50   : > { %1951 = vmatpush3.bf16.msra.mxu0 %v2114_v16 }
  0x51   : > { %1971 = vmatpush3.bf16.msra.mxu1 %v2115_v17  ;;  %1952 = vmatprep.subr.bf16.mxu0 %v2116_v12 }
  0x52   : > { %1972 = vmatprep.subr.bf16.mxu1 %v2117_v13 }
  0x54   : > { %1953 = vmatpush3.bf16.msra.mxu0 %v2116_v12 }
  0x55   : > { %1973 = vmatpush3.bf16.msra.mxu1 %v2117_v13  ;;  %1954 = vmatprep.subr.bf16.mxu0 %v2118_v20 }
  0x56   : > { %1974 = vmatprep.subr.bf16.mxu1 %v2119_v21 }
  0x58   : > { %1955 = vmatpush3.bf16.msra.mxu0 %v2118_v20 }
  0x59   : > { %1975 = vmatpush3.bf16.msra.mxu1 %v2119_v21  ;;  %1956 = vmatprep.subr.bf16.mxu0 %v2120_v27 }
  0x5a   : > { %1976 = vmatprep.subr.bf16.mxu1 %v2121_v29 }
  0x5c   : > { %1957 = vmatpush3.bf16.msra.mxu0 %v2120_v27 }
  0x5d   : > { %1977 = vmatpush3.bf16.msra.mxu1 %v2121_v29  ;;  %1958 = vmatprep.subr.bf16.mxu0 %v2122_v33 }
  0x5e   : > { %1978 = vmatprep.subr.bf16.mxu1 %v2123_v34 }
  0x60   : > { %1959 = vmatpush3.bf16.msra.mxu0 %v2122_v33 }
  0x61   : > { %1979 = vmatpush3.bf16.msra.mxu1 %v2123_v34  ;;  %1960 = vmatprep.subr.bf16.mxu0 %v2124_v40 }
  0x62   : > { %1980 = vmatprep.subr.bf16.mxu1 %v2125_v41 }
  0x64   : > { %1961 = vmatpush3.bf16.msra.mxu0 %v2124_v40 }
  0x65   : > { %1981 = vmatpush3.bf16.msra.mxu1 %v2125_v41  ;;  %1986 = vmatprep.subr.bf16.mxu0 %v2127_v47 }
  0x66   : > { %2006 = vmatprep.subr.bf16.mxu1 %v2130_v48 }
  0x67   : > { %1963 = vmatmul.mubr.bf16.vlgmr.msra.gmra.mrb[8].mxu0 %v2365_v9  ;;  %v2151_v9 = vld [vmem:[%s2526_s1 + $0x218] sm:$0xff]  }
  0x68   : > { %1987 = vmatpush3.bf16.msra.mxu0 %v2127_v47  ;;  %1983 = vmatmul.mubr.bf16.vlgmr.msra.gmra.mrb[8].mxu1 %v1677_v51 }
  0x69   : > { %2007 = vmatpush3.bf16.msra.mxu1 %v2130_v48  ;;  %1988 = vmatprep.subr.bf16.mxu0 %v2131_v54 }
  0x6a   : > { %2008 = vmatprep.subr.bf16.mxu1 %v2132_v55  ;;  %2002 = vmatprep.mubr.bf16.mxu0 %v1033_v56 }
  0x6b   : > { %2022 = vmatprep.mubr.bf16.mxu1 %v1173_v57 }
  0x6c   : > { %1989 = vmatpush3.bf16.msra.mxu0 %v2131_v54 }
  0x6d   : > { %2009 = vmatpush3.bf16.msra.mxu1 %v2132_v55  ;;  %1990 = vmatprep.subr.bf16.mxu0 %v2133_v58 }
  0x6e   : > { %2010 = vmatprep.subr.bf16.mxu1 %v2134_v59 }
  0x70   : > { %1991 = vmatpush3.bf16.msra.mxu0 %v2133_v58 }
  0x71   : > { %2011 = vmatpush3.bf16.msra.mxu1 %v2134_v59  ;;  %1992 = vmatprep.subr.bf16.mxu0 %v2135_v60 }
  0x72   : > { %2012 = vmatprep.subr.bf16.mxu1 %v2136_v61 }
  0x74   : > { %1993 = vmatpush3.bf16.msra.mxu0 %v2135_v60 }
  0x75   : > { %2013 = vmatpush3.bf16.msra.mxu1 %v2136_v61  ;;  %1994 = vmatprep.subr.bf16.mxu0 %v2137_v62 }
  0x76   : > { %2014 = vmatprep.subr.bf16.mxu1 %v2138_v63 }
  0x78   : > { %1995 = vmatpush3.bf16.msra.mxu0 %v2137_v62 }
  0x79   : > { %2015 = vmatpush3.bf16.msra.mxu1 %v2138_v63  ;;  %1996 = vmatprep.subr.bf16.mxu0 %v2139_v0 }
  0x7a   : > { %2016 = vmatprep.subr.bf16.mxu1 %v2140_v1 }
  0x7c   : > { %1997 = vmatpush3.bf16.msra.mxu0 %v2139_v0 }
  0x7d   : > { %2017 = vmatpush3.bf16.msra.mxu1 %v2140_v1  ;;  %1998 = vmatprep.subr.bf16.mxu0 %v2141_v2 }
  0x7e   : > { %2018 = vmatprep.subr.bf16.mxu1 %v2142_v3 }
  0x80   : > { %1999 = vmatpush3.bf16.msra.mxu0 %v2141_v2 }
  0x81   : > { %2019 = vmatpush3.bf16.msra.mxu1 %v2142_v3  ;;  %2000 = vmatprep.subr.bf16.mxu0 %v2143_v4 }
  0x82   : > { %2020 = vmatprep.subr.bf16.mxu1 %v2144_v5 }
  0x84   : > { %2001 = vmatpush3.bf16.msra.mxu0 %v2143_v4  ;;  %v1762_v4 = vld [vmem:[%s2527_s2] ss:$0 sm:$0xff] }
  0x85   : > { %2021 = vmatpush3.bf16.msra.mxu1 %v2144_v5  ;;  %2026 = vmatprep.subr.bf16.mxu0 %v2148_v6 }
  0x87   : > { %2003 = vmatmul.mubr.bf16.vlgmr.msra.gmra.mrb[12].mxu0 %v1032_v50 }
  0x88   : > { %2027 = vmatpush3.bf16.msra.mxu0 %v2148_v6  ;;  %2023 = vmatmul.mubr.bf16.vlgmr.msra.gmra.mrb[12].mxu1 %v1172_v53 }
  0x89   : > { %2028 = vmatprep.subr.bf16.mxu0 %v2149_v7  ;;  %2042 = vmatprep.mubr.bf16.mxu0 %v2414_v32 }
  0x8c   : > { %2029 = vmatpush3.bf16.msra.mxu0 %v2149_v7 }
  0x8d   : > { %2030 = vmatprep.subr.bf16.mxu0 %v2150_v8 }
  0x90   : > { %2031 = vmatpush3.bf16.msra.mxu0 %v2150_v8 }
  0x91   : > { %2032 = vmatprep.subr.bf16.mxu0 %v2151_v9 }
  0x94   : > { %2033 = vmatpush3.bf16.msra.mxu0 %v2151_v9 }
  0x95   : > { %2034 = vmatprep.subr.bf16.mxu0 %v2152_v10 }
  0x98   : > { %2035 = vmatpush3.bf16.msra.mxu0 %v2152_v10 }
  0x99   : > { %2036 = vmatprep.subr.bf16.mxu0 %v2153_v11 }
  0x9c   : > { %2037 = vmatpush3.bf16.msra.mxu0 %v2153_v11 }
  0x9d   : > { %2038 = vmatprep.subr.bf16.mxu0 %v2154_v14 }
  0xa0   : > { %2039 = vmatpush3.bf16.msra.mxu0 %v2154_v14 }
  0xa1   : > { %2040 = vmatprep.subr.bf16.mxu0 %v2155_v15 }
  0xa4   : > { %2041 = vmatpush3.bf16.msra.mxu0 %v2155_v15 }
  0xa7   : > { %2043 = vmatmul.mubr.bf16.vlgmr.msra.gmra.mrb[16].mxu0 %v1297_v26 }
  0xfa   : > { %v1884_v16 = vpop.f32.mrb[0].mxu0 }
  0xfb   : > { %v1904_v17 = vpop.f32.mrb[0].mxu1  ;;  %v370_v12 = vpop.f32.mrb[1].mxu0 }
  0xfc   : > { %v478_v13 = vadd.f32 %v1904_v17, %v1884_v16  ;;  %v469_v18 = vpop.f32.mrb[1].mxu1  ;;  %v1885_v19 = vpop.f32.mrb[2].mxu0 }
  0xfd   : > { %v470_v20 = vadd.f32 %v469_v18, %v370_v12  ;;  %v1905_v21 = vpop.f32.mrb[2].mxu1  ;;  %v373_v23 = vpop.f32.mrb[3].mxu0 }
  0xfe   : > { %v472_v24 = vpop.f32.mrb[3].mxu1 }
  0xff   : > { %v473_v25 = vadd.f32 %v472_v24, %v373_v23 }
 0x11a   : > { %v1924_v27 = vpop.f32.mrb[4].mxu0 }
 0x11b   : > { %v608_v28 = vadd.f32 %v1924_v27, %v478_v13  ;;  %v592_v29 = vpop.f32.mrb[5].mxu0  ;;  %v1944_v30 = vpop.f32.mrb[4].mxu1 }
 0x11c   : > { %v606_v31 = vadd.f32 %v592_v29, %v470_v20  ;;  %v1925_v32 = vpop.f32.mrb[6].mxu0  ;;  %v722_v33 = vpop.f32.mrb[5].mxu1 }
 0x11d   : > { %v738_v22 = vadd.f32 %v1944_v30, %v608_v28  ;;  %v595_v26 = vpop.f32.mrb[7].mxu0  ;;  %v1945_v34 = vpop.f32.mrb[6].mxu1 }
 0x11e   : > { %v607_v35 = vadd.f32 %v595_v26, %v473_v25  ;;  %v736_v36 = vadd.f32 %v722_v33, %v606_v31  ;;  %v725_v37 = vpop.f32.mrb[7].mxu1 }
 0x120   : > { %v737_v38 = vadd.f32 %v725_v37, %v607_v35 }
 0x13a   : > { %v1964_v39 = vpop.f32.mrb[8].mxu0 }
 0x13b   : > { %v878_v40 = vadd.f32 %v1964_v39, %v738_v22  ;;  %v862_v41 = vpop.f32.mrb[9].mxu0  ;;  %v1984_v42 = vpop.f32.mrb[8].mxu1 }
 0x13c   : > { %v876_v43 = vadd.f32 %v862_v41, %v736_v36  ;;  %v1965_v44 = vpop.f32.mrb[10].mxu0  ;;  %v982_v45 = vpop.f32.mrb[9].mxu1 }
 0x13d   : > { %v998_v46 = vadd.f32 %v1984_v42, %v878_v40  ;;  %v865_v47 = vpop.f32.mrb[11].mxu0  ;;  %v1985_v48 = vpop.f32.mrb[10].mxu1 }
 0x13e   : > { %v877_v49 = vadd.f32 %v865_v47, %v737_v38  ;;  %v996_v50 = vadd.f32 %v982_v45, %v876_v43  ;;  %v985_v51 = vpop.f32.mrb[11].mxu1 }
 0x140   : > { %v997_v52 = vadd.f32 %v985_v51, %v877_v49 }
 0x15a   : > { %v2004_v53 = vpop.f32.mrb[12].mxu0 }
 0x15b   : > { %v1134_v54 = vadd.f32 %v2004_v53, %v998_v46  ;;  %v1118_v55 = vpop.f32.mrb[13].mxu0  ;;  %v2024_v56 = vpop.f32.mrb[12].mxu1 }
 0x15c   : > { %v1132_v57 = vadd.f32 %v1118_v55, %v996_v50  ;;  %v2005_v58 = vpop.f32.mrb[14].mxu0  ;;  %v1258_v59 = vpop.f32.mrb[13].mxu1 }
 0x15d   : > { %v1274_v60 = vadd.f32 %v2024_v56, %v1134_v54  ;;  %v1121_v61 = vpop.f32.mrb[15].mxu0  ;;  %v2025_v62 = vpop.f32.mrb[14].mxu1 }
 0x15e   : > { %v1133_v63 = vadd.f32 %v1121_v61, %v997_v52  ;;  %v1272_v0 = vadd.f32 %v1258_v59, %v1132_v57  ;;  %v1261_v1 = vpop.f32.mrb[15].mxu1 }
 0x160   : > { %v1273_v2 = vadd.f32 %v1261_v1, %v1133_v63 }
 0x17a   : > { %v2044_v3 = vpop.f32.mrb[16].mxu0 }
 0x17b   : > { %v1399_v5 = vadd.f32 %v2044_v3, %v1274_v60  ;;  %v1383_v6 = vpop.f32.mrb[17].mxu0 }
 0x17c   : > { %v1397_v7 = vadd.f32 %v1383_v6, %v1272_v0  ;;  %v2045_v8 = vpop.f32.mrb[18].mxu0 }
 0x17d   : > { %v1409_v9 = vadd.f32 %v1762_v4, %v1399_v5  ;;  %v1386_v10 = vpop.f32.mrb[19].mxu0 }
 0x17e   : > { %v1407_v11 = vadd.f32 %v1762_v4, %v1397_v7  ;;  %v1398_v14 = vadd.f32 %v1386_v10, %v1273_v2 }
 0x17f   : > { %vm1412_vm6 = vcmp.ge.f32.partialorder %v1409_v9, 0.0  ;;  %v1415_v15 = vmul.f32 0.25, %v1409_v9 }
 0x180   : > { %v1413_v16 = vmul.f32 0.25, %v1407_v11  ;;  %v1408_v17 = vadd.f32 %v1762_v4, %v1398_v14  ;;  %vm1410_vm7 = vcmp.ge.f32.partialorder %v1407_v11, 0.0 }
 0x181   : > { %v1418_v12 = vsel %vm1412_vm6, %v1409_v9, %v1415_v15 }
 0x182   : > { %v1770_v13 = vpack.c.bf16 %v1418_v12, %v1418_v12  ;;  %vm1411_vm8 = vcmp.ge.f32.partialorder %v1408_v17, 0.0  ;;  %v1414_v18 = vmul.f32 0.25, %v1408_v17  ;;  %v1416_v19 = vsel %vm1410_vm7, %v1407_v11, %v1413_v16 }
 0x184   : > { %1434 = vst [vmem:[%s221_s6 + $0x8] sm:$0xf] %v1770_v13  ;;  %v1417_v20 = vsel %vm1411_vm8, %v1408_v17, %v1414_v18 }
 0x185   : > { %v1774_v21 = vpack.c.bf16 %v1417_v20, %v1416_v19 }
 0x187   : > { %1775 = vst [vmem:[%s221_s6] sm:$0xff] %v1774_v21  }
 0x188 PF: > { %s13_s14 = sadd.s32 1, %s2179_s14   ;;  %s2529_s12 = smov %s2175_s13 }
 0x189   : > { %p10_p5 = scmp.ge.s32.totalorder %s13_s14, 4   ;;  %s2530_s13 = smov %s2532_s15 }
 0x18b   :  { %12 = sbr.rel (!%p10_p5) target bundleno = 2 (0x2), region = 76 }

</bundles_post_ra>
